<compile_context>
chip_gen: v7x
topology: tpu7x:2x2x1
jax: 0.10.0
libtpu: 0.0.40
codegen_flags: <defaults>
</compile_context>

<pallas_src>
import jax
import jax.numpy as jnp
from jax import lax
from jax.experimental import pallas as pl
from jax.experimental.pallas import tpu as pltpu

BN_EPS = 1e-5
CIN, COUT, CPAD, EMB = 3, 64, 128, 128


# ---------------------------------------------------------------------------
# Fused kernel: conv-as-matmul + bias + batch-stat BatchNorm + ReLU + Linear
# ---------------------------------------------------------------------------
def _mobilefacenet_kernel(p_ref, wm_ref, cb_ref, g_ref, b_ref, wfc_ref, bfc_ref,
                          o_ref, feat_ref):
    # p_ref:   (P*N, 9*Cin) f32  im2col patches, row index = p*N + n
    # wm_ref:  (9*Cin, Cpad) bf16 conv weight, cols (kh, kw, ci), zero-padded lanes
    # cb/g/b:  (1, Cpad) f32      conv bias / BN gamma / BN beta (zero-padded)
    # wfc_ref: (P, Cpad, E) bf16  fc weight, wfc[p, c, e] == W_torch[e, c*P + p]
    # bfc_ref: (1, E) f32         fc bias
    # o_ref:   (N, E) f32         embeddings
    # feat_ref:(P, N, Cpad) f32   VMEM scratch for the post-ReLU feature map
    P, N, Cpad = feat_ref.shape
    E = o_ref.shape[-1]

    # Conv2d(3, 64, k=3, s=2, p=1) as a single im2col matmul (f32 accumulate).
    conv = jnp.dot(p_ref[...], wm_ref[...].astype(jnp.float32),
                   preferred_element_type=jnp.float32) + cb_ref[...]

    # BatchNorm2d, training mode: biased batch stats over all N*Ho*Wo rows per channel.
    mean = jnp.mean(conv, axis=0, keepdims=True)
    var = jnp.mean((conv - mean) ** 2, axis=0, keepdims=True)
    y = (conv - mean) * lax.rsqrt(var + BN_EPS) * g_ref[...] + b_ref[...]
    y = jnp.maximum(y, 0.0)                                        # ReLU

    # Keep the feature map resident in VMEM; (P*N, C) -> (P, N, C) is tile-exact
    # because N == 8 (one f32 sublane tile per spatial position).
    feat_ref[...] = y.reshape(P, N, Cpad)

    # Linear(feature_dim, E): batched-over-p matmul, bf16 operands, f32 accumulation.
    step = 16                                  # spatial positions per unrolled chunk
    acc = jnp.zeros((N, E), jnp.float32)
    for lo in range(0, P, step):               # static, unrolled (P // step = 4 chunks)
        hi = min(lo + step, P)
        f_blk = feat_ref[lo:hi].astype(jnp.bfloat16)      # (pb, N, Cpad)
        w_blk = wfc_ref[lo:hi]                            # (pb, Cpad, E) bf16
        part = jnp.einsum("pnc,pce->pne", f_blk, w_blk,
                          preferred_element_type=jnp.float32)
        acc = acc + jnp.sum(part, axis=0)
    o_ref[...] = acc + bfc_ref[...]


def fused_forward_call(patches, prep, n_batch):
    rows, kk9 = patches.shape
    P, Cpad, E = prep["wfc"].shape

    def full(*shape):
        return pl.BlockSpec(shape, lambda i: (0,) * len(shape))

    return pl.pallas_call(
        _mobilefacenet_kernel,
        out_shape=jax.ShapeDtypeStruct((n_batch, E), jnp.float32),
        grid=(1,),
        in_specs=[
            full(rows, kk9),          # im2col patches
            full(kk9, Cpad),          # conv weight (bf16)
            full(1, Cpad),            # conv bias
            full(1, Cpad),            # BN gamma
            full(1, Cpad),            # BN beta
            full(P, Cpad, E),         # fc weight (bf16), whole contraction resident
            full(1, E),               # fc bias
        ],
        out_specs=full(n_batch, E),
        scratch_shapes=[pltpu.VMEM((P, n_batch, Cpad), jnp.float32)],
        compiler_params=pltpu.CompilerParams(
            dimension_semantics=("arbitrary",),
            vmem_limit_bytes=32 * 1024 * 1024,
        ),
    )(patches, prep["wmat"], prep["cbias"], prep["gamma"], prep["beta"],
      prep["wfc"], prep["bfc"])


# ---------------------------------------------------------------------------
# Glue: im2col (k=3, stride 2, pad 1), torch-layout init, one-time parameter prep
# ---------------------------------------------------------------------------
def im2col_s2_p1_k3(x_nhwc):
    # TODO(synk): strided patch gathering stays wrapper-side XLA indexing; at real
    # 112x112 scale it should be folded into the kernel (shifted VMEM reads).
    N, H, W, Cin = x_nhwc.shape
    Ho, Wo = (H - 1) // 2 + 1, (W - 1) // 2 + 1
    xp = jnp.pad(x_nhwc, ((0, 0), (1, 1), (1, 1), (0, 0)))
    cols = [xp[:, kh:kh + 2 * Ho:2, kw:kw + 2 * Wo:2, :]
            for kh in range(3) for kw in range(3)]
    patches = jnp.stack(cols, axis=3)                     # (N, Ho, Wo, 9, Cin)
    patches = jnp.transpose(patches, (1, 2, 0, 3, 4))     # (Ho, Wo, N, 9, Cin)
    return patches.reshape(Ho * Wo * N, 9 * Cin), Ho, Wo  # row index = p*N + n


def init_params(key, cin=CIN, cout=COUT, ho=8, wo=8, emb=EMB):
    ks = jax.random.split(key, 4)
    # Torch parameter shapes: conv (Cout, Cin, 3, 3); fc weight (E, C*H*W).
    w_conv = jax.random.normal(ks[0], (cout, cin, 3, 3), jnp.float32) * 0.05
    b_conv = jax.random.normal(ks[1], (cout,), jnp.float32) * 0.05
    gamma = jnp.ones((cout,), jnp.float32)     # BatchNorm2d default init
    beta = jnp.zeros((cout,), jnp.float32)
    w_fc = jax.random.normal(ks[2], (emb, cout * ho * wo), jnp.float32) * 0.02
    b_fc = jax.random.normal(ks[3], (emb,), jnp.float32) * 0.02
    return dict(w_conv=w_conv, b_conv=b_conv, gamma=gamma, beta=beta,
                w_fc=w_fc, b_fc=b_fc)


def prepare_params(params, ho, wo):
    """One-time conversion of torch-layout params into kernel-ready layouts
    (hoisted out of the forward): permute, zero-pad Cout 64->128 lanes, cast bf16."""
    cout, cin, kh, kw = params["w_conv"].shape
    emb = params["w_fc"].shape[0]
    P = ho * wo

    # Conv weight (Cout, Cin, 3, 3) -> (kh*kw*Cin, Cout), matching im2col column order.
    wmat = jnp.transpose(params["w_conv"], (2, 3, 1, 0)).reshape(kh * kw * cin, cout)
    wmat = jnp.pad(wmat, ((0, 0), (0, CPAD - cout))).astype(jnp.bfloat16)

    def pad_row(v):
        return jnp.pad(v, (0, CPAD - cout)).reshape(1, CPAD).astype(jnp.float32)

    # FC weight (E, C*Ho*Wo); torch flatten order is c*P + p  ->  (P, Cpad, E).
    wfc = params["w_fc"].reshape(emb, cout, P)
    wfc = jnp.transpose(wfc, (2, 1, 0))                              # (P, Cout, E)
    wfc = jnp.pad(wfc, ((0, 0), (0, CPAD - cout), (0, 0))).astype(jnp.bfloat16)

    return dict(wmat=wmat, cbias=pad_row(params["b_conv"]),
                gamma=pad_row(params["gamma"]), beta=pad_row(params["beta"]),
                wfc=wfc, bfc=params["b_fc"].reshape(1, emb).astype(jnp.float32))


def mobilefacenet_forward(prep, x_nchw):
    n = x_nchw.shape[0]
    x_nhwc = jnp.transpose(x_nchw, (0, 2, 3, 1))
    patches, _, _ = im2col_s2_p1_k3(x_nhwc)
    return fused_forward_call(patches, prep, n)


if __name__ == "__main__":
    key = jax.random.PRNGKey(0)
    kx, kp = jax.random.split(key)
    # Batch 8 so one spatial position spans exactly one f32 sublane tile, making the
    # in-kernel (P*N, C) -> (P, N, C) reshape tile-exact.
    N, H, W = 8, 16, 16
    x = jax.random.normal(kx, (N, CIN, H, W), jnp.float32)          # NCHW, like PyTorch
    params = init_params(kp, ho=H // 2, wo=W // 2)
    prep = prepare_params(params, ho=H // 2, wo=W // 2)             # hoisted, one-time
    fwd = jax.jit(mobilefacenet_forward)
    out = jax.block_until_ready(fwd(prep, x))
    assert out.shape == (N, EMB) and out.dtype == jnp.float32
    print("KERNEL_OK")
</pallas_src>

<mosaic_0001>
module attributes {stable_mosaic.version = 11 : i64} {
  func.func @_mobilefacenet_kernel(%arg0: i32, %arg1: memref<512x27xf32, #tpu.memory_space<vmem>>, %arg2: memref<27x128xbf16, #tpu.memory_space<vmem>>, %arg3: memref<1x128xf32, #tpu.memory_space<vmem>>, %arg4: memref<1x128xf32, #tpu.memory_space<vmem>>, %arg5: memref<1x128xf32, #tpu.memory_space<vmem>>, %arg6: memref<64x128x128xbf16, #tpu.memory_space<vmem>>, %arg7: memref<1x128xf32, #tpu.memory_space<vmem>>, %arg8: memref<8x128xf32, #tpu.memory_space<vmem>>, %arg9: memref<64x8x128xf32, #tpu.memory_space<vmem>>) attributes {dimension_semantics = [#tpu.dimension_semantics<arbitrary>], iteration_bounds = array<i64: 1>, scalar_prefetch = 0 : i64, scratch_operands = 1 : i64, tpu.core_type = #tpu.core_type<tc>, window_params = [{pipeline_mode = #tpu.pipeline_mode<synchronous>, transform_indices = @transform_0, window_bounds = array<i64: 512, 27>}, {pipeline_mode = #tpu.pipeline_mode<synchronous>, transform_indices = @transform_1, window_bounds = array<i64: 27, 128>}, {pipeline_mode = #tpu.pipeline_mode<synchronous>, transform_indices = @transform_2, window_bounds = array<i64: 1, 128>}, {pipeline_mode = #tpu.pipeline_mode<synchronous>, transform_indices = @transform_3, window_bounds = array<i64: 1, 128>}, {pipeline_mode = #tpu.pipeline_mode<synchronous>, transform_indices = @transform_4, window_bounds = array<i64: 1, 128>}, {pipeline_mode = #tpu.pipeline_mode<synchronous>, transform_indices = @transform_5, window_bounds = array<i64: 64, 128, 128>}, {pipeline_mode = #tpu.pipeline_mode<synchronous>, transform_indices = @transform_6, window_bounds = array<i64: 1, 128>}, {pipeline_mode = #tpu.pipeline_mode<synchronous>, transform_indices = @transform_7, window_bounds = array<i64: 8, 128>}]} {
    %c0 = arith.constant 0 : index
    %c0_0 = arith.constant 0 : index
    %0 = vector.load %arg1[%c0, %c0_0] : memref<512x27xf32, #tpu.memory_space<vmem>>, vector<512x27xf32>
    %c0_1 = arith.constant 0 : index
    %c0_2 = arith.constant 0 : index
    %1 = vector.load %arg2[%c0_1, %c0_2] : memref<27x128xbf16, #tpu.memory_space<vmem>>, vector<27x128xbf16>
    %2 = arith.extf %1 : vector<27x128xbf16> to vector<27x128xf32>
    %cst = arith.constant dense<0.000000e+00> : vector<512x128xf32>
    %3 = tpu.matmul %0, %2, %cst {dimension_numbers = #tpu.dot_dimension_numbers<[1], [0], [0], [1], [0, 0, 1, 1], [], []>} : vector<512x27xf32>, vector<27x128xf32>, vector<512x128xf32> -> vector<512x128xf32>
    %c0_3 = arith.constant 0 : index
    %c0_4 = arith.constant 0 : index
    %4 = vector.load %arg3[%c0_3, %c0_4] : memref<1x128xf32, #tpu.memory_space<vmem>>, vector<1x128xf32>
    %5 = vector.broadcast %4 : vector<1x128xf32> to vector<512x128xf32>
    %6 = arith.addf %3, %5 : vector<512x128xf32>
    %cst_5 = arith.constant dense<0.000000e+00> : vector<128xf32>
    %7 = vector.multi_reduction <add>, %6, %cst_5 [0] : vector<512x128xf32> to vector<128xf32>
    %8 = vector.shape_cast %7 : vector<128xf32> to vector<1x128xf32>
    %cst_6 = arith.constant 5.120000e+02 : f32
    %9 = vector.broadcast %cst_6 : f32 to vector<1x128xf32>
    %10 = arith.divf %8, %9 : vector<1x128xf32>
    %11 = vector.broadcast %10 : vector<1x128xf32> to vector<512x128xf32>
    %12 = arith.subf %6, %11 : vector<512x128xf32>
    %13 = arith.mulf %12, %12 : vector<512x128xf32>
    %cst_7 = arith.constant dense<0.000000e+00> : vector<128xf32>
    %14 = vector.multi_reduction <add>, %13, %cst_7 [0] : vector<512x128xf32> to vector<128xf32>
    %15 = vector.shape_cast %14 : vector<128xf32> to vector<1x128xf32>
    %cst_8 = arith.constant 5.120000e+02 : f32
    %16 = vector.broadcast %cst_8 : f32 to vector<1x128xf32>
    %17 = arith.divf %15, %16 : vector<1x128xf32>
    %18 = vector.broadcast %10 : vector<1x128xf32> to vector<512x128xf32>
    %19 = arith.subf %6, %18 : vector<512x128xf32>
    %cst_9 = arith.constant 9.99999974E-6 : f32
    %20 = vector.broadcast %cst_9 : f32 to vector<1x128xf32>
    %21 = arith.addf %17, %20 : vector<1x128xf32>
    %22 = math.rsqrt %21 : vector<1x128xf32>
    %23 = vector.broadcast %22 : vector<1x128xf32> to vector<512x128xf32>
    %24 = arith.mulf %19, %23 : vector<512x128xf32>
    %c0_10 = arith.constant 0 : index
    %c0_11 = arith.constant 0 : index
    %25 = vector.load %arg4[%c0_10, %c0_11] : memref<1x128xf32, #tpu.memory_space<vmem>>, vector<1x128xf32>
    %26 = vector.broadcast %25 : vector<1x128xf32> to vector<512x128xf32>
    %27 = arith.mulf %24, %26 : vector<512x128xf32>
    %c0_12 = arith.constant 0 : index
    %c0_13 = arith.constant 0 : index
    %28 = vector.load %arg5[%c0_12, %c0_13] : memref<1x128xf32, #tpu.memory_space<vmem>>, vector<1x128xf32>
    %29 = vector.broadcast %28 : vector<1x128xf32> to vector<512x128xf32>
    %30 = arith.addf %27, %29 : vector<512x128xf32>
    %cst_14 = arith.constant 0.000000e+00 : f32
    %31 = vector.broadcast %cst_14 : f32 to vector<512x128xf32>
    %32 = arith.maximumf %30, %31 : vector<512x128xf32>
    %33 = vector.shape_cast %32 : vector<512x128xf32> to vector<64x8x128xf32>
    %c0_15 = arith.constant 0 : index
    %c0_16 = arith.constant 0 : index
    %c0_17 = arith.constant 0 : index
    %34 = vector.load %arg9[%c0_15, %c0_16, %c0_17] : memref<64x8x128xf32, #tpu.memory_space<vmem>>, vector<64x8x128xf32>
    tpu.vector_store %arg9[%c0_15, %c0_16, %c0_17], %33 {strides = array<i32>} : memref<64x8x128xf32, #tpu.memory_space<vmem>>, vector<64x8x128xf32>,
    %cst_18 = arith.constant 0.000000e+00 : f32
    %35 = vector.broadcast %cst_18 : f32 to vector<8x128xf32>
    %c0_19 = arith.constant 0 : index
    %c0_20 = arith.constant 0 : index
    %c0_21 = arith.constant 0 : index
    %36 = vector.load %arg9[%c0_19, %c0_20, %c0_21] : memref<64x8x128xf32, #tpu.memory_space<vmem>>, vector<16x8x128xf32>
    %37 = arith.truncf %36 : vector<16x8x128xf32> to vector<16x8x128xbf16>
    %c0_22 = arith.constant 0 : index
    %c0_23 = arith.constant 0 : index
    %c0_24 = arith.constant 0 : index
    %38 = vector.load %arg6[%c0_22, %c0_23, %c0_24] : memref<64x128x128xbf16, #tpu.memory_space<vmem>>, vector<16x128x128xbf16>
    "tpu.trace_start"() <{level = 10 : i32, message = "pnc,pce->pne"}> : () -> ()
    %cst_25 = arith.constant dense<0.000000e+00> : vector<16x8x128xf32>
    %39 = tpu.matmul %37, %38, %cst_25 {dimension_numbers = #tpu.dot_dimension_numbers<[2], [1], [1], [2], [0, 0, 0, 1, 1, 2], [0], [0]>} : vector<16x8x128xbf16>, vector<16x128x128xbf16>, vector<16x8x128xf32> -> vector<16x8x128xf32>
    "tpu.trace_stop"() : () -> ()
    %cst_26 = arith.constant dense<0.000000e+00> : vector<8x128xf32>
    %40 = vector.multi_reduction <add>, %39, %cst_26 [0] : vector<16x8x128xf32> to vector<8x128xf32>
    %41 = arith.addf %35, %40 : vector<8x128xf32>
    %c16 = arith.constant 16 : index
    %c0_27 = arith.constant 0 : index
    %c0_28 = arith.constant 0 : index
    %42 = vector.load %arg9[%c16, %c0_27, %c0_28] : memref<64x8x128xf32, #tpu.memory_space<vmem>>, vector<16x8x128xf32>
    %43 = arith.truncf %42 : vector<16x8x128xf32> to vector<16x8x128xbf16>
    %c16_29 = arith.constant 16 : index
    %c0_30 = arith.constant 0 : index
    %c0_31 = arith.constant 0 : index
    %44 = vector.load %arg6[%c16_29, %c0_30, %c0_31] : memref<64x128x128xbf16, #tpu.memory_space<vmem>>, vector<16x128x128xbf16>
    "tpu.trace_start"() <{level = 10 : i32, message = "pnc,pce->pne"}> : () -> ()
    %cst_32 = arith.constant dense<0.000000e+00> : vector<16x8x128xf32>
    %45 = tpu.matmul %43, %44, %cst_32 {dimension_numbers = #tpu.dot_dimension_numbers<[2], [1], [1], [2], [0, 0, 0, 1, 1, 2], [0], [0]>} : vector<16x8x128xbf16>, vector<16x128x128xbf16>, vector<16x8x128xf32> -> vector<16x8x128xf32>
    "tpu.trace_stop"() : () -> ()
    %cst_33 = arith.constant dense<0.000000e+00> : vector<8x128xf32>
    %46 = vector.multi_reduction <add>, %45, %cst_33 [0] : vector<16x8x128xf32> to vector<8x128xf32>
    %47 = arith.addf %41, %46 : vector<8x128xf32>
    %c32 = arith.constant 32 : index
    %c0_34 = arith.constant 0 : index
    %c0_35 = arith.constant 0 : index
    %48 = vector.load %arg9[%c32, %c0_34, %c0_35] : memref<64x8x128xf32, #tpu.memory_space<vmem>>, vector<16x8x128xf32>
    %49 = arith.truncf %48 : vector<16x8x128xf32> to vector<16x8x128xbf16>
    %c32_36 = arith.constant 32 : index
    %c0_37 = arith.constant 0 : index
    %c0_38 = arith.constant 0 : index
    %50 = vector.load %arg6[%c32_36, %c0_37, %c0_38] : memref<64x128x128xbf16, #tpu.memory_space<vmem>>, vector<16x128x128xbf16>
    "tpu.trace_start"() <{level = 10 : i32, message = "pnc,pce->pne"}> : () -> ()
    %cst_39 = arith.constant dense<0.000000e+00> : vector<16x8x128xf32>
    %51 = tpu.matmul %49, %50, %cst_39 {dimension_numbers = #tpu.dot_dimension_numbers<[2], [1], [1], [2], [0, 0, 0, 1, 1, 2], [0], [0]>} : vector<16x8x128xbf16>, vector<16x128x128xbf16>, vector<16x8x128xf32> -> vector<16x8x128xf32>
    "tpu.trace_stop"() : () -> ()
    %cst_40 = arith.constant dense<0.000000e+00> : vector<8x128xf32>
    %52 = vector.multi_reduction <add>, %51, %cst_40 [0] : vector<16x8x128xf32> to vector<8x128xf32>
    %53 = arith.addf %47, %52 : vector<8x128xf32>
    %c48 = arith.constant 48 : index
    %c0_41 = arith.constant 0 : index
    %c0_42 = arith.constant 0 : index
    %54 = vector.load %arg9[%c48, %c0_41, %c0_42] : memref<64x8x128xf32, #tpu.memory_space<vmem>>, vector<16x8x128xf32>
    %55 = arith.truncf %54 : vector<16x8x128xf32> to vector<16x8x128xbf16>
    %c48_43 = arith.constant 48 : index
    %c0_44 = arith.constant 0 : index
    %c0_45 = arith.constant 0 : index
    %56 = vector.load %arg6[%c48_43, %c0_44, %c0_45] : memref<64x128x128xbf16, #tpu.memory_space<vmem>>, vector<16x128x128xbf16>
    "tpu.trace_start"() <{level = 10 : i32, message = "pnc,pce->pne"}> : () -> ()
    %cst_46 = arith.constant dense<0.000000e+00> : vector<16x8x128xf32>
    %57 = tpu.matmul %55, %56, %cst_46 {dimension_numbers = #tpu.dot_dimension_numbers<[2], [1], [1], [2], [0, 0, 0, 1, 1, 2], [0], [0]>} : vector<16x8x128xbf16>, vector<16x128x128xbf16>, vector<16x8x128xf32> -> vector<16x8x128xf32>
    "tpu.trace_stop"() : () -> ()
    %cst_47 = arith.constant dense<0.000000e+00> : vector<8x128xf32>
    %58 = vector.multi_reduction <add>, %57, %cst_47 [0] : vector<16x8x128xf32> to vector<8x128xf32>
    %59 = arith.addf %53, %58 : vector<8x128xf32>
    %c0_48 = arith.constant 0 : index
    %c0_49 = arith.constant 0 : index
    %60 = vector.load %arg7[%c0_48, %c0_49] : memref<1x128xf32, #tpu.memory_space<vmem>>, vector<1x128xf32>
    %61 = vector.broadcast %60 : vector<1x128xf32> to vector<8x128xf32>
    %62 = arith.addf %59, %61 : vector<8x128xf32>
    %c0_50 = arith.constant 0 : index
    %c0_51 = arith.constant 0 : index
    %63 = vector.load %arg8[%c0_50, %c0_51] : memref<8x128xf32, #tpu.memory_space<vmem>>, vector<8x128xf32>
    tpu.vector_store %arg8[%c0_50, %c0_51], %62 {strides = array<i32>} : memref<8x128xf32, #tpu.memory_space<vmem>>, vector<8x128xf32>,
    return
  }
  func.func @transform_0(%arg0: i32) -> (i32, i32) {
    %c0_i32 = arith.constant 0 : i32
    %c0_i32_0 = arith.constant 0 : i32
    %c0_i32_1 = arith.constant 0 : i32
    return %c0_i32, %c0_i32_0 : i32, i32
  }
  func.func @transform_1(%arg0: i32) -> (i32, i32) {
    %c0_i32 = arith.constant 0 : i32
    %c0_i32_0 = arith.constant 0 : i32
    %c0_i32_1 = arith.constant 0 : i32
    return %c0_i32, %c0_i32_0 : i32, i32
  }
  func.func @transform_2(%arg0: i32) -> (i32, i32) {
    %c0_i32 = arith.constant 0 : i32
    %c0_i32_0 = arith.constant 0 : i32
    %c0_i32_1 = arith.constant 0 : i32
    return %c0_i32, %c0_i32_0 : i32, i32
  }
  func.func @transform_3(%arg0: i32) -> (i32, i32) {
    %c0_i32 = arith.constant 0 : i32
    %c0_i32_0 = arith.constant 0 : i32
    %c0_i32_1 = arith.constant 0 : i32
    return %c0_i32, %c0_i32_0 : i32, i32
  }
  func.func @transform_4(%arg0: i32) -> (i32, i32) {
    %c0_i32 = arith.constant 0 : i32
    %c0_i32_0 = arith.constant 0 : i32
    %c0_i32_1 = arith.constant 0 : i32
    return %c0_i32, %c0_i32_0 : i32, i32
  }
  func.func @transform_5(%arg0: i32) -> (i32, i32, i32) {
    %c0_i32 = arith.constant 0 : i32
    %c0_i32_0 = arith.constant 0 : i32
    %c0_i32_1 = arith.constant 0 : i32
    %c0_i32_2 = arith.constant 0 : i32
    return %c0_i32, %c0_i32_0, %c0_i32_1 : i32, i32, i32
  }
  func.func @transform_6(%arg0: i32) -> (i32, i32) {
    %c0_i32 = arith.constant 0 : i32
    %c0_i32_0 = arith.constant 0 : i32
    %c0_i32_1 = arith.constant 0 : i32
    return %c0_i32, %c0_i32_0 : i32, i32
  }
  func.func @transform_7(%arg0: i32) -> (i32, i32) {
    %c0_i32 = arith.constant 0 : i32
    %c0_i32_0 = arith.constant 0 : i32
    %c0_i32_1 = arith.constant 0 : i32
    return %c0_i32, %c0_i32_0 : i32, i32
  }
}

</mosaic_0001>

<bundles_post_ra>
// kernel: mobilefacenet_forward.1
= control target key start
LH: loop header
LB: loop body
LE: loop exit
PB: predicated region body
PF: predicated region fallthrough
CT: control target
= control target key end

     0   :  { %vm300_vm0 = vcmask 1042432   ;;  %vm107_vm1 = vcmask 220160   ;;  %vm12108_vm2 = vmmov 1   ;;  %s15903_s0 = inlined_call_operand.vmem [shape: f32[512,27], index: 0, kind: input, shape index: {}]   ;;  %s15904_s1 = inlined_call_operand.vmem [shape: bf16[27,128], index: 1, kind: input, shape index: {}]   ;;  %s15905_s2 = inlined_call_operand.vmem [shape: f32[1,128], index: 2, kind: input, shape index: {}]   ;;  %s15906_s3 = inlined_call_operand.vmem [shape: f32[1,128], index: 3, kind: input, shape index: {}]   ;;  %s15907_s4 = inlined_call_operand.vmem [shape: f32[1,128], index: 4, kind: input, shape index: {}]   ;;  %s15908_s5 = inlined_call_operand.vmem [shape: bf16[64,128,128], index: 5, kind: input, shape index: {}]   ;;  %s15909_s6 = inlined_call_operand.vmem [shape: f32[1,128], index: 6, kind: input, shape index: {}]   ;;  %s15910_s7 = inlined_call_operand.hbm [shape: f32[8,128], index: 7, kind: output, shape index: {}]  }
   0x1   :  { %v9521_v0 = vld [vmem:[%s15904_s1] sm:$0xff]   ;;  %v11568_v1 = vld [vmem:[%s15904_s1 + $0x8] sm:$0x3f]   ;;  %vm11557_vm3 = vmpackc.low %vm300_vm0, %vm12108_vm2 }
   0x2   :  { %11553 = vmatprep.subr.bf16.mxu0 %v9521_v0  ;;  %v28_v2 = vld [vmem:[%s15903_s0] sm:$0xff]  ;;  %v29_v3 = vld [vmem:[%s15903_s0 + $0x8] sm:$0xff]  ;;  %v30_v4 = vld [vmem:[%s15903_s0 + $0x10] sm:$0xff] }
   0x3   :  { %11555 = vmatpush3.bf16.msra.mxu0 %v9521_v0  ;;  %10176 = vmatprep.mubr.msk.f32.mxu0 %vm107_vm1, %v28_v2  ;;  %v31_v5 = vld [vmem:[%s15903_s0 + $0x18] sm:$0xff]  ;;  %v32_v6 = vld [vmem:[%s15903_s0 + $0x20] sm:$0xff]  ;;  %v33_v7 = vld [vmem:[%s15903_s0 + $0x28] sm:$0xff] }
   0x4   :  { %11558 = vmatprep.subr.msk.bf16.mxu0 %vm11557_vm3, %v11568_v1  ;;  %v34_v8 = vld [vmem:[%s15903_s0 + $0x30] sm:$0xff]  ;;  %v35_v9 = vld [vmem:[%s15903_s0 + $0x38] sm:$0xff]  ;;  %v36_v10 = vld [vmem:[%s15903_s0 + $0x40] sm:$0xff] }
   0x5   :  { %v37_v11 = vld [vmem:[%s15903_s0 + $0x48] sm:$0xff]  ;;  %v38_v12 = vld [vmem:[%s15903_s0 + $0x50] sm:$0xff]  ;;  %v39_v13 = vld [vmem:[%s15903_s0 + $0x58] sm:$0xff] }
   0x6   :  { %v40_v14 = vld [vmem:[%s15903_s0 + $0x60] sm:$0xff]  ;;  %v41_v15 = vld [vmem:[%s15903_s0 + $0x68] sm:$0xff]  ;;  %v42_v16 = vld [vmem:[%s15903_s0 + $0x70] sm:$0xff] }
   0x7   :  { %11561 = vmatpush3.bf16.msk.msra.mxu0 %vm11557_vm3, %v11568_v1  ;;  %v43_v17 = vld [vmem:[%s15903_s0 + $0x78] sm:$0xff]  ;;  %v44_v18 = vld [vmem:[%s15903_s0 + $0x80] sm:$0xff]  ;;  %v45_v19 = vld [vmem:[%s15903_s0 + $0x88] sm:$0xff] }
   0x8   :  { %v46_v20 = vld [vmem:[%s15903_s0 + $0x90] sm:$0xff]  ;;  %v47_v21 = vld [vmem:[%s15903_s0 + $0x98] sm:$0xff]  ;;  %v48_v22 = vld [vmem:[%s15903_s0 + $0xa0] sm:$0xff] }
   0x9   :  { %v49_v23 = vld [vmem:[%s15903_s0 + $0xa8] sm:$0xff]  ;;  %v50_v24 = vld [vmem:[%s15903_s0 + $0xb0] sm:$0xff]  ;;  %v51_v25 = vld [vmem:[%s15903_s0 + $0xb8] sm:$0xff] }
   0xa   :  { %10177 = vmatmul.mubr.msk.f32.vlgmr.msra.gmra.mrb[0].mxu0 %vm107_vm1, %v29_v3  ;;  %v52_v26 = vld [vmem:[%s15903_s0 + $0xc0] sm:$0xff]  ;;  %v53_v27 = vld [vmem:[%s15903_s0 + $0xc8] sm:$0xff]  ;;  %v54_v28 = vld [vmem:[%s15903_s0 + $0xd0] sm:$0xff] }
   0xb   :  { %10179 = vmatprep.mubr.msk.f32.mxu0 %vm107_vm1, %v30_v4  ;;  %v55_v29 = vld [vmem:[%s15903_s0 + $0xd8] sm:$0xff]  ;;  %v56_v30 = vld [vmem:[%s15903_s0 + $0xe0] sm:$0xff]  ;;  %v57_v31 = vld [vmem:[%s15903_s0 + $0xe8] sm:$0xff] }
   0xc   :  { %v58_v32 = vld [vmem:[%s15903_s0 + $0xf0] sm:$0xff]  ;;  %v59_v33 = vld [vmem:[%s15903_s0 + $0xf8] sm:$0xff]  ;;  %v60_v34 = vld [vmem:[%s15903_s0 + $0x100] sm:$0xff] }
   0xd   :  { %v61_v35 = vld [vmem:[%s15903_s0 + $0x108] sm:$0xff]  ;;  %v62_v36 = vld [vmem:[%s15903_s0 + $0x110] sm:$0xff]  ;;  %v63_v37 = vld [vmem:[%s15903_s0 + $0x118] sm:$0xff] }
   0xe   :  { %10180 = vmatmul.mubr.msk.f32.gmra.mrb[2].mxu0 %vm107_vm1, %v31_v5  ;;  %v64_v38 = vld [vmem:[%s15903_s0 + $0x120] sm:$0xff]  ;;  %v65_v39 = vld [vmem:[%s15903_s0 + $0x128] sm:$0xff]  ;;  %v66_v40 = vld [vmem:[%s15903_s0 + $0x130] sm:$0xff] }
   0xf   :  { %10182 = vmatprep.mubr.msk.f32.mxu0 %vm107_vm1, %v32_v6  ;;  %v67_v41 = vld [vmem:[%s15903_s0 + $0x138] sm:$0xff]  ;;  %v68_v42 = vld [vmem:[%s15903_s0 + $0x140] sm:$0xff]  ;;  %v69_v43 = vld [vmem:[%s15903_s0 + $0x148] sm:$0xff] }
  0x10   :  { %v70_v44 = vld [vmem:[%s15903_s0 + $0x150] sm:$0xff]  ;;  %v71_v45 = vld [vmem:[%s15903_s0 + $0x158] sm:$0xff]  ;;  %v72_v46 = vld [vmem:[%s15903_s0 + $0x160] sm:$0xff] }
  0x11   :  { %v73_v47 = vld [vmem:[%s15903_s0 + $0x168] sm:$0xff]  ;;  %v74_v48 = vld [vmem:[%s15903_s0 + $0x170] sm:$0xff]  ;;  %v75_v49 = vld [vmem:[%s15903_s0 + $0x178] sm:$0xff] }
  0x12   :  { %10183 = vmatmul.mubr.msk.f32.gmra.mrb[4].mxu0 %vm107_vm1, %v33_v7  ;;  %v76_v50 = vld [vmem:[%s15903_s0 + $0x180] sm:$0xff]  ;;  %v77_v51 = vld [vmem:[%s15903_s0 + $0x188] sm:$0xff]  ;;  %v78_v52 = vld [vmem:[%s15903_s0 + $0x190] sm:$0xff] }
  0x13   :  { %10185 = vmatprep.mubr.msk.f32.mxu0 %vm107_vm1, %v34_v8  ;;  %v79_v53 = vld [vmem:[%s15903_s0 + $0x198] sm:$0xff]  ;;  %v80_v54 = vld [vmem:[%s15903_s0 + $0x1a0] sm:$0xff]  ;;  %v81_v55 = vld [vmem:[%s15903_s0 + $0x1a8] sm:$0xff] }
  0x14   :  { %v82_v56 = vld [vmem:[%s15903_s0 + $0x1b0] sm:$0xff]  ;;  %v83_v57 = vld [vmem:[%s15903_s0 + $0x1b8] sm:$0xff]  ;;  %v84_v58 = vld [vmem:[%s15903_s0 + $0x1c0] sm:$0xff] }
  0x15   :  { %v85_v59 = vld [vmem:[%s15903_s0 + $0x1c8] sm:$0xff]  ;;  %v86_v60 = vld [vmem:[%s15903_s0 + $0x1d0] sm:$0xff]  ;;  %v87_v61 = vld [vmem:[%s15903_s0 + $0x1d8] sm:$0xff] }
  0x16   :  { %10186 = vmatmul.mubr.msk.f32.gmra.mrb[6].mxu0 %vm107_vm1, %v35_v9  ;;  %v88_v62 = vld [vmem:[%s15903_s0 + $0x1e0] sm:$0xff]  ;;  %v89_v63 = vld [vmem:[%s15903_s0 + $0x1e8] sm:$0xff]  ;;  %v90_v0 = vld [vmem:[%s15903_s0 + $0x1f0] sm:$0xff] }
  0x17   :  { %10188 = vmatprep.mubr.msk.f32.mxu0 %vm107_vm1, %v36_v10  ;;  %v91_v1 = vld [vmem:[%s15903_s0 + $0x1f8] sm:$0xff]  ;;  %v12417_v2 = vld [vmem:[%s15905_s2] ss:$0 sm:$0xff] }
  0x1a   :  { %10189 = vmatmul.mubr.msk.f32.gmra.mrb[8].mxu0 %vm107_vm1, %v37_v11 }
  0x1b   :  { %10191 = vmatprep.mubr.msk.f32.mxu0 %vm107_vm1, %v38_v12 }
  0x1e   :  { %10192 = vmatmul.mubr.msk.f32.gmra.mrb[10].mxu0 %vm107_vm1, %v39_v13 }
  0x1f   :  { %10194 = vmatprep.mubr.msk.f32.mxu0 %vm107_vm1, %v40_v14 }
  0x22   :  { %10195 = vmatmul.mubr.msk.f32.gmra.mrb[12].mxu0 %vm107_vm1, %v41_v15 }
  0x23   :  { %10197 = vmatprep.mubr.msk.f32.mxu0 %vm107_vm1, %v42_v16 }
  0x26   :  { %10198 = vmatmul.mubr.msk.f32.gmra.mrb[14].mxu0 %vm107_vm1, %v43_v17 }
  0x27   :  { %10200 = vmatprep.mubr.msk.f32.mxu0 %vm107_vm1, %v44_v18 }
  0x2a   :  { %10201 = vmatmul.mubr.msk.f32.gmra.mrb[16].mxu0 %vm107_vm1, %v45_v19 }
  0x2b   :  { %10203 = vmatprep.mubr.msk.f32.mxu0 %vm107_vm1, %v46_v20 }
  0x2e   :  { %10204 = vmatmul.mubr.msk.f32.gmra.mrb[18].mxu0 %vm107_vm1, %v47_v21 }
  0x2f   :  { %10206 = vmatprep.mubr.msk.f32.mxu0 %vm107_vm1, %v48_v22 }
  0x32   :  { %10207 = vmatmul.mubr.msk.f32.gmra.mrb[20].mxu0 %vm107_vm1, %v49_v23 }
  0x33   :  { %10209 = vmatprep.mubr.msk.f32.mxu0 %vm107_vm1, %v50_v24 }
  0x36   :  { %10210 = vmatmul.mubr.msk.f32.gmra.mrb[22].mxu0 %vm107_vm1, %v51_v25 }
  0x37   :  { %10212 = vmatprep.mubr.msk.f32.mxu0 %vm107_vm1, %v52_v26 }
  0x3a   :  { %10213 = vmatmul.mubr.msk.f32.gmra.mrb[24].mxu0 %vm107_vm1, %v53_v27 }
  0x3b   :  { %10215 = vmatprep.mubr.msk.f32.mxu0 %vm107_vm1, %v54_v28 }
  0x3e   :  { %10216 = vmatmul.mubr.msk.f32.gmra.mrb[26].mxu0 %vm107_vm1, %v55_v29 }
  0x3f   :  { %10218 = vmatprep.mubr.msk.f32.mxu0 %vm107_vm1, %v56_v30 }
  0x42   :  { %10219 = vmatmul.mubr.msk.f32.gmra.mrb[28].mxu0 %vm107_vm1, %v57_v31 }
  0x43   :  { %10221 = vmatprep.mubr.msk.f32.mxu0 %vm107_vm1, %v58_v32 }
  0x46   :  { %10222 = vmatmul.mubr.msk.f32.gmra.mrb[30].mxu0 %vm107_vm1, %v59_v33 }
  0x47   :  { %10224 = vmatprep.mubr.msk.f32.mxu0 %vm107_vm1, %v60_v34 }
  0x4a   :  { %10225 = vmatmul.mubr.msk.f32.gmra.mrb[32].mxu0 %vm107_vm1, %v61_v35 }
  0x4b   :  { %10227 = vmatprep.mubr.msk.f32.mxu0 %vm107_vm1, %v62_v36 }
  0x4e   :  { %10228 = vmatmul.mubr.msk.f32.gmra.mrb[34].mxu0 %vm107_vm1, %v63_v37 }
  0x4f   :  { %10230 = vmatprep.mubr.msk.f32.mxu0 %vm107_vm1, %v64_v38 }
  0x52   :  { %10231 = vmatmul.mubr.msk.f32.gmra.mrb[36].mxu0 %vm107_vm1, %v65_v39 }
  0x53   :  { %10233 = vmatprep.mubr.msk.f32.mxu0 %vm107_vm1, %v66_v40 }
  0x56   :  { %10234 = vmatmul.mubr.msk.f32.gmra.mrb[38].mxu0 %vm107_vm1, %v67_v41 }
  0x57   :  { %10236 = vmatprep.mubr.msk.f32.mxu0 %vm107_vm1, %v68_v42 }
  0x5a   :  { %10237 = vmatmul.mubr.msk.f32.gmra.mrb[40].mxu0 %vm107_vm1, %v69_v43 }
  0x5b   :  { %10239 = vmatprep.mubr.msk.f32.mxu0 %vm107_vm1, %v70_v44 }
  0x5e   :  { %10240 = vmatmul.mubr.msk.f32.gmra.mrb[42].mxu0 %vm107_vm1, %v71_v45 }
  0x5f   :  { %10242 = vmatprep.mubr.msk.f32.mxu0 %vm107_vm1, %v72_v46 }
  0x62   :  { %10243 = vmatmul.mubr.msk.f32.gmra.mrb[44].mxu0 %vm107_vm1, %v73_v47 }
  0x63   :  { %10245 = vmatprep.mubr.msk.f32.mxu0 %vm107_vm1, %v74_v48 }
  0x66   :  { %10246 = vmatmul.mubr.msk.f32.gmra.mrb[46].mxu0 %vm107_vm1, %v75_v49 }
  0x67   :  { %10248 = vmatprep.mubr.msk.f32.mxu0 %vm107_vm1, %v76_v50 }
  0x6a   :  { %10249 = vmatmul.mubr.msk.f32.gmra.mrb[48].mxu0 %vm107_vm1, %v77_v51 }
  0x6b   :  { %10251 = vmatprep.mubr.msk.f32.mxu0 %vm107_vm1, %v78_v52 }
  0x6e   :  { %10252 = vmatmul.mubr.msk.f32.gmra.mrb[50].mxu0 %vm107_vm1, %v79_v53 }
  0x6f   :  { %10254 = vmatprep.mubr.msk.f32.mxu0 %vm107_vm1, %v80_v54 }
  0x72   :  { %10255 = vmatmul.mubr.msk.f32.gmra.mrb[52].mxu0 %vm107_vm1, %v81_v55 }
  0x73   :  { %10257 = vmatprep.mubr.msk.f32.mxu0 %vm107_vm1, %v82_v56 }
  0x76   :  { %10258 = vmatmul.mubr.msk.f32.gmra.mrb[54].mxu0 %vm107_vm1, %v83_v57 }
  0x77   :  { %10260 = vmatprep.mubr.msk.f32.mxu0 %vm107_vm1, %v84_v58 }
  0x7a   :  { %10261 = vmatmul.mubr.msk.f32.gmra.mrb[56].mxu0 %vm107_vm1, %v85_v59 }
  0x7b   :  { %10263 = vmatprep.mubr.msk.f32.mxu0 %vm107_vm1, %v86_v60 }
  0x7e   :  { %10264 = vmatmul.mubr.msk.f32.gmra.mrb[58].mxu0 %vm107_vm1, %v87_v61 }
  0x7f   :  { %10266 = vmatprep.mubr.msk.f32.mxu0 %vm107_vm1, %v88_v62 }
  0x82   :  { %10267 = vmatmul.mubr.msk.f32.gmra.mrb[60].mxu0 %vm107_vm1, %v89_v63 }
  0x83   :  { %10269 = vmatprep.mubr.msk.f32.mxu0 %vm107_vm1, %v90_v0 }
  0x86   :  { %10270 = vmatmul.mubr.msk.f32.gmra.mrb[62].mxu0 %vm107_vm1, %v91_v1 }
  0xdd   :  { %v10178_v3 = vpop.f32.mrb[0].mxu0 }
  0xde   :  { %v370_v4 = vpop.f32.mrb[1].mxu0  ;;  %v12420_v5 = vadd.f32 %v10178_v3, %v12417_v2 }
  0xdf   :  { %v12423_v6 = vadd.f32 %v12417_v2, %v370_v4 }
  0xe1   :  { %v10181_v7 = vpop.f32.mrb[2].mxu0  ;;  %v689_v9 = vadd.f32 %v12420_v5, %v12423_v6 }
  0xe2   :  { %v380_v8 = vpop.f32.mrb[3].mxu0  ;;  %v12431_v11 = vadd.f32 %v10181_v7, %v12417_v2 }
  0xe3   :  { %v12428_v10 = vadd.f32 %v12417_v2, %v380_v8 }
  0xe5   :  { %v690_v12 = vadd.f32 %v689_v9, %v12428_v10  ;;  %v10184_v13 = vpop.f32.mrb[4].mxu0 }
  0xe6   :  { %v390_v14 = vpop.f32.mrb[5].mxu0  ;;  %v12439_v17 = vadd.f32 %v10184_v13, %v12417_v2 }
  0xe7   :  { %v691_v15 = vadd.f32 %v690_v12, %v12431_v11  ;;  %v12436_v16 = vadd.f32 %v12417_v2, %v390_v14 }
  0xe9   :  { %v692_v18 = vadd.f32 %v691_v15, %v12436_v16  ;;  %v10187_v19 = vpop.f32.mrb[6].mxu0 }
  0xea   :  { %v400_v20 = vpop.f32.mrb[7].mxu0  ;;  %v12447_v23 = vadd.f32 %v10187_v19, %v12417_v2 }
  0xeb   :  { %v12443_v21 = vadd.f32 %v12417_v2, %v400_v20  ;;  %v693_v22 = vadd.f32 %v692_v18, %v12439_v17 }
  0xed   :  { %v694_v24 = vadd.f32 %v693_v22, %v12443_v21  ;;  %v10190_v25 = vpop.f32.mrb[8].mxu0 }
  0xee   :  { %v410_v26 = vpop.f32.mrb[9].mxu0  ;;  %v12455_v29 = vadd.f32 %v10190_v25, %v12417_v2 }
  0xef   :  { %v12451_v27 = vadd.f32 %v12417_v2, %v410_v26  ;;  %v695_v28 = vadd.f32 %v694_v24, %v12447_v23 }
  0xf1   :  { %v696_v30 = vadd.f32 %v695_v28, %v12451_v27  ;;  %v10193_v31 = vpop.f32.mrb[10].mxu0 }
  0xf2   :  { %v420_v32 = vpop.f32.mrb[11].mxu0  ;;  %v12463_v35 = vadd.f32 %v10193_v31, %v12417_v2 }
  0xf3   :  { %v12459_v33 = vadd.f32 %v12417_v2, %v420_v32  ;;  %v697_v34 = vadd.f32 %v696_v30, %v12455_v29 }
  0xf5   :  { %v698_v36 = vadd.f32 %v697_v34, %v12459_v33  ;;  %v10196_v37 = vpop.f32.mrb[12].mxu0 }
  0xf6   :  { %v430_v38 = vpop.f32.mrb[13].mxu0  ;;  %v12471_v41 = vadd.f32 %v10196_v37, %v12417_v2 }
  0xf7   :  { %v12467_v39 = vadd.f32 %v12417_v2, %v430_v38  ;;  %v699_v40 = vadd.f32 %v698_v36, %v12463_v35 }
  0xf9   :  { %v700_v42 = vadd.f32 %v699_v40, %v12467_v39  ;;  %v10199_v43 = vpop.f32.mrb[14].mxu0 }
  0xfa   :  { %v440_v44 = vpop.f32.mrb[15].mxu0  ;;  %v12479_v47 = vadd.f32 %v10199_v43, %v12417_v2 }
  0xfb   :  { %v12475_v45 = vadd.f32 %v12417_v2, %v440_v44  ;;  %v701_v46 = vadd.f32 %v700_v42, %v12471_v41 }
  0xfd   :  { %v702_v48 = vadd.f32 %v701_v46, %v12475_v45  ;;  %v10202_v49 = vpop.f32.mrb[16].mxu0 }
  0xfe   :  { %v450_v50 = vpop.f32.mrb[17].mxu0  ;;  %v12487_v53 = vadd.f32 %v10202_v49, %v12417_v2 }
  0xff   :  { %v12483_v51 = vadd.f32 %v12417_v2, %v450_v50  ;;  %v703_v52 = vadd.f32 %v702_v48, %v12479_v47 }
 0x101   :  { %v704_v54 = vadd.f32 %v703_v52, %v12483_v51  ;;  %v10205_v55 = vpop.f32.mrb[18].mxu0 }
 0x102   :  { %v460_v56 = vpop.f32.mrb[19].mxu0  ;;  %v12495_v59 = vadd.f32 %v10205_v55, %v12417_v2 }
 0x103   :  { %v12491_v57 = vadd.f32 %v12417_v2, %v460_v56  ;;  %v705_v58 = vadd.f32 %v704_v54, %v12487_v53 }
 0x105   :  { %v706_v60 = vadd.f32 %v705_v58, %v12491_v57  ;;  %v10208_v61 = vpop.f32.mrb[20].mxu0 }
 0x106   :  { %v470_v62 = vpop.f32.mrb[21].mxu0  ;;  %v12503_v1 = vadd.f32 %v10208_v61, %v12417_v2 }
 0x107   :  { %v12499_v63 = vadd.f32 %v12417_v2, %v470_v62  ;;  %v707_v0 = vadd.f32 %v706_v60, %v12495_v59 }
 0x109   :  { %v708_v3 = vadd.f32 %v707_v0, %v12499_v63  ;;  %v10211_v4 = vpop.f32.mrb[22].mxu0 }
 0x10a   :  { %v480_v7 = vpop.f32.mrb[23].mxu0  ;;  %v12511_v12 = vadd.f32 %v10211_v4, %v12417_v2 }
 0x10b   :  { %v12507_v8 = vadd.f32 %v12417_v2, %v480_v7  ;;  %v709_v9 = vadd.f32 %v708_v3, %v12503_v1 }
 0x10d   :  { %v710_v13 = vadd.f32 %v709_v9, %v12507_v8  ;;  %v10214_v14 = vpop.f32.mrb[24].mxu0 }
 0x10e   :  { %v490_v15 = vpop.f32.mrb[25].mxu0  ;;  %v12519_v20 = vadd.f32 %v10214_v14, %v12417_v2 }
 0x10f   :  { %v12515_v18 = vadd.f32 %v12417_v2, %v490_v15  ;;  %v711_v19 = vadd.f32 %v710_v13, %v12511_v12 }
 0x111   :  { %v712_v22 = vadd.f32 %v711_v19, %v12515_v18  ;;  %v10217_v24 = vpop.f32.mrb[26].mxu0 }
 0x112   :  { %v500_v25 = vpop.f32.mrb[27].mxu0  ;;  %v12527_v30 = vadd.f32 %v10217_v24, %v12417_v2 }
 0x113   :  { %v12523_v26 = vadd.f32 %v12417_v2, %v500_v25  ;;  %v713_v28 = vadd.f32 %v712_v22, %v12519_v20 }
 0x115   :  { %v714_v31 = vadd.f32 %v713_v28, %v12523_v26  ;;  %v10220_v32 = vpop.f32.mrb[28].mxu0 }
 0x116   :  { %v510_v34 = vpop.f32.mrb[29].mxu0  ;;  %v12535_v38 = vadd.f32 %v10220_v32, %v12417_v2 }
 0x117   :  { %v12531_v36 = vadd.f32 %v12417_v2, %v510_v34  ;;  %v715_v37 = vadd.f32 %v714_v31, %v12527_v30 }
 0x118   :  { %15952 = vst [vmem:[#allocation6_spill] sm:$0xff] %v12535_v38 }
 0x119   :  { %v716_v40 = vadd.f32 %v715_v37, %v12531_v36  ;;  %v10223_v42 = vpop.f32.mrb[30].mxu0 }
 0x11a   :  { %v520_v43 = vpop.f32.mrb[31].mxu0  ;;  %v12543_v48 = vadd.f32 %v10223_v42, %v12417_v2 }
 0x11b   :  { %v12539_v44 = vadd.f32 %v12417_v2, %v520_v43  ;;  %v717_v46 = vadd.f32 %v716_v40, %v12535_v38 }
 0x11c   :  { %15954 = vst [vmem:[#allocation8_spill] sm:$0xff] %v12543_v48 }
 0x11d   :  { %15953 = vst [vmem:[#allocation7_spill] sm:$0xff] %v12539_v44  ;;  %v718_v49 = vadd.f32 %v717_v46, %v12539_v44  ;;  %v10226_v50 = vpop.f32.mrb[32].mxu0 }
 0x11e   :  { %v530_v52 = vpop.f32.mrb[33].mxu0  ;;  %v12551_v56 = vadd.f32 %v10226_v50, %v12417_v2 }
 0x11f   :  { %v12547_v54 = vadd.f32 %v12417_v2, %v530_v52  ;;  %v719_v55 = vadd.f32 %v718_v49, %v12543_v48 }
 0x120   :  { %15956 = vst [vmem:[#allocation10_spill] sm:$0xff] %v12551_v56 }
 0x121   :  { %15955 = vst [vmem:[#allocation9_spill] sm:$0xff] %v12547_v54  ;;  %v720_v58 = vadd.f32 %v719_v55, %v12547_v54  ;;  %v10229_v60 = vpop.f32.mrb[34].mxu0 }
 0x122   :  { %v540_v61 = vpop.f32.mrb[35].mxu0  ;;  %v12559_v3 = vadd.f32 %v10229_v60, %v12417_v2 }
 0x123   :  { %v12555_v62 = vadd.f32 %v12417_v2, %v540_v61  ;;  %v721_v0 = vadd.f32 %v720_v58, %v12551_v56 }
 0x124   :  { %15958 = vst [vmem:[#allocation12_spill] sm:$0xff] %v12559_v3 }
 0x125   :  { %15957 = vst [vmem:[#allocation11_spill] sm:$0xff] %v12555_v62  ;;  %v722_v4 = vadd.f32 %v721_v0, %v12555_v62  ;;  %v10232_v7 = vpop.f32.mrb[36].mxu0 }
 0x126   :  { %v550_v9 = vpop.f32.mrb[37].mxu0  ;;  %v12567_v15 = vadd.f32 %v10232_v7, %v12417_v2 }
 0x127   :  { %v12563_v13 = vadd.f32 %v12417_v2, %v550_v9  ;;  %v723_v14 = vadd.f32 %v722_v4, %v12559_v3 }
 0x128   :  { %15960 = vst [vmem:[#allocation14_spill] sm:$0xff] %v12567_v15 }
 0x129   :  { %15959 = vst [vmem:[#allocation13_spill] sm:$0xff] %v12563_v13  ;;  %v724_v19 = vadd.f32 %v723_v14, %v12563_v13  ;;  %v10235_v22 = vpop.f32.mrb[38].mxu0 }
 0x12a   :  { %v560_v24 = vpop.f32.mrb[39].mxu0  ;;  %v12575_v31 = vadd.f32 %v10235_v22, %v12417_v2 }
 0x12b   :  { %v12571_v25 = vadd.f32 %v12417_v2, %v560_v24  ;;  %v725_v28 = vadd.f32 %v724_v19, %v12567_v15 }
 0x12c   :  { %15962 = vst [vmem:[#allocation16_spill] sm:$0xff] %v12575_v31 }
 0x12d   :  { %15961 = vst [vmem:[#allocation15_spill] sm:$0xff] %v12571_v25  ;;  %v726_v32 = vadd.f32 %v725_v28, %v12571_v25  ;;  %v10238_v34 = vpop.f32.mrb[40].mxu0 }
 0x12e   :  { %v570_v37 = vpop.f32.mrb[41].mxu0  ;;  %v12583_v43 = vadd.f32 %v10238_v34, %v12417_v2 }
 0x12f   :  { %v12579_v40 = vadd.f32 %v12417_v2, %v570_v37  ;;  %v727_v42 = vadd.f32 %v726_v32, %v12575_v31 }
 0x130   :  { %15964 = vst [vmem:[#allocation18_spill] sm:$0xff] %v12583_v43 }
 0x131   :  { %15963 = vst [vmem:[#allocation17_spill] sm:$0xff] %v12579_v40  ;;  %v728_v46 = vadd.f32 %v727_v42, %v12579_v40  ;;  %v10241_v49 = vpop.f32.mrb[42].mxu0 }
 0x132   :  { %v580_v50 = vpop.f32.mrb[43].mxu0  ;;  %v12591_v58 = vadd.f32 %v10241_v49, %v12417_v2 }
 0x133   :  { %v12587_v52 = vadd.f32 %v12417_v2, %v580_v50  ;;  %v729_v55 = vadd.f32 %v728_v46, %v12583_v43 }
 0x134   :  { %15966 = vst [vmem:[#allocation20_spill] sm:$0xff] %v12591_v58 }
 0x135   :  { %15965 = vst [vmem:[#allocation19_spill] sm:$0xff] %v12587_v52  ;;  %v730_v60 = vadd.f32 %v729_v55, %v12587_v52  ;;  %v10244_v61 = vpop.f32.mrb[44].mxu0 }
 0x136   :  { %v590_v0 = vpop.f32.mrb[45].mxu0  ;;  %v12599_v9 = vadd.f32 %v10244_v61, %v12417_v2 }
 0x137   :  { %v12595_v4 = vadd.f32 %v12417_v2, %v590_v0  ;;  %v731_v7 = vadd.f32 %v730_v60, %v12591_v58 }
 0x139   :  { %15967 = vst [vmem:[#allocation21_spill] sm:$0xff] %v12595_v4  ;;  %v732_v14 = vadd.f32 %v731_v7, %v12595_v4  ;;  %v10247_v19 = vpop.f32.mrb[46].mxu0 }
 0x13a   :  { %v600_v22 = vpop.f32.mrb[47].mxu0  ;;  %v606_v32 = vadd.f32 %v10247_v19, %v12417_v2 }
 0x13b   :  { %v601_v24 = vadd.f32 %v12417_v2, %v600_v22  ;;  %v733_v28 = vadd.f32 %v732_v14, %v12599_v9 }
 0x13d   :  { %v734_v34 = vadd.f32 %v733_v28, %v601_v24  ;;  %v10250_v37 = vpop.f32.mrb[48].mxu0 }
 0x13e   :  { %v610_v42 = vpop.f32.mrb[49].mxu0  ;;  %v616_v50 = vadd.f32 %v10250_v37, %v12417_v2 }
 0x13f   :  { %v611_v46 = vadd.f32 %v12417_v2, %v610_v42  ;;  %v735_v49 = vadd.f32 %v734_v34, %v606_v32 }
 0x141   :  { %v736_v55 = vadd.f32 %v735_v49, %v611_v46  ;;  %v10253_v60 = vpop.f32.mrb[50].mxu0 }
 0x142   :  { %v620_v61 = vpop.f32.mrb[51].mxu0  ;;  %v626_v22 = vadd.f32 %v10253_v60, %v12417_v2 }
 0x143   :  { %v621_v0 = vadd.f32 %v12417_v2, %v620_v61  ;;  %v737_v7 = vadd.f32 %v736_v55, %v616_v50 }
 0x145   :  { %v738_v4 = vadd.f32 %v737_v7, %v621_v0  ;;  %v10256_v14 = vpop.f32.mrb[52].mxu0 }
 0x146   :  { %v630_v58 = vpop.f32.mrb[53].mxu0  ;;  %v636_v52 = vadd.f32 %v10256_v14, %v12417_v2 }
 0x147   :  { %v631_v19 = vadd.f32 %v12417_v2, %v630_v58  ;;  %v739_v28 = vadd.f32 %v738_v4, %v626_v22 }
 0x149   :  { %v740_v42 = vadd.f32 %v739_v28, %v631_v19  ;;  %v10259_v34 = vpop.f32.mrb[54].mxu0 }
 0x14a   :  { %v640_v43 = vpop.f32.mrb[55].mxu0  ;;  %v646_v40 = vadd.f32 %v10259_v34, %v12417_v2 }
 0x14b   :  { %v641_v37 = vadd.f32 %v12417_v2, %v640_v43  ;;  %v741_v49 = vadd.f32 %v740_v42, %v636_v52 }
 0x14d   :  { %v742_v61 = vadd.f32 %v741_v49, %v641_v37  ;;  %v10262_v55 = vpop.f32.mrb[56].mxu0 }
 0x14e   :  { %v650_v31 = vpop.f32.mrb[57].mxu0  ;;  %v656_v25 = vadd.f32 %v10262_v55, %v12417_v2 }
 0x14f   :  { %v651_v60 = vadd.f32 %v12417_v2, %v650_v31  ;;  %v743_v7 = vadd.f32 %v742_v61, %v646_v40 }
 0x151   :  { %v744_v58 = vadd.f32 %v743_v7, %v651_v60  ;;  %v10265_v4 = vpop.f32.mrb[58].mxu0 }
 0x152   :  { %v660_v15 = vpop.f32.mrb[59].mxu0  ;;  %v666_v13 = vadd.f32 %v10265_v4, %v12417_v2 }
 0x153   :  { %v661_v14 = vadd.f32 %v12417_v2, %v660_v15  ;;  %v745_v28 = vadd.f32 %v744_v58, %v656_v25  ;;  %v12083_v15 = vld [vmem:[%s15905_s2] ss:$0 sm:$0xff] }
 0x155   :  { %v746_v43 = vadd.f32 %v745_v28, %v661_v14  ;;  %v10268_v42 = vpop.f32.mrb[60].mxu0 }
 0x156   :  { %v670_v3 = vpop.f32.mrb[61].mxu0  ;;  %v676_v62 = vadd.f32 %v10268_v42, %v12417_v2 }
 0x157   :  { %v671_v34 = vadd.f32 %v12417_v2, %v670_v3  ;;  %v747_v49 = vadd.f32 %v746_v43, %v666_v13 }
 0x159   :  { %v748_v31 = vadd.f32 %v747_v49, %v671_v34  ;;  %v10271_v61 = vpop.f32.mrb[62].mxu0 }
 0x15a   :  { %v680_v56 = vpop.f32.mrb[63].mxu0  ;;  %v686_v58 = vadd.f32 %v12083_v15, %v10271_v61 }
 0x15b   :  { %v681_v55 = vadd.f32 %v12417_v2, %v680_v56  ;;  %v749_v7 = vadd.f32 %v748_v31, %v676_v62 }
 0x15d   :  { %v750_v4 = vadd.f32 %v749_v7, %v681_v55 }
 0x15f   :  { %v751_v28 = vadd.f32 %v750_v4, %v686_v58 }
 0x161   :  { %v752_v54 = vrot.slane %v751_v28, 4 }
 0x163   :  { %v753_v48 = vadd.f32 %v752_v54, %v751_v28 }
 0x165   :  { %v754_v44 = vrot.slane %v753_v48, 2 }
 0x167   :  { %v755_v3 = vadd.f32 %v754_v44, %v753_v48 }
 0x169   :  { %v756_v43 = vrot.slane %v755_v3, 1 }
 0x16b   :  { %v757_v38 = vadd.f32 %v756_v43, %v755_v3 }
 0x16d   :  { %v12623_v42 = vmul.f32 0.001953125, %v757_v38 }
 0x16f   :  { %v12627_v49 = vsub.f32 %v12599_v9, %v12623_v42  ;;  %v12630_v2 = vsub.f32 %v601_v24, %v12623_v42  ;;  %v12633_v56 = vsub.f32 %v606_v32, %v12623_v42  ;;  %v12636_v31 = vsub.f32 %v611_v46, %v12623_v42 }
 0x170   :  { %v12639_v54 = vsub.f32 %v616_v50, %v12623_v42  ;;  %v12642_v44 = vsub.f32 %v621_v0, %v12623_v42  ;;  %v12645_v38 = vsub.f32 %v626_v22, %v12623_v42  ;;  %v12648_v48 = vsub.f32 %v631_v19, %v12623_v42 }
 0x171   :  { %v12651_v9 = vsub.f32 %v636_v52, %v12623_v42  ;;  %v12654_v24 = vsub.f32 %v641_v37, %v12623_v42  ;;  %v12657_v32 = vsub.f32 %v646_v40, %v12623_v42  ;;  %v12660_v46 = vsub.f32 %v651_v60, %v12623_v42 }
 0x172   :  { %v12663_v50 = vsub.f32 %v656_v25, %v12623_v42  ;;  %v12666_v0 = vsub.f32 %v661_v14, %v12623_v42  ;;  %v12669_v22 = vsub.f32 %v666_v13, %v12623_v42  ;;  %v12672_v52 = vsub.f32 %v671_v34, %v12623_v42 }
 0x173   :  { %v12675_v19 = vsub.f32 %v676_v62, %v12623_v42  ;;  %v12678_v40 = vsub.f32 %v681_v55, %v12623_v42  ;;  %v12681_v37 = vsub.f32 %v686_v58, %v12623_v42 }
 0x174   :  { %15968 = vst [vmem:[#allocation22_spill] sm:$0xff] %v12663_v50  ;;  %15969 = vst [vmem:[#allocation23_spill] sm:$0xff] %v12666_v0 }
 0x175   :  { %15970 = vst [vmem:[#allocation24_spill] sm:$0xff] %v12669_v22  ;;  %15971 = vst [vmem:[#allocation25_spill] sm:$0xff] %v12672_v52 }
 0x176   :  { %15972 = vst [vmem:[#allocation26_spill] sm:$0xff] %v12675_v19  ;;  %15973 = vst [vmem:[#allocation27_spill] sm:$0xff] %v12681_v37 }
 0x177   :  { %12 = vsyncpa [#allocation4], 0  ;;  %v12685_v25 = vsub.f32 %v12423_v6, %v12623_v42  ;;  %v12689_v13 = vsub.f32 %v12420_v5, %v12623_v42  ;;  %v12693_v60 = vsub.f32 %v12428_v10, %v12623_v42  ;;  %v12701_v34 = vsub.f32 %v12431_v11, %v12623_v42  ;;  %s12111_s11 = smov [#allocation3]  }
 0x178   :  { %v12705_v6 = vsub.f32 %v12436_v16, %v12623_v42  ;;  %v12711_v10 = vsub.f32 %v12439_v17, %v12623_v42  ;;  %v12717_v11 = vsub.f32 %v12443_v21, %v12623_v42  ;;  %v12723_v58 = vsub.f32 %v12447_v23, %v12623_v42  ;;  %s8163_s12 = sshll.u32 %s12111_s11, 4  ;;  %s8164_s12 = int_to_ptr.vmem [resolvable:$true] %s8163_s12 }
 0x179   :  { %15974 = vst [vmem:[#allocation28_spill] sm:$0xff] %v12689_v13  ;;  %v824_v62 = vmul.f32 %v12685_v25, %v12685_v25  ;;  %v825_v14 = vmul.f32 %v12689_v13, %v12689_v13  ;;  %v826_v5 = vmul.f32 %v12693_v60, %v12693_v60  ;;  %v827_v55 = vmul.f32 %v12701_v34, %v12701_v34  ;;  %s12084_s13 = scalar_lea.vmem %s8164_s12, 128  ;;  %p12089_p1 = scmp.lt.s32.totalorder %s8164_s12, %s8164_s12 }
 0x17a   :  { %15975 = vst [vmem:[#allocation29_spill] sm:$0xff] %v12717_v11  ;;  %v828_v16 = vmul.f32 %v12705_v6, %v12705_v6  ;;  %v829_v17 = vmul.f32 %v12711_v10, %v12711_v10  ;;  %v12729_v28 = vsub.f32 %v12451_v27, %v12623_v42  ;;  %v830_v21 = vmul.f32 %v12717_v11, %v12717_v11  ;;  %p12085_p0 = scmp.ne.s32.totalorder %s8164_s12, %s12084_s13  ;;  %p12090_p2 = scmp.lt.s32.totalorder %s12084_s13, %s12084_s13 }
 0x17b   :  { %v888_v61 = vadd.f32 %v825_v14, %v824_v62  ;;  %v12735_v43 = vsub.f32 %v12455_v29, %v12623_v42  ;;  %v831_v23 = vmul.f32 %v12723_v58, %v12723_v58  ;;  %v12741_v14 = vsub.f32 %v12459_v33, %v12623_v42 }
 0x17c   :  { %v832_v27 = vmul.f32 %v12729_v28, %v12729_v28  ;;  %vm12110_vm4 = vmmov 0   ;;  %p12091_p3 = por %p12090_p2, %p12089_p1 }
 0x17d   :  { %v889_v7 = vadd.f32 %v888_v61, %v826_v5  ;;  %v12747_v61 = vsub.f32 %v12463_v35, %v12623_v42  ;;  %v833_v29 = vmul.f32 %v12735_v43, %v12735_v43  ;;  %v834_v33 = vmul.f32 %v12741_v14, %v12741_v14 }
 0x17e   :  { %p12092_p4 = pnand %p12091_p3, %p12085_p0 }
 0x17f   :  { %v890_v15 = vadd.f32 %v889_v7, %v827_v55  ;;  %v12753_v7 = vsub.f32 %v12467_v39, %v12623_v42  ;;  %v835_v35 = vmul.f32 %v12747_v61, %v12747_v61 }
 0x181   :  { %v891_v4 = vadd.f32 %v890_v15, %v828_v16  ;;  %v12759_v15 = vsub.f32 %v12471_v41, %v12623_v42  ;;  %v836_v39 = vmul.f32 %v12753_v7, %v12753_v7 }
 0x183   :  { %v892_v3 = vadd.f32 %v891_v4, %v829_v17  ;;  %v12765_v4 = vsub.f32 %v12475_v45, %v12623_v42  ;;  %v837_v41 = vmul.f32 %v12759_v15, %v12759_v15 }
 0x185   :  { %v893_v62 = vadd.f32 %v892_v3, %v830_v21  ;;  %v12771_v3 = vsub.f32 %v12479_v47, %v12623_v42  ;;  %v838_v45 = vmul.f32 %v12765_v4, %v12765_v4 }
 0x187   :  { %v894_v5 = vadd.f32 %v893_v62, %v831_v23  ;;  %v12777_v62 = vsub.f32 %v12483_v51, %v12623_v42  ;;  %v839_v47 = vmul.f32 %v12771_v3, %v12771_v3 }
 0x189   :  { %v895_v55 = vadd.f32 %v894_v5, %v832_v27  ;;  %v12783_v5 = vsub.f32 %v12487_v53, %v12623_v42  ;;  %v840_v51 = vmul.f32 %v12777_v62, %v12777_v62 }
 0x18b   :  { %v896_v16 = vadd.f32 %v895_v55, %v833_v29  ;;  %v12789_v55 = vsub.f32 %v12491_v57, %v12623_v42  ;;  %v841_v53 = vmul.f32 %v12783_v5, %v12783_v5  ;;  %v11570_v57 = vld [vmem:[%s15908_s5 + $0x100] sm:$0xff]  }
 0x18d   :  { %v897_v17 = vadd.f32 %v896_v16, %v834_v33  ;;  %v12795_v16 = vsub.f32 %v12495_v59, %v12623_v42  ;;  %v12809_v59 = vsub.f32 %v12499_v63, %v12623_v42  ;;  %v11571_v63 = vld [vmem:[%s15908_s5 + $0x8] sm:$0xff]  }
 0x18f   :  { %v898_v21 = vadd.f32 %v897_v17, %v835_v35  ;;  %v11569_v17 = vld [vmem:[%s15908_s5] sm:$0xff]  }
 0x191   :  { %v899_v23 = vadd.f32 %v898_v21, %v836_v39  ;;  %v15932_v39 = vmov 0.0   ;;  %v842_v21 = vmul.f32 %v12789_v55, %v12789_v55 }
 0x192   :  { %10272 = vmatprep.subr.bf16.mxu1 %v15932_v39  ;;  %10352 = vmatprep.subr.bf16.mxu0 %v15932_v39 }
 0x193   :  { %v900_v27 = vadd.f32 %v899_v23, %v837_v41  ;;  %10273 = vmatpush3.bf16.msra.mxu1 %v11569_v17  ;;  %10353 = vmatpush3.bf16.msra.mxu0 %v11570_v57  ;;  %v12817_v23 = vsub.f32 %v12503_v1, %v12623_v42  ;;  %v844_v1 = vmul.f32 %v12809_v59, %v12809_v59  ;;  %v11574_v17 = vld [vmem:[%s15908_s5 + $0x110] sm:$0xff]  }
 0x194   :  { %10274 = vmatprep.subr.bf16.mxu1 %v15932_v39  ;;  %10354 = vmatprep.subr.bf16.mxu0 %v15932_v39  ;;  %v12849_v57 = vsub.f32 %v12515_v18, %v12623_v42  ;;  %v11575_v18 = vld [vmem:[%s15908_s5 + $0x18] sm:$0xff]  }
 0x195   :  { %v901_v29 = vadd.f32 %v900_v27, %v838_v45  ;;  %v843_v45 = vmul.f32 %v12795_v16, %v12795_v16  ;;  %10288 = vmatprep.mubr.msk.bf16.mxu1 %vm12110_vm4, %v15932_v39  ;;  %10368 = vmatprep.mubr.msk.bf16.mxu0 %vm12110_vm4, %v15932_v39 }
 0x197   :  { %v902_v33 = vadd.f32 %v901_v29, %v839_v47  ;;  %v11572_v47 = vld [vmem:[%s15908_s5 + $0x108] sm:$0xff]   ;;  %v12829_v29 = vsub.f32 %v12507_v8, %v12623_v42  ;;  %10275 = vmatpush3.bf16.msra.mxu1 %v11571_v63  ;;  %v11573_v8 = vld [vmem:[%s15908_s5 + $0x10] sm:$0xff]   ;;  %v11576_v63 = vld [vmem:[%s15908_s5 + $0x118] sm:$0xff]  }
 0x198   :  { %10355 = vmatpush3.bf16.msra.mxu0 %v11572_v47  ;;  %10276 = vmatprep.subr.bf16.mxu1 %v15932_v39  ;;  %v12869_v47 = vsub.f32 %v12523_v26, %v12623_v42  ;;  %v11577_v26 = vld [vmem:[%s15908_s5 + $0x20] sm:$0xff]  }
 0x199   :  { %v903_v35 = vadd.f32 %v902_v33, %v840_v51  ;;  %10356 = vmatprep.subr.bf16.mxu0 %v15932_v39  ;;  %v12837_v33 = vsub.f32 %v12511_v12, %v12623_v42  ;;  %v846_v12 = vmul.f32 %v12829_v29, %v12829_v29 }
 0x19b   :  { %v904_v41 = vadd.f32 %v903_v35, %v841_v53  ;;  %v845_v53 = vmul.f32 %v12817_v23, %v12817_v23  ;;  %10277 = vmatpush3.bf16.msra.mxu1 %v11573_v8  ;;  %v11578_v8 = vld [vmem:[%s15908_s5 + $0x120] sm:$0xff]  }
 0x19c   :  { %10357 = vmatpush3.bf16.msra.mxu0 %v11574_v17  ;;  %10278 = vmatprep.subr.bf16.mxu1 %v15932_v39  ;;  %v12889_v17 = vsub.f32 %v12531_v36, %v12623_v42  ;;  %v11579_v36 = vld [vmem:[%s15908_s5 + $0x28] sm:$0xff]  }
 0x19d   :  { %v905_v27 = vadd.f32 %v904_v41, %v842_v21  ;;  %10358 = vmatprep.subr.bf16.mxu0 %v15932_v39  ;;  %v12857_v41 = vsub.f32 %v12519_v20, %v12623_v42  ;;  %v848_v20 = vmul.f32 %v12849_v57, %v12849_v57 }
 0x19f   :  { %v906_v51 = vadd.f32 %v905_v27, %v843_v45  ;;  %v847_v45 = vmul.f32 %v12837_v33, %v12837_v33  ;;  %10279 = vmatpush3.bf16.msra.mxu1 %v11575_v18 }
 0x1a0   :  { %10359 = vmatpush3.bf16.msra.mxu0 %v11576_v63  ;;  %10280 = vmatprep.subr.bf16.mxu1 %v15932_v39  ;;  %v11580_v63 = vld [vmem:[%s15908_s5 + $0x128] sm:$0xff]  }
 0x1a1   :  { %v907_v35 = vadd.f32 %v906_v51, %v844_v1  ;;  %10360 = vmatprep.subr.bf16.mxu0 %v15932_v39  ;;  %v12877_v51 = vsub.f32 %v12527_v30, %v12623_v42  ;;  %v850_v30 = vmul.f32 %v12869_v47, %v12869_v47 }
 0x1a3   :  { %v908_v21 = vadd.f32 %v907_v35, %v845_v53  ;;  %v849_v53 = vmul.f32 %v12857_v41, %v12857_v41  ;;  %10281 = vmatpush3.bf16.msra.mxu1 %v11577_v26  ;;  %v15979_v26 = vld [vmem:[#allocation8_spill] sm:$0xff] }
 0x1a4   :  { %10361 = vmatpush3.bf16.msra.mxu0 %v11578_v8  ;;  %10282 = vmatprep.subr.bf16.mxu1 %v15932_v39  ;;  %v12917_v8 = vsub.f32 %v15979_v26, %v12623_v42 }
 0x1a5   :  { %v909_v27 = vadd.f32 %v908_v21, %v846_v12  ;;  %10362 = vmatprep.subr.bf16.mxu0 %v15932_v39  ;;  %v15976_v21 = vld [vmem:[#allocation6_spill] sm:$0xff] }
 0x1a6   :  { %v855_v26 = vmul.f32 %v12917_v8, %v12917_v8 }
 0x1a7   :  { %v910_v1 = vadd.f32 %v909_v27, %v847_v45  ;;  %v12897_v45 = vsub.f32 %v15976_v21, %v12623_v42  ;;  %v851_v27 = vmul.f32 %v12877_v51, %v12877_v51  ;;  %10283 = vmatpush3.bf16.msra.mxu1 %v11579_v36  ;;  %v11581_v21 = vld [vmem:[%s15908_s5 + $0x30] sm:$0xff]  }
 0x1a8   :  { %10363 = vmatpush3.bf16.msra.mxu0 %v11580_v63  ;;  %10284 = vmatprep.subr.bf16.mxu1 %v15932_v39 }
 0x1a9   :  { %v911_v35 = vadd.f32 %v910_v1, %v848_v20  ;;  %v15977_v20 = vld [vmem:[#allocation7_spill] sm:$0xff]  ;;  %10364 = vmatprep.subr.bf16.mxu0 %v15932_v39 }
 0x1aa   :  { %v12909_v1 = vsub.f32 %v15977_v20, %v12623_v42  ;;  %15980 = vst [vmem:[#allocation7_spill] sm:$0xff] %v12917_v8 }
 0x1ab   :  { %v912_v12 = vadd.f32 %v911_v35, %v849_v53  ;;  %v852_v53 = vmul.f32 %v12889_v17, %v12889_v17  ;;  %10285 = vmatpush3.bf16.msra.mxu1 %v11581_v21 }
 0x1ac   :  { %15978 = vst [vmem:[#allocation6_spill] sm:$0xff] %v12909_v1  ;;  %v854_v63 = vmul.f32 %v12909_v1, %v12909_v1  ;;  %10286 = vmatprep.subr.bf16.mxu1 %v15932_v39  ;;  %v15995_v1 = vld [vmem:[#allocation16_spill] sm:$0xff] }
 0x1ad   :  { %v913_v18 = vadd.f32 %v912_v12, %v850_v30  ;;  %v853_v30 = vmul.f32 %v12897_v45, %v12897_v45 }
 0x1af   :  { %v914_v35 = vadd.f32 %v913_v18, %v851_v27  ;;  %v11582_v27 = vld [vmem:[%s15908_s5 + $0x130] sm:$0xff]   ;;  %v15981_v18 = vld [vmem:[#allocation9_spill] sm:$0xff] }
 0x1b0   :  { %v12929_v36 = vsub.f32 %v15981_v18, %v12623_v42  ;;  %10365 = vmatpush3.bf16.msra.mxu0 %v11582_v27  ;;  %v11583_v18 = vld [vmem:[%s15908_s5 + $0x38] sm:$0xff]  }
 0x1b1   :  { %v915_v12 = vadd.f32 %v914_v35, %v852_v53  ;;  %10366 = vmatprep.subr.bf16.mxu0 %v15932_v39  ;;  %v15983_v53 = vld [vmem:[#allocation10_spill] sm:$0xff]  ;;  %10287 = vmatpush3.bf16.msra.mxu1 %v11583_v18 }
 0x1b2   :  { %15982 = vst [vmem:[#allocation8_spill] sm:$0xff] %v12929_v36  ;;  %v12937_v35 = vsub.f32 %v15983_v53, %v12623_v42  ;;  %v856_v27 = vmul.f32 %v12929_v36, %v12929_v36  ;;  %10292 = vmatprep.subr.bf16.mxu1 %v15932_v39 }
 0x1b3   :  { %v916_v20 = vadd.f32 %v915_v12, %v853_v30  ;;  %v11584_v30 = vld [vmem:[%s15908_s5 + $0x138] sm:$0xff]   ;;  %v15985_v12 = vld [vmem:[#allocation11_spill] sm:$0xff] }
 0x1b4   :  { %15984 = vst [vmem:[#allocation9_spill] sm:$0xff] %v12937_v35  ;;  %v12949_v21 = vsub.f32 %v15985_v12, %v12623_v42  ;;  %10367 = vmatpush3.bf16.msra.mxu0 %v11584_v30  ;;  %v857_v13 = vmul.f32 %v12937_v35, %v12937_v35  ;;  %v15991_v12 = vld [vmem:[#allocation14_spill] sm:$0xff]  ;;  %v15993_v35 = vld [vmem:[#allocation15_spill] sm:$0xff] }
 0x1b5   :  { %v917_v11 = vadd.f32 %v916_v20, %v854_v63  ;;  %10392 = vmatprep.subr.bf16.mxu0 %v15932_v39  ;;  %v15987_v63 = vld [vmem:[#allocation12_spill] sm:$0xff]  ;;  %v12979_v36 = vsub.f32 %v15993_v35, %v12623_v42 }
 0x1b6   :  { %15986 = vst [vmem:[#allocation10_spill] sm:$0xff] %v12949_v21  ;;  %v12957_v20 = vsub.f32 %v15987_v63, %v12623_v42  ;;  %v858_v18 = vmul.f32 %v12949_v21, %v12949_v21  ;;  %v12973_v63 = vsub.f32 %v15991_v12, %v12623_v42  ;;  %v12985_v21 = vsub.f32 %v15995_v1, %v12623_v42  ;;  %v15997_v12 = vld [vmem:[#allocation17_spill] sm:$0xff] }
 0x1b7   :  { %v918_v53 = vadd.f32 %v917_v11, %v855_v26  ;;  %v15989_v11 = vld [vmem:[#allocation13_spill] sm:$0xff]  ;;  %15994 = vst [vmem:[#allocation14_spill] sm:$0xff] %v12979_v36  ;;  %v862_v35 = vmul.f32 %v12979_v36, %v12979_v36 }
 0x1b8   :  { %15988 = vst [vmem:[#allocation11_spill] sm:$0xff] %v12957_v20  ;;  %v12967_v26 = vsub.f32 %v15989_v11, %v12623_v42  ;;  %15992 = vst [vmem:[#allocation13_spill] sm:$0xff] %v12973_v63  ;;  %v863_v1 = vmul.f32 %v12985_v21, %v12985_v21 }
 0x1b9   :  { %v919_v8 = vadd.f32 %v918_v53, %v856_v27  ;;  %v859_v27 = vmul.f32 %v12957_v20, %v12957_v20  ;;  %15996 = vst [vmem:[#allocation15_spill] sm:$0xff] %v12985_v21  ;;  %v12991_v20 = vsub.f32 %v15997_v12, %v12623_v42  ;;  %v16001_v12 = vld [vmem:[#allocation20_spill] sm:$0xff] }
 0x1ba   :  { %15990 = vst [vmem:[#allocation12_spill] sm:$0xff] %v12967_v26  ;;  %v860_v11 = vmul.f32 %v12967_v26, %v12967_v26  ;;  %v13009_v36 = vsub.f32 %v16001_v12, %v12623_v42 }
 0x1bb   :  { %v920_v30 = vadd.f32 %v919_v8, %v857_v13  ;;  %v861_v13 = vmul.f32 %v12973_v63, %v12973_v63 }
 0x1bd   :  { %v921_v53 = vadd.f32 %v920_v30, %v858_v18  ;;  %v15998_v30 = vld [vmem:[#allocation18_spill] sm:$0xff] }
 0x1be   :  { %v12997_v26 = vsub.f32 %v15998_v30, %v12623_v42  ;;  %v16002_v30 = vld [vmem:[#allocation21_spill] sm:$0xff] }
 0x1bf   :  { %v922_v39 = vadd.f32 %v921_v53, %v859_v27  ;;  %v16000_v53 = vld [vmem:[#allocation19_spill] sm:$0xff]  ;;  %v13015_v21 = vsub.f32 %v16002_v30, %v12623_v42  ;;  %v871_v30 = vmul.f32 %v12633_v56, %v12633_v56 }
 0x1c0   :  { %15999 = vst [vmem:[#allocation16_spill] sm:$0xff] %v12997_v26  ;;  %v13003_v63 = vsub.f32 %v16000_v53, %v12623_v42  ;;  %v867_v53 = vmul.f32 %v13009_v36, %v13009_v36  ;;  %v870_v42 = vmul.f32 %v12630_v2, %v12630_v2 }
 0x1c1   :  { %v923_v8 = vadd.f32 %v922_v39, %v860_v11  ;;  %v864_v39 = vmul.f32 %v12991_v20, %v12991_v20 }
 0x1c3   :  { %v924_v18 = vadd.f32 %v923_v8, %v861_v13  ;;  %v865_v13 = vmul.f32 %v12997_v26, %v12997_v26  ;;  %v869_v26 = vmul.f32 %v12627_v49, %v12627_v49 }
 0x1c5   :  { %v925_v27 = vadd.f32 %v924_v18, %v862_v35  ;;  %v866_v35 = vmul.f32 %v13003_v63, %v13003_v63 }
 0x1c7   :  { %v926_v11 = vadd.f32 %v925_v27, %v863_v1  ;;  %v868_v27 = vmul.f32 %v13015_v21, %v13015_v21 }
 0x1c9   :  { %v927_v8 = vadd.f32 %v926_v11, %v864_v39 }
 0x1cb   :  { %v928_v18 = vadd.f32 %v927_v8, %v865_v13  ;;  %v872_v8 = vmul.f32 %v12636_v31, %v12636_v31 }
 0x1cd   :  { %v929_v1 = vadd.f32 %v928_v18, %v866_v35  ;;  %v873_v18 = vmul.f32 %v12639_v54, %v12639_v54 }
 0x1cf   :  { %v930_v12 = vadd.f32 %v929_v1, %v867_v53  ;;  %v874_v1 = vmul.f32 %v12642_v44, %v12642_v44 }
 0x1d1   :  { %v931_v39 = vadd.f32 %v930_v12, %v868_v27  ;;  %v875_v12 = vmul.f32 %v12645_v38, %v12645_v38 }
 0x1d3   :  { %v932_v11 = vadd.f32 %v931_v39, %v869_v26  ;;  %v876_v39 = vmul.f32 %v12648_v48, %v12648_v48 }
 0x1d5   :  { %v933_v13 = vadd.f32 %v932_v11, %v870_v42  ;;  %v877_v11 = vmul.f32 %v12651_v9, %v12651_v9 }
 0x1d7   :  { %v934_v35 = vadd.f32 %v933_v13, %v871_v30  ;;  %v878_v13 = vmul.f32 %v12654_v24, %v12654_v24 }
 0x1d9   :  { %v935_v53 = vadd.f32 %v934_v35, %v872_v8  ;;  %v879_v35 = vmul.f32 %v12657_v32, %v12657_v32 }
 0x1db   :  { %v936_v27 = vadd.f32 %v935_v53, %v873_v18  ;;  %v880_v53 = vmul.f32 %v12660_v46, %v12660_v46 }
 0x1dd   :  { %v937_v26 = vadd.f32 %v936_v27, %v874_v1  ;;  %v881_v27 = vmul.f32 %v12663_v50, %v12663_v50 }
 0x1df   :  { %v938_v42 = vadd.f32 %v937_v26, %v875_v12  ;;  %v882_v26 = vmul.f32 %v12666_v0, %v12666_v0 }
 0x1e1   :  { %v939_v30 = vadd.f32 %v938_v42, %v876_v39  ;;  %v883_v42 = vmul.f32 %v12669_v22, %v12669_v22 }
 0x1e3   :  { %v940_v8 = vadd.f32 %v939_v30, %v877_v11  ;;  %v884_v30 = vmul.f32 %v12672_v52, %v12672_v52 }
 0x1e5   :  { %v941_v18 = vadd.f32 %v940_v8, %v878_v13  ;;  %v885_v8 = vmul.f32 %v12675_v19, %v12675_v19 }
 0x1e7   :  { %v942_v1 = vadd.f32 %v941_v18, %v879_v35  ;;  %v886_v18 = vmul.f32 %v12678_v40, %v12678_v40 }
 0x1e9   :  { %v943_v12 = vadd.f32 %v942_v1, %v880_v53  ;;  %v887_v1 = vmul.f32 %v12681_v37, %v12681_v37  ;;  %v16019_v37 = vld [vmem:[#allocation23_spill] sm:$0xff] }
 0x1eb   :  { %v944_v39 = vadd.f32 %v943_v12, %v881_v27 }
 0x1ed   :  { %v945_v11 = vadd.f32 %v944_v39, %v882_v26 }
 0x1ef   :  { %v946_v13 = vadd.f32 %v945_v11, %v883_v42 }
 0x1f1   :  { %v947_v35 = vadd.f32 %v946_v13, %v884_v30  ;;  %v13066_v30 = vld [vmem:[%s15906_s3] ss:$0 sm:$0xff] }
 0x1f2   :  { %16004 = vst [vmem:[#allocation18_spill] sm:$0xff] %v13066_v30 }
 0x1f3   :  { %v948_v53 = vadd.f32 %v947_v35, %v885_v8 }
 0x1f5   :  { %v949_v27 = vadd.f32 %v948_v53, %v886_v18  ;;  %v16007_v53 = vld [vmem:[#allocation6_spill] sm:$0xff] }
 0x1f7   :  { %v950_v12 = vadd.f32 %v949_v27, %v887_v1  ;;  %v16008_v1 = vld [vmem:[#allocation7_spill] sm:$0xff]  ;;  %v16009_v27 = vld [vmem:[#allocation8_spill] sm:$0xff] }
 0x1f9   :  { %v951_v0 = vrot.slane %v950_v12, 4 }
 0x1fb   :  { %v952_v22 = vadd.f32 %v951_v0, %v950_v12  ;;  %v16010_v12 = vld [vmem:[#allocation9_spill] sm:$0xff] }
 0x1fd   :  { %v953_v26 = vrot.slane %v952_v22, 2 }
 0x1ff   :  { %v954_v39 = vadd.f32 %v953_v26, %v952_v22  ;;  %v16011_v26 = vld [vmem:[#allocation10_spill] sm:$0xff] }
 0x201   :  { %v955_v50 = vrot.slane %v954_v39, 1 }
 0x203   :  { %v956_v52 = vadd.f32 %v955_v50, %v954_v39  ;;  %v16012_v39 = vld [vmem:[#allocation11_spill] sm:$0xff] }
 0x205   :  { %v957_v42 = vmul.f32 0.001953125, %v956_v52 }
 0x207   :  { %v958_v11 = vadd.f32 1e-05, %v957_v42  ;;  %v16013_v42 = vld [vmem:[#allocation12_spill] sm:$0xff] }
 0x209   :  { %12081 = vrsqrt.f32 %v958_v11  ;;  %v16014_v11 = vld [vmem:[#allocation13_spill] sm:$0xff] }
 0x213   :  { %v13061_v19 = vpop.eup %12081 }
 0x214   :  { %16003 = vst [vmem:[#allocation17_spill] sm:$0xff] %v13061_v19  ;;  %v1022_v13 = vmul.f32 %v13061_v19, %v12678_v40  ;;  %v13072_v0 = vmul.f32 %v13061_v19, %v12685_v25  ;;  %v962_v50 = vmul.f32 %v13061_v19, %v12693_v60  ;;  %v963_v22 = vmul.f32 %v13061_v19, %v12701_v34 }
 0x215   :  { %v964_v8 = vmul.f32 %v13061_v19, %v12705_v6  ;;  %v965_v35 = vmul.f32 %v13061_v19, %v12711_v10  ;;  %v967_v40 = vmul.f32 %v13061_v19, %v12723_v58  ;;  %v968_v25 = vmul.f32 %v13061_v19, %v12729_v28 }
 0x216   :  { %16005 = vst [vmem:[#allocation19_spill] sm:$0xff] %v13072_v0  ;;  %v13079_v52 = vmul.f32 %v13066_v30, %v1022_v13  ;;  %v969_v60 = vmul.f32 %v13061_v19, %v12735_v43  ;;  %v970_v34 = vmul.f32 %v13061_v19, %v12741_v14  ;;  %v971_v18 = vmul.f32 %v13061_v19, %v12747_v61  ;;  %v16017_v0 = vld [vmem:[#allocation16_spill] sm:$0xff]  ;;  %v16018_v30 = vld [vmem:[#allocation22_spill] sm:$0xff] }
 0x217   :  { %v972_v6 = vmul.f32 %v13061_v19, %v12753_v7  ;;  %v973_v10 = vmul.f32 %v13061_v19, %v12759_v15  ;;  %v974_v58 = vmul.f32 %v13061_v19, %v12765_v4  ;;  %v975_v28 = vmul.f32 %v13061_v19, %v12771_v3 }
 0x218   :  { %16006 = vst [vmem:[#allocation20_spill] sm:$0xff] %v13079_v52  ;;  %v976_v43 = vmul.f32 %v13061_v19, %v12777_v62  ;;  %v977_v14 = vmul.f32 %v13061_v19, %v12783_v5  ;;  %v978_v61 = vmul.f32 %v13061_v19, %v12789_v55  ;;  %v979_v7 = vmul.f32 %v13061_v19, %v12795_v16  ;;  %v16016_v52 = vld [vmem:[#allocation15_spill] sm:$0xff] }
 0x219   :  { %v980_v15 = vmul.f32 %v13061_v19, %v12809_v59  ;;  %v981_v4 = vmul.f32 %v13061_v19, %v12817_v23  ;;  %v982_v3 = vmul.f32 %v13061_v19, %v12829_v29  ;;  %v983_v62 = vmul.f32 %v13061_v19, %v12837_v33 }
 0x21a   :  { %v984_v5 = vmul.f32 %v13061_v19, %v12849_v57  ;;  %v985_v55 = vmul.f32 %v13061_v19, %v12857_v41  ;;  %v986_v16 = vmul.f32 %v13061_v19, %v12869_v47  ;;  %v987_v59 = vmul.f32 %v13061_v19, %v12877_v51 }
 0x21b   :  { %v988_v23 = vmul.f32 %v13061_v19, %v12889_v17  ;;  %v989_v29 = vmul.f32 %v13061_v19, %v12897_v45  ;;  %v990_v33 = vmul.f32 %v13061_v19, %v16007_v53  ;;  %v991_v57 = vmul.f32 %v13061_v19, %v16008_v1  ;;  %v16015_v53 = vld [vmem:[#allocation14_spill] sm:$0xff] }
 0x21c   :  { %v992_v41 = vmul.f32 %v13061_v19, %v16009_v27  ;;  %v993_v47 = vmul.f32 %v13061_v19, %v16010_v12  ;;  %v994_v51 = vmul.f32 %v13061_v19, %v16011_v26  ;;  %v995_v17 = vmul.f32 %v13061_v19, %v16012_v39 }
 0x21d   :  { %v996_v45 = vmul.f32 %v13061_v19, %v16013_v42  ;;  %v997_v13 = vmul.f32 %v13061_v19, %v16014_v11  ;;  %v998_v1 = vmul.f32 %v13061_v19, %v16015_v53  ;;  %v999_v27 = vmul.f32 %v13061_v19, %v16016_v52 }
 0x21e   :  { %v1000_v12 = vmul.f32 %v13061_v19, %v12991_v20  ;;  %v1001_v26 = vmul.f32 %v13061_v19, %v16017_v0  ;;  %v1002_v39 = vmul.f32 %v13061_v19, %v13003_v63  ;;  %v1003_v42 = vmul.f32 %v13061_v19, %v13009_v36 }
 0x21f   :  { %v1004_v11 = vmul.f32 %v13061_v19, %v13015_v21  ;;  %v1005_v53 = vmul.f32 %v13061_v19, %v12627_v49  ;;  %v1006_v52 = vmul.f32 %v13061_v19, %v12630_v2  ;;  %v1007_v20 = vmul.f32 %v13061_v19, %v12633_v56 }
 0x220   :  { %v1008_v0 = vmul.f32 %v13061_v19, %v12636_v31  ;;  %v1009_v63 = vmul.f32 %v13061_v19, %v12639_v54  ;;  %v1010_v36 = vmul.f32 %v13061_v19, %v12642_v44  ;;  %v1011_v21 = vmul.f32 %v13061_v19, %v12645_v38 }
 0x221   :  { %v1012_v49 = vmul.f32 %v13061_v19, %v12648_v48  ;;  %v1013_v2 = vmul.f32 %v13061_v19, %v12651_v9  ;;  %v1014_v56 = vmul.f32 %v13061_v19, %v12654_v24  ;;  %v1015_v31 = vmul.f32 %v13061_v19, %v12657_v32  ;;  %v16020_v48 = vld [vmem:[#allocation24_spill] sm:$0xff]  ;;  %v16021_v24 = vld [vmem:[#allocation25_spill] sm:$0xff] }
 0x222   :  { %v1016_v54 = vmul.f32 %v13061_v19, %v12660_v46  ;;  %v1017_v44 = vmul.f32 %v13061_v19, %v16018_v30  ;;  %v1018_v38 = vmul.f32 %v13061_v19, %v16019_v37  ;;  %v1019_v9 = vmul.f32 %v13061_v19, %v16020_v48  ;;  %v16022_v46 = vld [vmem:[#allocation26_spill] sm:$0xff]  ;;  %v16023_v37 = vld [vmem:[#allocation27_spill] sm:$0xff] }
 0x223   :  { %v1020_v32 = vmul.f32 %v13061_v19, %v16021_v24  ;;  %v1021_v30 = vmul.f32 %v13061_v19, %v16022_v46  ;;  %v1023_v48 = vmul.f32 %v13061_v19, %v16023_v37  ;;  %v16024_v24 = vld [vmem:[#allocation18_spill] sm:$0xff]  ;;  %v16026_v19 = vld [vmem:[#allocation19_spill] sm:$0xff] }
 0x224   :  { %v13198_v46 = vmul.f32 %v16024_v24, %v962_v50  ;;  %v1031_v37 = vmul.f32 %v16024_v24, %v16026_v19  ;;  %v13203_v50 = vmul.f32 %v16024_v24, %v963_v22  ;;  %v13207_v19 = vmul.f32 %v16024_v24, %v965_v35 }
 0x225   :  { %v13210_v22 = vmul.f32 %v16024_v24, %v967_v40  ;;  %v1041_v35 = vmul.f32 %v16024_v24, %v970_v34  ;;  %v13221_v40 = vmul.f32 %v16024_v24, %v972_v6  ;;  %v13236_v34 = vmul.f32 %v16024_v24, %v977_v14 }
 0x226   :  { %16025 = vst [vmem:[#allocation21_spill] sm:$0xff] %v13198_v46  ;;  %16027 = vst [vmem:[#allocation6_spill] sm:$0xff] %v13203_v50  ;;  %v1035_v46 = vmul.f32 %v16024_v24, %v964_v8  ;;  %v1039_v50 = vmul.f32 %v16024_v24, %v968_v25  ;;  %v13214_v8 = vmul.f32 %v16024_v24, %v969_v60 }
 0x227   :  { %16028 = vst [vmem:[#allocation7_spill] sm:$0xff] %v13207_v19  ;;  %16029 = vst [vmem:[#allocation8_spill] sm:$0xff] %v13210_v22  ;;  %v13218_v19 = vmul.f32 %v16024_v24, %v971_v18  ;;  %v13224_v22 = vmul.f32 %v16024_v24, %v973_v10  ;;  %v13227_v25 = vmul.f32 %v16024_v24, %v974_v58 }
 0x228   :  { %16030 = vst [vmem:[#allocation9_spill] sm:$0xff] %v13214_v8  ;;  %v13230_v60 = vmul.f32 %v16024_v24, %v975_v28  ;;  %v13233_v8 = vmul.f32 %v16024_v24, %v976_v43  ;;  %v13239_v18 = vmul.f32 %v16024_v24, %v978_v61  ;;  %v13242_v6 = vmul.f32 %v16024_v24, %v979_v7 }
 0x229   :  { %v13245_v10 = vmul.f32 %v16024_v24, %v980_v15  ;;  %v13248_v58 = vmul.f32 %v16024_v24, %v981_v4  ;;  %v13251_v28 = vmul.f32 %v16024_v24, %v982_v3  ;;  %v13254_v43 = vmul.f32 %v16024_v24, %v983_v62 }
 0x22a   :  { %v13257_v14 = vmul.f32 %v16024_v24, %v984_v5  ;;  %v13260_v61 = vmul.f32 %v16024_v24, %v985_v55  ;;  %v13263_v7 = vmul.f32 %v16024_v24, %v986_v16  ;;  %v13266_v15 = vmul.f32 %v16024_v24, %v987_v59 }
 0x22b   :  { %v13269_v4 = vmul.f32 %v16024_v24, %v988_v23  ;;  %v13272_v3 = vmul.f32 %v16024_v24, %v989_v29  ;;  %v13275_v62 = vmul.f32 %v16024_v24, %v990_v33  ;;  %v13278_v5 = vmul.f32 %v16024_v24, %v991_v57 }
 0x22c   :  { %v13281_v55 = vmul.f32 %v16024_v24, %v992_v41  ;;  %v13284_v16 = vmul.f32 %v16024_v24, %v993_v47  ;;  %v13287_v59 = vmul.f32 %v16024_v24, %v994_v51  ;;  %v13290_v23 = vmul.f32 %v16024_v24, %v995_v17 }
 0x22d   :  { %v13293_v29 = vmul.f32 %v16024_v24, %v996_v45  ;;  %v13296_v33 = vmul.f32 %v16024_v24, %v997_v13  ;;  %v13299_v57 = vmul.f32 %v16024_v24, %v998_v1  ;;  %v13302_v41 = vmul.f32 %v16024_v24, %v999_v27 }
 0x22e   :  { %v13305_v47 = vmul.f32 %v16024_v24, %v1000_v12  ;;  %v13308_v51 = vmul.f32 %v16024_v24, %v1001_v26  ;;  %v13311_v17 = vmul.f32 %v16024_v24, %v1002_v39  ;;  %v13314_v45 = vmul.f32 %v16024_v24, %v1003_v42 }
 0x22f   :  { %v13317_v13 = vmul.f32 %v16024_v24, %v1004_v11  ;;  %v13320_v1 = vmul.f32 %v16024_v24, %v1005_v53  ;;  %v13323_v27 = vmul.f32 %v16024_v24, %v1006_v52  ;;  %v13326_v12 = vmul.f32 %v16024_v24, %v1007_v20  ;;  %v13340_v11 = vld [vmem:[%s15907_s4] ss:$0 sm:$0xff] }
 0x230   :  { %v13329_v26 = vmul.f32 %v16024_v24, %v1008_v0  ;;  %v13332_v39 = vmul.f32 %v16024_v24, %v1009_v63  ;;  %v13335_v42 = vmul.f32 %v16024_v24, %v1010_v36  ;;  %v13343_v53 = vmul.f32 %v16024_v24, %v1011_v21 }
 0x231   :  { %v13346_v52 = vmul.f32 %v16024_v24, %v1012_v49  ;;  %v13349_v20 = vmul.f32 %v16024_v24, %v1013_v2  ;;  %v13352_v0 = vmul.f32 %v16024_v24, %v1014_v56  ;;  %v13355_v63 = vmul.f32 %v16024_v24, %v1015_v31 }
 0x232   :  { %16031 = vst [vmem:[#allocation10_spill] sm:$0xff] %v13332_v39  ;;  %v13358_v36 = vmul.f32 %v16024_v24, %v1016_v54  ;;  %v13361_v39 = vmul.f32 %v16024_v24, %v1017_v44  ;;  %v13364_v21 = vmul.f32 %v16024_v24, %v1018_v38  ;;  %v13367_v49 = vmul.f32 %v16024_v24, %v1019_v9 }
 0x233   :  { %v13370_v2 = vmul.f32 %v16024_v24, %v1020_v32  ;;  %v13373_v56 = vmul.f32 %v16024_v24, %v1021_v30  ;;  %v13376_v31 = vmul.f32 %v16024_v24, %v1023_v48  ;;  %v1106_v54 = vadd.f32 %v13340_v11, %v1035_v46  ;;  %v11585_v46 = vld [vmem:[%s15908_s5 + $0x40] sm:$0xff]  }
 0x234   :  { %16032 = vst [vmem:[#allocation11_spill] sm:$0xff] %v13361_v39  ;;  %16033 = vst [vmem:[#allocation12_spill] sm:$0xff] %v13367_v49  ;;  %v1102_v44 = vadd.f32 %v13340_v11, %v1031_v37  ;;  %v16035_v39 = vld [vmem:[#allocation21_spill] sm:$0xff]  ;;  %v13385_v9 = vadd.f32 %v13340_v11, %v1039_v50  ;;  %v16037_v49 = vld [vmem:[#allocation6_spill] sm:$0xff]  ;;  %v13392_v30 = vadd.f32 %v13340_v11, %v1041_v35 }
 0x235   :  { %16034 = vst [vmem:[#allocation13_spill] sm:$0xff] %v13376_v31  ;;  %v13382_v38 = vadd.f32 %v13340_v11, %v16035_v39  ;;  %v13389_v32 = vadd.f32 %v13340_v11, %v16037_v49  ;;  %v1170_v48 = vmax.f32 %v1106_v54, 0.0  ;;  %v11586_v37 = vld [vmem:[%s15908_s5 + $0x180] sm:$0xff]   ;;  %v13406_v35 = vadd.f32 %v13340_v11, %v13221_v40  ;;  %v16039_v54 = vld [vmem:[#allocation8_spill] sm:$0xff] }
 0x236   :  { %16036 = vst [vmem:[#allocation14_spill] sm:$0xff] %v13385_v9  ;;  %v1166_v31 = vmax.f32 %v1102_v44, 0.0  ;;  %v16038_v9 = vld [vmem:[#allocation7_spill] sm:$0xff]  ;;  %v13410_v44 = vadd.f32 %v13340_v11, %v16039_v54  ;;  %v16040_v40 = vld [vmem:[#allocation9_spill] sm:$0xff]  ;;  %v13454_v54 = vadd.f32 %v13340_v11, %v13224_v22  ;;  %v13474_v22 = vadd.f32 %v13340_v11, %v13257_v14 }
 0x237   :  { %v1314_v39 = vpack.c.bf16 %v1170_v48, %v1170_v48  ;;  %v13402_v49 = vadd.f32 %v13340_v11, %v16038_v9  ;;  %v11588_v48 = vld [vmem:[%s15908_s5 + $0x188] sm:$0xff]   ;;  %v13420_v9 = vadd.f32 %v13340_v11, %v13227_v25  ;;  %v13442_v25 = vadd.f32 %v13340_v11, %v13239_v18 }
 0x238   :  { %v1310_v50 = vpack.c.bf16 %v1166_v31, %v1166_v31  ;;  %v11587_v31 = vld [vmem:[%s15908_s5 + $0x48] sm:$0xff]   ;;  %v13458_v18 = vadd.f32 %v13340_v11, %v13245_v10  ;;  %v13478_v10 = vadd.f32 %v13340_v11, %v13242_v6  ;;  %v13494_v6 = vadd.f32 %v13340_v11, %v13248_v58 }
 0x239   :  { %10369 = vmatmul.mubr.bf16.vlgmr.msra.gmra.mrb[64].mxu0 %v1314_v39  ;;  %v13424_v39 = vadd.f32 %v13340_v11, %v16040_v40  ;;  %v13470_v40 = vadd.f32 %v13340_v11, %v13236_v34  ;;  %v13488_v34 = vadd.f32 %v13340_v11, %v13263_v7  ;;  %v13498_v14 = vadd.f32 %v13340_v11, %v13269_v4  ;;  %v11593_v7 = vld [vmem:[%s15908_s5 + $0x60] sm:$0xff]  }
 0x23a   :  { %10289 = vmatmul.mubr.bf16.vlgmr.msra.gmra.mrb[0].mxu1 %v1310_v50  ;;  %10393 = vmatpush3.bf16.msra.mxu0 %v11586_v37  ;;  %v16041_v37 = vmov 0.0   ;;  %v13434_v50 = vadd.f32 %v13340_v11, %v13218_v19  ;;  %v11590_v19 = vld [vmem:[%s15908_s5 + $0x190] sm:$0xff]   ;;  %16042 = vst [vmem:[#allocation15_spill] sm:$0xff] %v13478_v10  ;;  %v13510_v58 = vadd.f32 %v13340_v11, %v13254_v43 }
 0x23b   :  { %10293 = vmatpush3.bf16.msra.mxu1 %v11585_v46  ;;  %v13428_v46 = vadd.f32 %v13340_v11, %v13233_v8  ;;  %10394 = vmatprep.subr.bf16.mxu0 %v16041_v37  ;;  %v11589_v8 = vld [vmem:[%s15908_s5 + $0x50] sm:$0xff]   ;;  %16043 = vst [vmem:[#allocation16_spill] sm:$0xff] %v13488_v34  ;;  %16044 = vst [vmem:[#allocation22_spill] sm:$0xff] %v13498_v14  ;;  %v11594_v34 = vld [vmem:[%s15908_s5 + $0x1a0] sm:$0xff]   ;;  %v13514_v4 = vadd.f32 %v13340_v11, %v13275_v62 }
 0x23c   :  { %10294 = vmatprep.subr.bf16.mxu1 %v16041_v37  ;;  %10308 = vmatprep.mubr.msk.bf16.mxu1 %vm12110_vm4, %v16041_v37  ;;  %v16047_v14 = vld [vmem:[#allocation29_spill] sm:$0xff]  ;;  %v13530_v43 = vadd.f32 %v13340_v11, %v13266_v15  ;;  %v13534_v62 = vadd.f32 %v13340_v11, %v13287_v59  ;;  %v13548_v15 = vadd.f32 %v13340_v11, %v13272_v3 }
 0x23d   :  { %10408 = vmatprep.mubr.msk.bf16.mxu0 %vm12110_vm4, %v16041_v37  ;;  %v13552_v59 = vadd.f32 %v13340_v11, %v13293_v29  ;;  %v13568_v3 = vadd.f32 %v13340_v11, %v13305_v47  ;;  %v11597_v29 = vld [vmem:[%s15908_s5 + $0x70] sm:$0xff]   ;;  %v13583_v47 = vadd.f32 %v13340_v11, %v13311_v17  ;;  %v11600_v17 = vld [vmem:[%s15908_s5 + $0x1b8] sm:$0xff]  }
 0x23e   :  { %10395 = vmatpush3.bf16.msra.mxu0 %v11588_v48  ;;  %v13466_v48 = vadd.f32 %v13340_v11, %v13251_v28  ;;  %v11592_v28 = vld [vmem:[%s15908_s5 + $0x198] sm:$0xff]  }
 0x23f   :  { %10295 = vmatpush3.bf16.msra.mxu1 %v11587_v31  ;;  %10396 = vmatprep.subr.bf16.mxu0 %v16041_v37  ;;  %v13462_v31 = vadd.f32 %v13340_v11, %v13230_v60  ;;  %v11591_v60 = vld [vmem:[%s15908_s5 + $0x58] sm:$0xff]  }
 0x240   :  { %10296 = vmatprep.subr.bf16.mxu1 %v16041_v37 }
 0x242   :  { %10397 = vmatpush3.bf16.msra.mxu0 %v11590_v19  ;;  %v16046_v19 = vld [vmem:[#allocation17_spill] sm:$0xff] }
 0x243   :  { %10297 = vmatpush3.bf16.msra.mxu1 %v11589_v8  ;;  %10398 = vmatprep.subr.bf16.mxu0 %v16041_v37  ;;  %v16045_v8 = vld [vmem:[#allocation28_spill] sm:$0xff] }
 0x244   :  { %10298 = vmatprep.subr.bf16.mxu1 %v16041_v37  ;;  %v961_v10 = vmul.f32 %v16046_v19, %v16045_v8  ;;  %v13526_v8 = vadd.f32 %v13340_v11, %v13281_v55  ;;  %v11596_v55 = vld [vmem:[%s15908_s5 + $0x1a8] sm:$0xff]  }
 0x246   :  { %10399 = vmatpush3.bf16.msra.mxu0 %v11592_v28  ;;  %v13522_v28 = vadd.f32 %v13340_v11, %v13260_v61  ;;  %v11595_v61 = vld [vmem:[%s15908_s5 + $0x68] sm:$0xff]  }
 0x247   :  { %10299 = vmatpush3.bf16.msra.mxu1 %v11591_v60  ;;  %v966_v60 = vmul.f32 %v16046_v19, %v16047_v14  ;;  %10400 = vmatprep.subr.bf16.mxu0 %v16041_v37  ;;  %v1032_v14 = vmul.f32 %v16024_v24, %v961_v10  ;;  %v13556_v10 = vadd.f32 %v13340_v11, %v13278_v5  ;;  %v11598_v5 = vld [vmem:[%s15908_s5 + $0x1b0] sm:$0xff]  }
 0x248   :  { %10300 = vmatprep.subr.bf16.mxu1 %v16041_v37 }
 0x249   :  { %v1037_v19 = vmul.f32 %v16024_v24, %v966_v60  ;;  %v13564_v24 = vadd.f32 %v13340_v11, %v13284_v16  ;;  %v13579_v16 = vadd.f32 %v13340_v11, %v13290_v23  ;;  %v13590_v60 = vadd.f32 %v13340_v11, %v13296_v33  ;;  %v11599_v23 = vld [vmem:[%s15908_s5 + $0x78] sm:$0xff]  }
 0x24a   :  { %10401 = vmatpush3.bf16.msra.mxu0 %v11594_v34  ;;  %v13560_v34 = vadd.f32 %v13340_v11, %v13299_v57  ;;  %v1103_v57 = vadd.f32 %v13340_v11, %v1032_v14 }
 0x24b   :  { %10301 = vmatpush3.bf16.msra.mxu1 %v11593_v7  ;;  %10402 = vmatprep.subr.bf16.mxu0 %v16041_v37  ;;  %v1108_v7 = vadd.f32 %v13340_v11, %v1037_v19  ;;  %v13610_v19 = vadd.f32 %v13340_v11, %v13323_v27  ;;  %v11601_v27 = vld [vmem:[%s15908_s5 + $0x80] sm:$0xff]  }
 0x24c   :  { %10302 = vmatprep.subr.bf16.mxu1 %v16041_v37  ;;  %v1167_v14 = vmax.f32 %v1103_v57, 0.0 }
 0x24d   :  { %v1172_v33 = vmax.f32 %v1108_v7, 0.0  ;;  %v13646_v7 = vadd.f32 %v13340_v11, %v13326_v12  ;;  %v13664_v12 = vadd.f32 %v13340_v11, %v13358_v36  ;;  %v11606_v36 = vld [vmem:[%s15908_s5 + $0x210] sm:$0xff]  }
 0x24e   :  { %10403 = vmatpush3.bf16.msra.mxu0 %v11596_v55  ;;  %v13606_v55 = vadd.f32 %v13340_v11, %v13302_v41  ;;  %v13626_v41 = vadd.f32 %v13340_v11, %v13335_v42  ;;  %v13642_v42 = vadd.f32 %v13340_v11, %v13346_v52  ;;  %v16048_v52 = vld [vmem:[#allocation10_spill] sm:$0xff] }
 0x24f   :  { %10303 = vmatpush3.bf16.msra.mxu1 %v11595_v61  ;;  %10404 = vmatprep.subr.bf16.mxu0 %v16041_v37  ;;  %v13600_v61 = vadd.f32 %v13340_v11, %v13317_v13  ;;  %v13618_v13 = vadd.f32 %v13340_v11, %v13329_v26  ;;  %v1311_v26 = vpack.c.bf16 %v1167_v14, %v1167_v14 }
 0x250   :  { %10304 = vmatprep.subr.bf16.mxu1 %v16041_v37  ;;  %v1316_v57 = vpack.c.bf16 %v1172_v33, %v1172_v33  ;;  %v13660_v14 = vadd.f32 %v13340_v11, %v16048_v52  ;;  %v13674_v33 = vadd.f32 %v13340_v11, %v13364_v21  ;;  %v13690_v21 = vadd.f32 %v13340_v11, %v13349_v20  ;;  %v16052_v52 = vld [vmem:[#allocation12_spill] sm:$0xff] }
 0x251   :  { %v13710_v20 = vadd.f32 %v13340_v11, %v16052_v52  ;;  %v11614_v52 = vld [vmem:[%s15908_s5 + $0x230] sm:$0xff]  }
 0x252   :  { %10405 = vmatpush3.bf16.msra.mxu0 %v11598_v5  ;;  %v13622_v5 = vadd.f32 %v13340_v11, %v13314_v45  ;;  %v13638_v45 = vadd.f32 %v13340_v11, %v13320_v1  ;;  %v11603_v1 = vld [vmem:[%s15908_s5 + $0x88] sm:$0xff]  }
 0x253   :  { %10305 = vmatpush3.bf16.msra.mxu1 %v11597_v29  ;;  %10406 = vmatprep.subr.bf16.mxu0 %v16041_v37  ;;  %v13614_v29 = vadd.f32 %v13340_v11, %v13308_v51  ;;  %v11602_v51 = vld [vmem:[%s15908_s5 + $0x200] sm:$0xff]  }
 0x254   :  { %10306 = vmatprep.subr.bf16.mxu1 %v16041_v37 }
 0x256   :  { %10407 = vmatpush3.bf16.msra.mxu0 %v11600_v17  ;;  %v11604_v17 = vld [vmem:[%s15908_s5 + $0x208] sm:$0xff]  }
 0x257   :  { %10307 = vmatpush3.bf16.msra.mxu1 %v11599_v23  ;;  %10432 = vmatprep.subr.bf16.mxu0 %v16041_v37  ;;  %v13650_v23 = vadd.f32 %v13340_v11, %v13352_v0  ;;  %v13668_v0 = vadd.f32 %v13340_v11, %v13343_v53  ;;  %v11605_v53 = vld [vmem:[%s15908_s5 + $0x90] sm:$0xff]  }
 0x258   :  { %10312 = vmatprep.subr.bf16.mxu1 %v16041_v37 }
 0x259   :  { %10409 = vmatmul.mubr.bf16.vlgmr.msra.gmra.mrb[68].mxu0 %v1316_v57 }
 0x25a   :  { %10309 = vmatmul.mubr.bf16.vlgmr.msra.gmra.mrb[4].mxu1 %v1311_v26  ;;  %10433 = vmatpush3.bf16.msra.mxu0 %v11602_v51  ;;  %v13698_v51 = vadd.f32 %v13340_v11, %v13355_v63  ;;  %v16050_v26 = vld [vmem:[#allocation20_spill] sm:$0xff] }
 0x25b   :  { %10313 = vmatpush3.bf16.msra.mxu1 %v11601_v27  ;;  %10434 = vmatprep.subr.bf16.mxu0 %v16041_v37  ;;  %v13694_v27 = vadd.f32 %v13340_v11, %v13370_v2  ;;  %v13702_v57 = vadd.f32 %v13340_v11, %v16050_v26  ;;  %v13714_v2 = vadd.f32 %v13340_v11, %v13373_v56  ;;  %v11607_v26 = vld [vmem:[%s15908_s5 + $0x98] sm:$0xff]   ;;  %v11610_v56 = vld [vmem:[%s15908_s5 + $0x220] sm:$0xff]  }
 0x25c   :  { %10314 = vmatprep.subr.bf16.mxu1 %v16041_v37  ;;  %10328 = vmatprep.mubr.msk.bf16.mxu1 %vm12110_vm4, %v16041_v37 }
 0x25d   :  { %10448 = vmatprep.mubr.msk.bf16.mxu0 %vm12110_vm4, %v16041_v37  ;;  %16049 = vst [vmem:[#allocation23_spill] sm:$0xff] %v13694_v27  ;;  %v16053_v27 = vld [vmem:[#allocation13_spill] sm:$0xff] }
 0x25e   :  { %10435 = vmatpush3.bf16.msra.mxu0 %v11604_v17  ;;  %v13718_v63 = vadd.f32 %v13340_v11, %v16053_v27  ;;  %v11613_v27 = vld [vmem:[%s15908_s5 + $0xb0] sm:$0xff]  }
 0x25f   :  { %10315 = vmatpush3.bf16.msra.mxu1 %v11603_v1  ;;  %10436 = vmatprep.subr.bf16.mxu0 %v16041_v37  ;;  %v16051_v1 = vld [vmem:[#allocation11_spill] sm:$0xff] }
 0x260   :  { %10316 = vmatprep.subr.bf16.mxu1 %v16041_v37  ;;  %v13706_v17 = vadd.f32 %v13340_v11, %v16051_v1  ;;  %16054 = vst [vmem:[#allocation24_spill] sm:$0xff] %v13718_v63  ;;  %v11608_v1 = vld [vmem:[%s15908_s5 + $0x218] sm:$0xff]   ;;  %v11609_v11 = vld [vmem:[%s15908_s5 + $0xa0] sm:$0xff]  }
 0x262   :  { %10437 = vmatpush3.bf16.msra.mxu0 %v11606_v36  ;;  %v11612_v36 = vld [vmem:[%s15908_s5 + $0x228] sm:$0xff]  }
 0x263   :  { %10317 = vmatpush3.bf16.msra.mxu1 %v11605_v53  ;;  %10438 = vmatprep.subr.bf16.mxu0 %v16041_v37  ;;  %v11611_v53 = vld [vmem:[%s15908_s5 + $0xa8] sm:$0xff]  }
 0x264   :  { %10318 = vmatprep.subr.bf16.mxu1 %v16041_v37 }
 0x266   :  { %10439 = vmatpush3.bf16.msra.mxu0 %v11608_v1  ;;  %v11616_v1 = vld [vmem:[%s15908_s5 + $0x238] sm:$0xff]  }
 0x267   :  { %10319 = vmatpush3.bf16.msra.mxu1 %v11607_v26  ;;  %10440 = vmatprep.subr.bf16.mxu0 %v16041_v37  ;;  %v11615_v26 = vld [vmem:[%s15908_s5 + $0xb8] sm:$0xff]  }
 0x268   :  { %10320 = vmatprep.subr.bf16.mxu1 %v16041_v37 }
 0x26a   :  { %10441 = vmatpush3.bf16.msra.mxu0 %v11610_v56  ;;  %v16055_v56 = vld [vmem:[#allocation14_spill] sm:$0xff] }
 0x26b   :  { %10321 = vmatpush3.bf16.msra.mxu1 %v11609_v11  ;;  %10442 = vmatprep.subr.bf16.mxu0 %v16041_v37  ;;  %v1168_v11 = vmax.f32 %v13382_v38, 0.0  ;;  %v11619_v38 = vld [vmem:[%s15908_s5 + $0xc8] sm:$0xff]  }
 0x26c   :  { %10322 = vmatprep.subr.bf16.mxu1 %v16041_v37 }
 0x26e   :  { %10443 = vmatpush3.bf16.msra.mxu0 %v11612_v36  ;;  %v11617_v36 = vld [vmem:[%s15908_s5 + $0xc0] sm:$0xff]  }
 0x26f   :  { %10323 = vmatpush3.bf16.msra.mxu1 %v11611_v53  ;;  %10444 = vmatprep.subr.bf16.mxu0 %v16041_v37  ;;  %v1174_v53 = vmax.f32 %v16055_v56, 0.0  ;;  %v11624_v56 = vld [vmem:[%s15908_s5 + $0x298] sm:$0xff]  }
 0x270   :  { %10324 = vmatprep.subr.bf16.mxu1 %v16041_v37 }
 0x271   :  { %v1318_v63 = vpack.c.bf16 %v1174_v53, %v1174_v53  ;;  %v11625_v53 = vld [vmem:[%s15908_s5 + $0xe0] sm:$0xff]  }
 0x272   :  { %10445 = vmatpush3.bf16.msra.mxu0 %v11614_v52  ;;  %v1312_v52 = vpack.c.bf16 %v1168_v11, %v1168_v11  ;;  %v11623_v11 = vld [vmem:[%s15908_s5 + $0xd8] sm:$0xff]  }
 0x273   :  { %10325 = vmatpush3.bf16.msra.mxu1 %v11613_v27  ;;  %10446 = vmatprep.subr.bf16.mxu0 %v16041_v37  ;;  %v11618_v27 = vld [vmem:[%s15908_s5 + $0x280] sm:$0xff]  }
 0x274   :  { %10326 = vmatprep.subr.bf16.mxu1 %v16041_v37 }
 0x276   :  { %10447 = vmatpush3.bf16.msra.mxu0 %v11616_v1  ;;  %v11622_v1 = vld [vmem:[%s15908_s5 + $0x290] sm:$0xff]  }
 0x277   :  { %10327 = vmatpush3.bf16.msra.mxu1 %v11615_v26  ;;  %10472 = vmatprep.subr.bf16.mxu0 %v16041_v37  ;;  %v11620_v26 = vld [vmem:[%s15908_s5 + $0x288] sm:$0xff]  }
 0x278   :  { %10332 = vmatprep.subr.bf16.mxu1 %v16041_v37 }
 0x279   :  { %10449 = vmatmul.mubr.bf16.vlgmr.msra.gmra.mrb[72].mxu0 %v1318_v63  ;;  %v11621_v63 = vld [vmem:[%s15908_s5 + $0xd0] sm:$0xff]  }
 0x27a   :  { %10329 = vmatmul.mubr.bf16.vlgmr.msra.gmra.mrb[8].mxu1 %v1312_v52  ;;  %10473 = vmatpush3.bf16.msra.mxu0 %v11618_v27  ;;  %v11627_v27 = vld [vmem:[%s15908_s5 + $0xe8] sm:$0xff]  }
 0x27b   :  { %10333 = vmatpush3.bf16.msra.mxu1 %v11617_v36  ;;  %10474 = vmatprep.subr.bf16.mxu0 %v16041_v37  ;;  %v11626_v36 = vld [vmem:[%s15908_s5 + $0x2a0] sm:$0xff]   ;;  %v11628_v52 = vld [vmem:[%s15908_s5 + $0x2a8] sm:$0xff]  }
 0x27c   :  { %10334 = vmatprep.subr.bf16.mxu1 %v16041_v37  ;;  %10348 = vmatprep.mubr.msk.bf16.mxu1 %vm12110_vm4, %v16041_v37 }
 0x27d   :  { %10488 = vmatprep.mubr.msk.bf16.mxu0 %vm12110_vm4, %v16041_v37 }
 0x27e   :  { %10475 = vmatpush3.bf16.msra.mxu0 %v11620_v26  ;;  %v11630_v26 = vld [vmem:[%s15908_s5 + $0x2b0] sm:$0xff]  }
 0x27f   :  { %10335 = vmatpush3.bf16.msra.mxu1 %v11619_v38  ;;  %10476 = vmatprep.subr.bf16.mxu0 %v16041_v37  ;;  %v11629_v38 = vld [vmem:[%s15908_s5 + $0xf0] sm:$0xff]  }
 0x280   :  { %10336 = vmatprep.subr.bf16.mxu1 %v16041_v37 }
 0x282   :  { %10477 = vmatpush3.bf16.msra.mxu0 %v11622_v1  ;;  %v11632_v1 = vld [vmem:[%s15908_s5 + $0x2b8] sm:$0xff]  }
 0x283   :  { %10337 = vmatpush3.bf16.msra.mxu1 %v11621_v63  ;;  %10478 = vmatprep.subr.bf16.mxu0 %v16041_v37  ;;  %v11631_v63 = vld [vmem:[%s15908_s5 + $0xf8] sm:$0xff]  }
 0x284   :  { %10338 = vmatprep.subr.bf16.mxu1 %v16041_v37 }
 0x286   :  { %10479 = vmatpush3.bf16.msra.mxu0 %v11624_v56  ;;  %v1176_v56 = vmax.f32 %v13392_v30, 0.0  ;;  %v11636_v30 = vld [vmem:[%s15908_s5 + $0x308] sm:$0xff]  }
 0x287   :  { %10339 = vmatpush3.bf16.msra.mxu1 %v11623_v11  ;;  %10480 = vmatprep.subr.bf16.mxu0 %v16041_v37  ;;  %v1169_v11 = vmax.f32 %v13389_v32, 0.0  ;;  %v11635_v32 = vld [vmem:[%s15908_s5 + $0x148] sm:$0xff]  }
 0x288   :  { %10340 = vmatprep.subr.bf16.mxu1 %v16041_v37 }
 0x28a   :  { %10481 = vmatpush3.bf16.msra.mxu0 %v11626_v36  ;;  %v11634_v36 = vld [vmem:[%s15908_s5 + $0x300] sm:$0xff]  }
 0x28b   :  { %10341 = vmatpush3.bf16.msra.mxu1 %v11625_v53  ;;  %10482 = vmatprep.subr.bf16.mxu0 %v16041_v37  ;;  %v11633_v53 = vld [vmem:[%s15908_s5 + $0x140] sm:$0xff]  }
 0x28c   :  { %10342 = vmatprep.subr.bf16.mxu1 %v16041_v37 }
 0x28e   :  { %10483 = vmatpush3.bf16.msra.mxu0 %v11628_v52  ;;  %v1320_v52 = vpack.c.bf16 %v1176_v56, %v1176_v56  ;;  %v11642_v56 = vld [vmem:[%s15908_s5 + $0x320] sm:$0xff]  }
 0x28f   :  { %10343 = vmatpush3.bf16.msra.mxu1 %v11627_v27  ;;  %10484 = vmatprep.subr.bf16.mxu0 %v16041_v37  ;;  %v1313_v27 = vpack.c.bf16 %v1169_v11, %v1169_v11  ;;  %v11641_v11 = vld [vmem:[%s15908_s5 + $0x160] sm:$0xff]  }
 0x290   :  { %10344 = vmatprep.subr.bf16.mxu1 %v16041_v37 }
 0x292   :  { %10485 = vmatpush3.bf16.msra.mxu0 %v11630_v26  ;;  %v11638_v26 = vld [vmem:[%s15908_s5 + $0x310] sm:$0xff]  }
 0x293   :  { %10345 = vmatpush3.bf16.msra.mxu1 %v11629_v38  ;;  %10486 = vmatprep.subr.bf16.mxu0 %v16041_v37  ;;  %v11637_v38 = vld [vmem:[%s15908_s5 + $0x150] sm:$0xff]  }
 0x294   :  { %10346 = vmatprep.subr.bf16.mxu1 %v16041_v37 }
 0x296   :  { %10487 = vmatpush3.bf16.msra.mxu0 %v11632_v1  ;;  %v11640_v1 = vld [vmem:[%s15908_s5 + $0x318] sm:$0xff]  }
 0x297   :  { %10347 = vmatpush3.bf16.msra.mxu1 %v11631_v63  ;;  %10512 = vmatprep.subr.bf16.mxu0 %v16041_v37  ;;  %v11639_v63 = vld [vmem:[%s15908_s5 + $0x158] sm:$0xff]  }
 0x298   :  { %10372 = vmatprep.subr.bf16.mxu1 %v16041_v37 }
 0x299   :  { %10489 = vmatmul.mubr.bf16.vlgmr.msra.gmra.mrb[76].mxu0 %v1320_v52  ;;  %v11646_v52 = vld [vmem:[%s15908_s5 + $0x330] sm:$0xff]  }
 0x29a   :  { %10349 = vmatmul.mubr.bf16.vlgmr.msra.gmra.mrb[12].mxu1 %v1313_v27  ;;  %10513 = vmatpush3.bf16.msra.mxu0 %v11634_v36  ;;  %v11644_v36 = vld [vmem:[%s15908_s5 + $0x328] sm:$0xff]   ;;  %v11645_v27 = vld [vmem:[%s15908_s5 + $0x170] sm:$0xff]  }
 0x29b   :  { %10373 = vmatpush3.bf16.msra.mxu1 %v11633_v53  ;;  %10514 = vmatprep.subr.bf16.mxu0 %v16041_v37  ;;  %v11643_v53 = vld [vmem:[%s15908_s5 + $0x168] sm:$0xff]  }
 0x29c   :  { %10374 = vmatprep.subr.bf16.mxu1 %v16041_v37  ;;  %10388 = vmatprep.mubr.msk.bf16.mxu1 %vm12110_vm4, %v16041_v37 }
 0x29d   :  { %10528 = vmatprep.mubr.msk.bf16.mxu0 %vm12110_vm4, %v16041_v37 }
 0x29e   :  { %10515 = vmatpush3.bf16.msra.mxu0 %v11636_v30  ;;  %v11648_v30 = vld [vmem:[%s15908_s5 + $0x338] sm:$0xff]  }
 0x29f   :  { %10375 = vmatpush3.bf16.msra.mxu1 %v11635_v32  ;;  %10516 = vmatprep.subr.bf16.mxu0 %v16041_v37  ;;  %v11647_v32 = vld [vmem:[%s15908_s5 + $0x178] sm:$0xff]  }
 0x2a0   :  { %10376 = vmatprep.subr.bf16.mxu1 %v16041_v37 }
 0x2a2   :  { %10517 = vmatpush3.bf16.msra.mxu0 %v11638_v26  ;;  %v1178_v26 = vmax.f32 %v13406_v35, 0.0  ;;  %v11652_v35 = vld [vmem:[%s15908_s5 + $0x388] sm:$0xff]  }
 0x2a3   :  { %10377 = vmatpush3.bf16.msra.mxu1 %v11637_v38  ;;  %10518 = vmatprep.subr.bf16.mxu0 %v16041_v37  ;;  %v1171_v38 = vmax.f32 %v13402_v49, 0.0  ;;  %v11651_v49 = vld [vmem:[%s15908_s5 + $0x1c8] sm:$0xff]  }
 0x2a4   :  { %10378 = vmatprep.subr.bf16.mxu1 %v16041_v37 }
 0x2a6   :  { %10519 = vmatpush3.bf16.msra.mxu0 %v11640_v1  ;;  %v11650_v1 = vld [vmem:[%s15908_s5 + $0x380] sm:$0xff]  }
 0x2a7   :  { %10379 = vmatpush3.bf16.msra.mxu1 %v11639_v63  ;;  %10520 = vmatprep.subr.bf16.mxu0 %v16041_v37  ;;  %v11649_v63 = vld [vmem:[%s15908_s5 + $0x1c0] sm:$0xff]  }
 0x2a8   :  { %10380 = vmatprep.subr.bf16.mxu1 %v16041_v37 }
 0x2aa   :  { %10521 = vmatpush3.bf16.msra.mxu0 %v11642_v56  ;;  %v1322_v56 = vpack.c.bf16 %v1178_v26, %v1178_v26  ;;  %v11660_v26 = vld [vmem:[%s15908_s5 + $0x3a8] sm:$0xff]  }
 0x2ab   :  { %10381 = vmatpush3.bf16.msra.mxu1 %v11641_v11  ;;  %10522 = vmatprep.subr.bf16.mxu0 %v16041_v37  ;;  %v1315_v11 = vpack.c.bf16 %v1171_v38, %v1171_v38  ;;  %v11659_v38 = vld [vmem:[%s15908_s5 + $0x1e8] sm:$0xff]  }
 0x2ac   :  { %10382 = vmatprep.subr.bf16.mxu1 %v16041_v37 }
 0x2ae   :  { %10523 = vmatpush3.bf16.msra.mxu0 %v11644_v36  ;;  %v11654_v36 = vld [vmem:[%s15908_s5 + $0x390] sm:$0xff]  }
 0x2af   :  { %10383 = vmatpush3.bf16.msra.mxu1 %v11643_v53  ;;  %10524 = vmatprep.subr.bf16.mxu0 %v16041_v37  ;;  %v11653_v53 = vld [vmem:[%s15908_s5 + $0x1d0] sm:$0xff]  }
 0x2b0   :  { %10384 = vmatprep.subr.bf16.mxu1 %v16041_v37 }
 0x2b2   :  { %10525 = vmatpush3.bf16.msra.mxu0 %v11646_v52  ;;  %v11656_v52 = vld [vmem:[%s15908_s5 + $0x398] sm:$0xff]  }
 0x2b3   :  { %10385 = vmatpush3.bf16.msra.mxu1 %v11645_v27  ;;  %10526 = vmatprep.subr.bf16.mxu0 %v16041_v37  ;;  %v11655_v27 = vld [vmem:[%s15908_s5 + $0x1d8] sm:$0xff]  }
 0x2b4   :  { %10386 = vmatprep.subr.bf16.mxu1 %v16041_v37 }
 0x2b6   :  { %10527 = vmatpush3.bf16.msra.mxu0 %v11648_v30  ;;  %v11658_v30 = vld [vmem:[%s15908_s5 + $0x3a0] sm:$0xff]  }
 0x2b7   :  { %10387 = vmatpush3.bf16.msra.mxu1 %v11647_v32  ;;  %10552 = vmatprep.subr.bf16.mxu0 %v16041_v37  ;;  %v11657_v32 = vld [vmem:[%s15908_s5 + $0x1e0] sm:$0xff]  }
 0x2b8   :  { %10412 = vmatprep.subr.bf16.mxu1 %v16041_v37 }
 0x2b9   :  { %10529 = vmatmul.mubr.bf16.vlgmr.msra.gmra.mrb[80].mxu0 %v1322_v56  ;;  %v11664_v56 = vld [vmem:[%s15908_s5 + $0x3b8] sm:$0xff]  }
 0x2ba   :  { %10389 = vmatmul.mubr.bf16.vlgmr.msra.gmra.mrb[16].mxu1 %v1315_v11  ;;  %10553 = vmatpush3.bf16.msra.mxu0 %v11650_v1  ;;  %v11662_v1 = vld [vmem:[%s15908_s5 + $0x3b0] sm:$0xff]   ;;  %v11663_v11 = vld [vmem:[%s15908_s5 + $0x1f8] sm:$0xff]  }
 0x2bb   :  { %10413 = vmatpush3.bf16.msra.mxu1 %v11649_v63  ;;  %10554 = vmatprep.subr.bf16.mxu0 %v16041_v37  ;;  %v11661_v63 = vld [vmem:[%s15908_s5 + $0x1f0] sm:$0xff]  }
 0x2bc   :  { %10414 = vmatprep.subr.bf16.mxu1 %v16041_v37  ;;  %10428 = vmatprep.mubr.msk.bf16.mxu1 %vm12110_vm4, %v16041_v37 }
 0x2bd   :  { %10568 = vmatprep.mubr.msk.bf16.mxu0 %vm12110_vm4, %v16041_v37 }
 0x2be   :  { %10555 = vmatpush3.bf16.msra.mxu0 %v11652_v35  ;;  %v1180_v35 = vmax.f32 %v13420_v9, 0.0  ;;  %v11668_v9 = vld [vmem:[%s15908_s5 + $0x408] sm:$0xff]  }
 0x2bf   :  { %10415 = vmatpush3.bf16.msra.mxu1 %v11651_v49  ;;  %10556 = vmatprep.subr.bf16.mxu0 %v16041_v37  ;;  %v1173_v49 = vmax.f32 %v13410_v44, 0.0  ;;  %v11667_v44 = vld [vmem:[%s15908_s5 + $0x248] sm:$0xff]  }
 0x2c0   :  { %10416 = vmatprep.subr.bf16.mxu1 %v16041_v37 }
 0x2c2   :  { %10557 = vmatpush3.bf16.msra.mxu0 %v11654_v36  ;;  %v11666_v36 = vld [vmem:[%s15908_s5 + $0x400] sm:$0xff]  }
 0x2c3   :  { %10417 = vmatpush3.bf16.msra.mxu1 %v11653_v53  ;;  %10558 = vmatprep.subr.bf16.mxu0 %v16041_v37  ;;  %v11665_v53 = vld [vmem:[%s15908_s5 + $0x240] sm:$0xff]  }
 0x2c4   :  { %10418 = vmatprep.subr.bf16.mxu1 %v16041_v37 }
 0x2c6   :  { %10559 = vmatpush3.bf16.msra.mxu0 %v11656_v52  ;;  %v1324_v52 = vpack.c.bf16 %v1180_v35, %v1180_v35  ;;  %v11678_v35 = vld [vmem:[%s15908_s5 + $0x430] sm:$0xff]  }
 0x2c7   :  { %10419 = vmatpush3.bf16.msra.mxu1 %v11655_v27  ;;  %10560 = vmatprep.subr.bf16.mxu0 %v16041_v37  ;;  %v1317_v27 = vpack.c.bf16 %v1173_v49, %v1173_v49  ;;  %v11677_v49 = vld [vmem:[%s15908_s5 + $0x270] sm:$0xff]  }
 0x2c8   :  { %10420 = vmatprep.subr.bf16.mxu1 %v16041_v37 }
 0x2ca   :  { %10561 = vmatpush3.bf16.msra.mxu0 %v11658_v30  ;;  %v11670_v30 = vld [vmem:[%s15908_s5 + $0x410] sm:$0xff]  }
 0x2cb   :  { %10421 = vmatpush3.bf16.msra.mxu1 %v11657_v32  ;;  %10562 = vmatprep.subr.bf16.mxu0 %v16041_v37  ;;  %v11669_v32 = vld [vmem:[%s15908_s5 + $0x250] sm:$0xff]  }
 0x2cc   :  { %10422 = vmatprep.subr.bf16.mxu1 %v16041_v37 }
 0x2ce   :  { %10563 = vmatpush3.bf16.msra.mxu0 %v11660_v26  ;;  %v11672_v26 = vld [vmem:[%s15908_s5 + $0x418] sm:$0xff]  }
 0x2cf   :  { %10423 = vmatpush3.bf16.msra.mxu1 %v11659_v38  ;;  %10564 = vmatprep.subr.bf16.mxu0 %v16041_v37  ;;  %v11671_v38 = vld [vmem:[%s15908_s5 + $0x258] sm:$0xff]  }
 0x2d0   :  { %10424 = vmatprep.subr.bf16.mxu1 %v16041_v37 }
 0x2d2   :  { %10565 = vmatpush3.bf16.msra.mxu0 %v11662_v1  ;;  %v11674_v1 = vld [vmem:[%s15908_s5 + $0x420] sm:$0xff]  }
 0x2d3   :  { %10425 = vmatpush3.bf16.msra.mxu1 %v11661_v63  ;;  %10566 = vmatprep.subr.bf16.mxu0 %v16041_v37  ;;  %v11673_v63 = vld [vmem:[%s15908_s5 + $0x260] sm:$0xff]  }
 0x2d4   :  { %10426 = vmatprep.subr.bf16.mxu1 %v16041_v37 }
 0x2d6   :  { %10567 = vmatpush3.bf16.msra.mxu0 %v11664_v56  ;;  %v11676_v56 = vld [vmem:[%s15908_s5 + $0x428] sm:$0xff]  }
 0x2d7   :  { %10427 = vmatpush3.bf16.msra.mxu1 %v11663_v11  ;;  %10592 = vmatprep.subr.bf16.mxu0 %v16041_v37  ;;  %v11675_v11 = vld [vmem:[%s15908_s5 + $0x268] sm:$0xff]  }
 0x2d8   :  { %10452 = vmatprep.subr.bf16.mxu1 %v16041_v37 }
 0x2d9   :  { %10569 = vmatmul.mubr.bf16.vlgmr.msra.gmra.mrb[84].mxu0 %v1324_v52  ;;  %v1182_v52 = vmax.f32 %v13428_v46, 0.0  ;;  %v11684_v46 = vld [vmem:[%s15908_s5 + $0x488] sm:$0xff]  }
 0x2da   :  { %10429 = vmatmul.mubr.bf16.vlgmr.msra.gmra.mrb[20].mxu1 %v1317_v27  ;;  %10593 = vmatpush3.bf16.msra.mxu0 %v11666_v36  ;;  %v11680_v36 = vld [vmem:[%s15908_s5 + $0x438] sm:$0xff]   ;;  %v1175_v27 = vmax.f32 %v13424_v39, 0.0  ;;  %v11683_v39 = vld [vmem:[%s15908_s5 + $0x2c8] sm:$0xff]  }
 0x2db   :  { %10453 = vmatpush3.bf16.msra.mxu1 %v11665_v53  ;;  %10594 = vmatprep.subr.bf16.mxu0 %v16041_v37  ;;  %v11679_v53 = vld [vmem:[%s15908_s5 + $0x278] sm:$0xff]  }
 0x2dc   :  { %10454 = vmatprep.subr.bf16.mxu1 %v16041_v37  ;;  %10468 = vmatprep.mubr.msk.bf16.mxu1 %vm12110_vm4, %v16041_v37 }
 0x2dd   :  { %10608 = vmatprep.mubr.msk.bf16.mxu0 %vm12110_vm4, %v16041_v37 }
 0x2de   :  { %10595 = vmatpush3.bf16.msra.mxu0 %v11668_v9  ;;  %v11682_v9 = vld [vmem:[%s15908_s5 + $0x480] sm:$0xff]  }
 0x2df   :  { %10455 = vmatpush3.bf16.msra.mxu1 %v11667_v44  ;;  %10596 = vmatprep.subr.bf16.mxu0 %v16041_v37  ;;  %v11681_v44 = vld [vmem:[%s15908_s5 + $0x2c0] sm:$0xff]  }
 0x2e0   :  { %10456 = vmatprep.subr.bf16.mxu1 %v16041_v37 }
 0x2e2   :  { %10597 = vmatpush3.bf16.msra.mxu0 %v11670_v30  ;;  %v3023_v30 = vpack.c.bf16 %v1182_v52, %v1182_v52 }
 0x2e3   :  { %10457 = vmatpush3.bf16.msra.mxu1 %v11669_v32  ;;  %10598 = vmatprep.subr.bf16.mxu0 %v16041_v37  ;;  %v1319_v32 = vpack.c.bf16 %v1175_v27, %v1175_v27 }
 0x2e4   :  { %10458 = vmatprep.subr.bf16.mxu1 %v16041_v37 }
 0x2e6   :  { %10599 = vmatpush3.bf16.msra.mxu0 %v11672_v26  ;;  %v11686_v26 = vld [vmem:[%s15908_s5 + $0x490] sm:$0xff]  }
 0x2e7   :  { %10459 = vmatpush3.bf16.msra.mxu1 %v11671_v38  ;;  %10600 = vmatprep.subr.bf16.mxu0 %v16041_v37  ;;  %v11685_v38 = vld [vmem:[%s15908_s5 + $0x2d0] sm:$0xff]  }
 0x2e8   :  { %10460 = vmatprep.subr.bf16.mxu1 %v16041_v37 }
 0x2ea   :  { %10601 = vmatpush3.bf16.msra.mxu0 %v11674_v1  ;;  %v11688_v1 = vld [vmem:[%s15908_s5 + $0x498] sm:$0xff]  }
 0x2eb   :  { %10461 = vmatpush3.bf16.msra.mxu1 %v11673_v63  ;;  %10602 = vmatprep.subr.bf16.mxu0 %v16041_v37  ;;  %v11687_v63 = vld [vmem:[%s15908_s5 + $0x2d8] sm:$0xff]  }
 0x2ec   :  { %10462 = vmatprep.subr.bf16.mxu1 %v16041_v37 }
 0x2ee   :  { %10603 = vmatpush3.bf16.msra.mxu0 %v11676_v56  ;;  %v11690_v56 = vld [vmem:[%s15908_s5 + $0x4a0] sm:$0xff]  }
 0x2ef   :  { %10463 = vmatpush3.bf16.msra.mxu1 %v11675_v11  ;;  %10604 = vmatprep.subr.bf16.mxu0 %v16041_v37  ;;  %v11689_v11 = vld [vmem:[%s15908_s5 + $0x2e0] sm:$0xff]  }
 0x2f0   :  { %10464 = vmatprep.subr.bf16.mxu1 %v16041_v37 }
 0x2f2   :  { %10605 = vmatpush3.bf16.msra.mxu0 %v11678_v35  ;;  %v11692_v35 = vld [vmem:[%s15908_s5 + $0x4a8] sm:$0xff]  }
 0x2f3   :  { %10465 = vmatpush3.bf16.msra.mxu1 %v11677_v49  ;;  %10606 = vmatprep.subr.bf16.mxu0 %v16041_v37  ;;  %v11691_v49 = vld [vmem:[%s15908_s5 + $0x2e8] sm:$0xff]  }
 0x2f4   :  { %10466 = vmatprep.subr.bf16.mxu1 %v16041_v37 }
 0x2f6   :  { %10607 = vmatpush3.bf16.msra.mxu0 %v11680_v36 }
 0x2f7   :  { %10467 = vmatpush3.bf16.msra.mxu1 %v11679_v53  ;;  %10632 = vmatprep.subr.bf16.mxu0 %v16041_v37 }
 0x2f8   :  { %10492 = vmatprep.subr.bf16.mxu1 %v16041_v37 }
 0x2f9   :  { %10609 = vmatmul.mubr.bf16.vlgmr.msra.gmra.mrb[88].mxu0 %v3023_v30  ;;  %v11694_v30 = vld [vmem:[%s15908_s5 + $0x4b0] sm:$0xff]  }
 0x2fa   :  { %10469 = vmatmul.mubr.bf16.vlgmr.msra.gmra.mrb[24].mxu1 %v1319_v32  ;;  %10633 = vmatpush3.bf16.msra.mxu0 %v11682_v9  ;;  %v11693_v32 = vld [vmem:[%s15908_s5 + $0x2f0] sm:$0xff]  }
 0x2fb   :  { %10493 = vmatpush3.bf16.msra.mxu1 %v11681_v44  ;;  %10634 = vmatprep.subr.bf16.mxu0 %v16041_v37 }
 0x2fc   :  { %10494 = vmatprep.subr.bf16.mxu1 %v16041_v37  ;;  %10508 = vmatprep.mubr.msk.bf16.mxu1 %vm12110_vm4, %v16041_v37 }
 0x2fd   :  { %10648 = vmatprep.mubr.msk.bf16.mxu0 %vm12110_vm4, %v16041_v37 }
 0x2fe   :  { %10635 = vmatpush3.bf16.msra.mxu0 %v11684_v46 }
 0x2ff   :  { %10495 = vmatpush3.bf16.msra.mxu1 %v11683_v39  ;;  %10636 = vmatprep.subr.bf16.mxu0 %v16041_v37 }
 0x300   :  { %10496 = vmatprep.subr.bf16.mxu1 %v16041_v37 }
 0x302   :  { %10637 = vmatpush3.bf16.msra.mxu0 %v11686_v26  ;;  %v11696_v26 = vld [vmem:[%s15908_s5 + $0x4b8] sm:$0xff]  }
 0x303   :  { %10497 = vmatpush3.bf16.msra.mxu1 %v11685_v38  ;;  %10638 = vmatprep.subr.bf16.mxu0 %v16041_v37  ;;  %v11695_v38 = vld [vmem:[%s15908_s5 + $0x2f8] sm:$0xff]  }
 0x304   :  { %10498 = vmatprep.subr.bf16.mxu1 %v16041_v37 }
 0x306   :  { %10639 = vmatpush3.bf16.msra.mxu0 %v11688_v1  ;;  %v1184_v1 = vmax.f32 %v13442_v25, 0.0  ;;  %v11700_v25 = vld [vmem:[%s15908_s5 + $0x508] sm:$0xff]  }
 0x307   :  { %10499 = vmatpush3.bf16.msra.mxu1 %v11687_v63  ;;  %10640 = vmatprep.subr.bf16.mxu0 %v16041_v37  ;;  %v1177_v63 = vmax.f32 %v13434_v50, 0.0  ;;  %v11699_v50 = vld [vmem:[%s15908_s5 + $0x348] sm:$0xff]  }
 0x308   :  { %10500 = vmatprep.subr.bf16.mxu1 %v16041_v37 }
 0x30a   :  { %10641 = vmatpush3.bf16.msra.mxu0 %v11690_v56  ;;  %v11698_v56 = vld [vmem:[%s15908_s5 + $0x500] sm:$0xff]  }
 0x30b   :  { %10501 = vmatpush3.bf16.msra.mxu1 %v11689_v11  ;;  %10642 = vmatprep.subr.bf16.mxu0 %v16041_v37  ;;  %v11697_v11 = vld [vmem:[%s15908_s5 + $0x340] sm:$0xff]  }
 0x30c   :  { %10502 = vmatprep.subr.bf16.mxu1 %v16041_v37  ;;  %v14096_v36 = vpop.f32.mrb[64].mxu0 }
 0x30d   :  { %v14094_v53 = vpop.f32.mrb[0].mxu1  ;;  %v10370_v52 = vpop.f32.mrb[65].mxu0 }
 0x30e   :  { %v10290_v27 = vpop.f32.mrb[1].mxu1  ;;  %10643 = vmatpush3.bf16.msra.mxu0 %v11692_v35  ;;  %v2019_v9 = vpop.f32.mrb[66].mxu0  ;;  %v3025_v35 = vpack.c.bf16 %v1184_v1, %v1184_v1  ;;  %v11702_v52 = vld [vmem:[%s15908_s5 + $0x510] sm:$0xff]  }
 0x30f   :  { %10503 = vmatpush3.bf16.msra.mxu1 %v11691_v49  ;;  %v1667_v44 = vpop.f32.mrb[2].mxu1  ;;  %v10371_v46 = vpop.f32.mrb[67].mxu0  ;;  %10644 = vmatprep.subr.bf16.mxu0 %v16041_v37  ;;  %v1321_v49 = vpack.c.bf16 %v1177_v63, %v1177_v63  ;;  %v11701_v27 = vld [vmem:[%s15908_s5 + $0x350] sm:$0xff]   ;;  %v11704_v9 = vld [vmem:[%s15908_s5 + $0x518] sm:$0xff]  }
 0x310   :  { %v10291_v39 = vpop.f32.mrb[3].mxu1  ;;  %10504 = vmatprep.subr.bf16.mxu1 %v16041_v37  ;;  %v11703_v44 = vld [vmem:[%s15908_s5 + $0x358] sm:$0xff]   ;;  %v11708_v46 = vld [vmem:[%s15908_s5 + $0x528] sm:$0xff]  }
 0x311   :  { %v11707_v39 = vld [vmem:[%s15908_s5 + $0x368] sm:$0xff]  }
 0x312   :  { %10645 = vmatpush3.bf16.msra.mxu0 %v11694_v30  ;;  %v11706_v30 = vld [vmem:[%s15908_s5 + $0x520] sm:$0xff]  }
 0x313   :  { %10505 = vmatpush3.bf16.msra.mxu1 %v11693_v32  ;;  %10646 = vmatprep.subr.bf16.mxu0 %v16041_v37  ;;  %v11705_v32 = vld [vmem:[%s15908_s5 + $0x360] sm:$0xff]  }
 0x314   :  { %10506 = vmatprep.subr.bf16.mxu1 %v16041_v37 }
 0x316   :  { %10647 = vmatpush3.bf16.msra.mxu0 %v11696_v26 }
 0x317   :  { %10507 = vmatpush3.bf16.msra.mxu1 %v11695_v38  ;;  %10672 = vmatprep.subr.bf16.mxu0 %v16041_v37 }
 0x318   :  { %10532 = vmatprep.subr.bf16.mxu1 %v16041_v37 }
 0x319   :  { %10649 = vmatmul.mubr.bf16.vlgmr.msra.gmra.mrb[92].mxu0 %v3025_v35  ;;  %v11709_v35 = vld [vmem:[%s15908_s5 + $0x370] sm:$0xff]  }
 0x31a   :  { %10509 = vmatmul.mubr.bf16.vlgmr.msra.gmra.mrb[28].mxu1 %v1321_v49  ;;  %10673 = vmatpush3.bf16.msra.mxu0 %v11698_v56 }
 0x31b   :  { %10533 = vmatpush3.bf16.msra.mxu1 %v11697_v11  ;;  %10674 = vmatprep.subr.bf16.mxu0 %v16041_v37 }
 0x31c   :  { %10534 = vmatprep.subr.bf16.mxu1 %v16041_v37  ;;  %10548 = vmatprep.mubr.msk.bf16.mxu1 %vm12110_vm4, %v16041_v37 }
 0x31d   :  { %10688 = vmatprep.mubr.msk.bf16.mxu0 %vm12110_vm4, %v16041_v37 }
 0x31e   :  { %10675 = vmatpush3.bf16.msra.mxu0 %v11700_v25 }
 0x31f   :  { %10535 = vmatpush3.bf16.msra.mxu1 %v11699_v50  ;;  %10676 = vmatprep.subr.bf16.mxu0 %v16041_v37  ;;  %v11710_v50 = vld [vmem:[%s15908_s5 + $0x530] sm:$0xff]  }
 0x320   :  { %10536 = vmatprep.subr.bf16.mxu1 %v16041_v37 }
 0x322   :  { %10677 = vmatpush3.bf16.msra.mxu0 %v11702_v52  ;;  %v11712_v52 = vld [vmem:[%s15908_s5 + $0x538] sm:$0xff]  }
 0x323   :  { %10537 = vmatpush3.bf16.msra.mxu1 %v11701_v27  ;;  %10678 = vmatprep.subr.bf16.mxu0 %v16041_v37 }
 0x324   :  { %10538 = vmatprep.subr.bf16.mxu1 %v16041_v37 }
 0x326   :  { %10679 = vmatpush3.bf16.msra.mxu0 %v11704_v9  ;;  %v1186_v9 = vmax.f32 %v13458_v18, 0.0  ;;  %v11716_v18 = vld [vmem:[%s15908_s5 + $0x588] sm:$0xff]  }
 0x327   :  { %10539 = vmatpush3.bf16.msra.mxu1 %v11703_v44  ;;  %10680 = vmatprep.subr.bf16.mxu0 %v16041_v37  ;;  %v1179_v44 = vmax.f32 %v13454_v54, 0.0  ;;  %v11715_v54 = vld [vmem:[%s15908_s5 + $0x3c8] sm:$0xff]  }
 0x328   :  { %10540 = vmatprep.subr.bf16.mxu1 %v16041_v37 }
 0x32a   :  { %10681 = vmatpush3.bf16.msra.mxu0 %v11706_v30  ;;  %v11714_v30 = vld [vmem:[%s15908_s5 + $0x580] sm:$0xff]  }
 0x32b   :  { %10541 = vmatpush3.bf16.msra.mxu1 %v11705_v32  ;;  %10682 = vmatprep.subr.bf16.mxu0 %v16041_v37  ;;  %v11713_v32 = vld [vmem:[%s15908_s5 + $0x3c0] sm:$0xff]  }
 0x32c   :  { %10542 = vmatprep.subr.bf16.mxu1 %v16041_v37  ;;  %v14168_v26 = vpop.f32.mrb[68].mxu0 }
 0x32d   :  { %v1752_v38 = vpop.f32.mrb[4].mxu1  ;;  %v10410_v11 = vpop.f32.mrb[69].mxu0 }
 0x32e   :  { %v14171_v63 = vadd.f32 %v1752_v38, %v14094_v53  ;;  %v10310_v1 = vpop.f32.mrb[5].mxu1  ;;  %v2195_v49 = vpop.f32.mrb[70].mxu0  ;;  %10683 = vmatpush3.bf16.msra.mxu0 %v11708_v46  ;;  %v11711_v53 = vld [vmem:[%s15908_s5 + $0x378] sm:$0xff]   ;;  %v3027_v46 = vpack.c.bf16 %v1186_v9, %v1186_v9  ;;  %v11717_v38 = vld [vmem:[%s15908_s5 + $0x3d0] sm:$0xff]  }
 0x32f   :  { %v1755_v56 = vpop.f32.mrb[6].mxu1  ;;  %10543 = vmatpush3.bf16.msra.mxu1 %v11707_v39  ;;  %v10411_v27 = vpop.f32.mrb[71].mxu0  ;;  %10684 = vmatprep.subr.bf16.mxu0 %v16041_v37  ;;  %v1323_v39 = vpack.c.bf16 %v1179_v44, %v1179_v44  ;;  %v11718_v1 = vld [vmem:[%s15908_s5 + $0x590] sm:$0xff]   ;;  %v11719_v11 = vld [vmem:[%s15908_s5 + $0x3d8] sm:$0xff]   ;;  %v11721_v49 = vld [vmem:[%s15908_s5 + $0x3e0] sm:$0xff]  }
 0x330   :  { %v10311_v25 = vpop.f32.mrb[7].mxu1  ;;  %10544 = vmatprep.subr.bf16.mxu1 %v16041_v37  ;;  %v11720_v56 = vld [vmem:[%s15908_s5 + $0x598] sm:$0xff]  }
 0x331   :  { %v11724_v25 = vld [vmem:[%s15908_s5 + $0x5a8] sm:$0xff]  }
 0x332   :  { %10685 = vmatpush3.bf16.msra.mxu0 %v11710_v50  ;;  %v11723_v50 = vld [vmem:[%s15908_s5 + $0x3e8] sm:$0xff]  }
 0x333   :  { %10545 = vmatpush3.bf16.msra.mxu1 %v11709_v35  ;;  %10686 = vmatprep.subr.bf16.mxu0 %v16041_v37  ;;  %v11722_v35 = vld [vmem:[%s15908_s5 + $0x5a0] sm:$0xff]  }
 0x334   :  { %10546 = vmatprep.subr.bf16.mxu1 %v16041_v37 }
 0x336   :  { %10687 = vmatpush3.bf16.msra.mxu0 %v11712_v52 }
 0x337   :  { %10547 = vmatpush3.bf16.msra.mxu1 %v11711_v53  ;;  %10712 = vmatprep.subr.bf16.mxu0 %v16041_v37 }
 0x338   :  { %10572 = vmatprep.subr.bf16.mxu1 %v16041_v37 }
 0x339   :  { %10689 = vmatmul.mubr.bf16.vlgmr.msra.gmra.mrb[96].mxu0 %v3027_v46  ;;  %v11726_v46 = vld [vmem:[%s15908_s5 + $0x5b0] sm:$0xff]  }
 0x33a   :  { %10549 = vmatmul.mubr.bf16.vlgmr.msra.gmra.mrb[32].mxu1 %v1323_v39  ;;  %10713 = vmatpush3.bf16.msra.mxu0 %v11714_v30  ;;  %v11725_v39 = vld [vmem:[%s15908_s5 + $0x3f0] sm:$0xff]  }
 0x33b   :  { %10573 = vmatpush3.bf16.msra.mxu1 %v11713_v32  ;;  %10714 = vmatprep.subr.bf16.mxu0 %v16041_v37 }
 0x33c   :  { %10574 = vmatprep.subr.bf16.mxu1 %v16041_v37  ;;  %10588 = vmatprep.mubr.msk.bf16.mxu1 %vm12110_vm4, %v16041_v37 }
 0x33d   :  { %10728 = vmatprep.mubr.msk.bf16.mxu0 %vm12110_vm4, %v16041_v37 }
 0x33e   :  { %10715 = vmatpush3.bf16.msra.mxu0 %v11716_v18 }
 0x33f   :  { %10575 = vmatpush3.bf16.msra.mxu1 %v11715_v54  ;;  %10716 = vmatprep.subr.bf16.mxu0 %v16041_v37 }
 0x340   :  { %10576 = vmatprep.subr.bf16.mxu1 %v16041_v37 }
 0x342   :  { %10717 = vmatpush3.bf16.msra.mxu0 %v11718_v1  ;;  %v1181_v1 = vmax.f32 %v13462_v31, 0.0  ;;  %v11731_v31 = vld [vmem:[%s15908_s5 + $0x448] sm:$0xff]  }
 0x343   :  { %10577 = vmatpush3.bf16.msra.mxu1 %v11717_v38  ;;  %10718 = vmatprep.subr.bf16.mxu0 %v16041_v37  ;;  %v11728_v38 = vld [vmem:[%s15908_s5 + $0x5b8] sm:$0xff]  }
 0x344   :  { %10578 = vmatprep.subr.bf16.mxu1 %v16041_v37 }
 0x346   :  { %10719 = vmatpush3.bf16.msra.mxu0 %v11720_v56  ;;  %v11729_v56 = vld [vmem:[%s15908_s5 + $0x440] sm:$0xff]  }
 0x347   :  { %10579 = vmatpush3.bf16.msra.mxu1 %v11719_v11  ;;  %10720 = vmatprep.subr.bf16.mxu0 %v16041_v37  ;;  %v1188_v11 = vmax.f32 %v13466_v48, 0.0  ;;  %v11732_v48 = vld [vmem:[%s15908_s5 + $0x608] sm:$0xff]  }
 0x348   :  { %10580 = vmatprep.subr.bf16.mxu1 %v16041_v37 }
 0x34a   :  { %10721 = vmatpush3.bf16.msra.mxu0 %v11722_v35  ;;  %v1325_v35 = vpack.c.bf16 %v1181_v1, %v1181_v1 }
 0x34b   :  { %10581 = vmatpush3.bf16.msra.mxu1 %v11721_v49  ;;  %10722 = vmatprep.subr.bf16.mxu0 %v16041_v37  ;;  %v11730_v49 = vld [vmem:[%s15908_s5 + $0x600] sm:$0xff]  }
 0x34c   :  { %10582 = vmatprep.subr.bf16.mxu1 %v16041_v37  ;;  %v14243_v53 = vpop.f32.mrb[72].mxu0 }
 0x34d   :  { %v1840_v27 = vpop.f32.mrb[8].mxu1  ;;  %v10450_v9 = vpop.f32.mrb[73].mxu0 }
 0x34e   :  { %v14246_v52 = vadd.f32 %v14171_v63, %v1840_v27  ;;  %v10330_v44 = vpop.f32.mrb[9].mxu1  ;;  %v2371_v30 = vpop.f32.mrb[74].mxu0  ;;  %10723 = vmatpush3.bf16.msra.mxu0 %v11724_v25  ;;  %v11727_v63 = vld [vmem:[%s15908_s5 + $0x3f8] sm:$0xff]   ;;  %v11733_v25 = vld [vmem:[%s15908_s5 + $0x450] sm:$0xff]  }
 0x34f   :  { %v1843_v32 = vpop.f32.mrb[10].mxu1  ;;  %10583 = vmatpush3.bf16.msra.mxu1 %v11723_v50  ;;  %v10451_v18 = vpop.f32.mrb[75].mxu0  ;;  %10724 = vmatprep.subr.bf16.mxu0 %v16041_v37  ;;  %v3029_v50 = vpack.c.bf16 %v1188_v11, %v1188_v11  ;;  %v11734_v27 = vld [vmem:[%s15908_s5 + $0x610] sm:$0xff]   ;;  %v11735_v44 = vld [vmem:[%s15908_s5 + $0x458] sm:$0xff]   ;;  %v11738_v30 = vld [vmem:[%s15908_s5 + $0x620] sm:$0xff]  }
 0x350   :  { %v10331_v54 = vpop.f32.mrb[11].mxu1  ;;  %10584 = vmatprep.subr.bf16.mxu1 %v16041_v37  ;;  %v11736_v9 = vld [vmem:[%s15908_s5 + $0x618] sm:$0xff]   ;;  %v11737_v32 = vld [vmem:[%s15908_s5 + $0x460] sm:$0xff]  }
 0x352   :  { %10725 = vmatpush3.bf16.msra.mxu0 %v11726_v46  ;;  %v11740_v46 = vld [vmem:[%s15908_s5 + $0x628] sm:$0xff]  }
 0x353   :  { %10585 = vmatpush3.bf16.msra.mxu1 %v11725_v39  ;;  %10726 = vmatprep.subr.bf16.mxu0 %v16041_v37  ;;  %v11739_v39 = vld [vmem:[%s15908_s5 + $0x468] sm:$0xff]  }
 0x354   :  { %10586 = vmatprep.subr.bf16.mxu1 %v16041_v37 }
 0x356   :  { %10727 = vmatpush3.bf16.msra.mxu0 %v11728_v38 }
 0x357   :  { %10587 = vmatpush3.bf16.msra.mxu1 %v11727_v63  ;;  %10752 = vmatprep.subr.bf16.mxu0 %v16041_v37 }
 0x358   :  { %10612 = vmatprep.subr.bf16.mxu1 %v16041_v37 }
 0x359   :  { %10729 = vmatmul.mubr.bf16.vlgmr.msra.gmra.mrb[100].mxu0 %v3029_v50 }
 0x35a   :  { %10589 = vmatmul.mubr.bf16.vlgmr.msra.gmra.mrb[36].mxu1 %v1325_v35  ;;  %10753 = vmatpush3.bf16.msra.mxu0 %v11730_v49  ;;  %v11741_v49 = vld [vmem:[%s15908_s5 + $0x470] sm:$0xff]  }
 0x35b   :  { %10613 = vmatpush3.bf16.msra.mxu1 %v11729_v56  ;;  %10754 = vmatprep.subr.bf16.mxu0 %v16041_v37  ;;  %v11742_v35 = vld [vmem:[%s15908_s5 + $0x630] sm:$0xff]  }
 0x35c   :  { %10614 = vmatprep.subr.bf16.mxu1 %v16041_v37  ;;  %10628 = vmatprep.mubr.msk.bf16.mxu1 %vm12110_vm4, %v16041_v37 }
 0x35d   :  { %10768 = vmatprep.mubr.msk.bf16.mxu0 %vm12110_vm4, %v16041_v37 }
 0x35e   :  { %10755 = vmatpush3.bf16.msra.mxu0 %v11732_v48  ;;  %v11743_v48 = vld [vmem:[%s15908_s5 + $0x478] sm:$0xff]  }
 0x35f   :  { %10615 = vmatpush3.bf16.msra.mxu1 %v11731_v31  ;;  %10756 = vmatprep.subr.bf16.mxu0 %v16041_v37 }
 0x360   :  { %10616 = vmatprep.subr.bf16.mxu1 %v16041_v37 }
 0x362   :  { %10757 = vmatpush3.bf16.msra.mxu0 %v11734_v27  ;;  %v1183_v27 = vmax.f32 %v13470_v40, 0.0  ;;  %v11747_v40 = vld [vmem:[%s15908_s5 + $0x4c8] sm:$0xff]  }
 0x363   :  { %10617 = vmatpush3.bf16.msra.mxu1 %v11733_v25  ;;  %10758 = vmatprep.subr.bf16.mxu0 %v16041_v37  ;;  %v11744_v25 = vld [vmem:[%s15908_s5 + $0x638] sm:$0xff]  }
 0x364   :  { %10618 = vmatprep.subr.bf16.mxu1 %v16041_v37 }
 0x366   :  { %10759 = vmatpush3.bf16.msra.mxu0 %v11736_v9  ;;  %v11746_v9 = vld [vmem:[%s15908_s5 + $0x680] sm:$0xff]  }
 0x367   :  { %10619 = vmatpush3.bf16.msra.mxu1 %v11735_v44  ;;  %10760 = vmatprep.subr.bf16.mxu0 %v16041_v37  ;;  %v1190_v44 = vmax.f32 %v13474_v22, 0.0  ;;  %v11748_v22 = vld [vmem:[%s15908_s5 + $0x688] sm:$0xff]  }
 0x368   :  { %10620 = vmatprep.subr.bf16.mxu1 %v16041_v37 }
 0x36a   :  { %10761 = vmatpush3.bf16.msra.mxu0 %v11738_v30  ;;  %v3031_v30 = vpack.c.bf16 %v1190_v44, %v1190_v44  ;;  %v11757_v44 = vld [vmem:[%s15908_s5 + $0x4f0] sm:$0xff]  }
 0x36b   :  { %10621 = vmatpush3.bf16.msra.mxu1 %v11737_v32  ;;  %10762 = vmatprep.subr.bf16.mxu0 %v16041_v37  ;;  %v3024_v32 = vpack.c.bf16 %v1183_v27, %v1183_v27 }
 0x36c   :  { %10622 = vmatprep.subr.bf16.mxu1 %v16041_v37  ;;  %v14318_v18 = vpop.f32.mrb[76].mxu0 }
 0x36d   :  { %v1928_v54 = vpop.f32.mrb[12].mxu1  ;;  %v10490_v1 = vpop.f32.mrb[77].mxu0 }
 0x36e   :  { %v2992_v63 = vadd.f32 %v14246_v52, %v1928_v54  ;;  %v10350_v38 = vpop.f32.mrb[13].mxu1  ;;  %v2547_v56 = vpop.f32.mrb[78].mxu0  ;;  %10763 = vmatpush3.bf16.msra.mxu0 %v11740_v46  ;;  %v11750_v46 = vld [vmem:[%s15908_s5 + $0x690] sm:$0xff]   ;;  %v11751_v54 = vld [vmem:[%s15908_s5 + $0x4d8] sm:$0xff]   ;;  %v11754_v1 = vld [vmem:[%s15908_s5 + $0x6a0] sm:$0xff]  }
 0x36f   :  { %v1931_v11 = vpop.f32.mrb[14].mxu1  ;;  %10623 = vmatpush3.bf16.msra.mxu1 %v11739_v39  ;;  %v10491_v31 = vpop.f32.mrb[79].mxu0  ;;  %10764 = vmatprep.subr.bf16.mxu0 %v16041_v37  ;;  %v11749_v39 = vld [vmem:[%s15908_s5 + $0x4d0] sm:$0xff]   ;;  %v11753_v38 = vld [vmem:[%s15908_s5 + $0x4e0] sm:$0xff]   ;;  %v11756_v56 = vld [vmem:[%s15908_s5 + $0x6a8] sm:$0xff]  }
 0x370   :  { %v10351_v50 = vpop.f32.mrb[15].mxu1  ;;  %10624 = vmatprep.subr.bf16.mxu1 %v16041_v37  ;;  %v2993_v52 = vadd.f32 %v2992_v63, %v14096_v36  ;;  %v11745_v36 = vld [vmem:[%s15908_s5 + $0x4c0] sm:$0xff]   ;;  %v11752_v63 = vld [vmem:[%s15908_s5 + $0x698] sm:$0xff]   ;;  %v11755_v11 = vld [vmem:[%s15908_s5 + $0x4e8] sm:$0xff]  }
 0x372   :  { %10765 = vmatpush3.bf16.msra.mxu0 %v11742_v35 }
 0x373   :  { %10625 = vmatpush3.bf16.msra.mxu1 %v11741_v49  ;;  %10766 = vmatprep.subr.bf16.mxu0 %v16041_v37 }
 0x374   :  { %10626 = vmatprep.subr.bf16.mxu1 %v16041_v37 }
 0x376   :  { %10767 = vmatpush3.bf16.msra.mxu0 %v11744_v25 }
 0x377   :  { %10627 = vmatpush3.bf16.msra.mxu1 %v11743_v48  ;;  %10792 = vmatprep.subr.bf16.mxu0 %v16041_v37 }
 0x378   :  { %10652 = vmatprep.subr.bf16.mxu1 %v16041_v37 }
 0x379   :  { %10769 = vmatmul.mubr.bf16.vlgmr.msra.gmra.mrb[104].mxu0 %v3031_v30  ;;  %v11759_v30 = vld [vmem:[%s15908_s5 + $0x4f8] sm:$0xff]  }
 0x37a   :  { %10629 = vmatmul.mubr.bf16.vlgmr.msra.gmra.mrb[40].mxu1 %v3024_v32  ;;  %10793 = vmatpush3.bf16.msra.mxu0 %v11746_v9 }
 0x37b   :  { %10653 = vmatpush3.bf16.msra.mxu1 %v11745_v36  ;;  %10794 = vmatprep.subr.bf16.mxu0 %v16041_v37  ;;  %v11758_v36 = vld [vmem:[%s15908_s5 + $0x6b0] sm:$0xff]  }
 0x37c   :  { %10654 = vmatprep.subr.bf16.mxu1 %v16041_v37  ;;  %10668 = vmatprep.mubr.msk.bf16.mxu1 %vm12110_vm4, %v16041_v37 }
 0x37d   :  { %10808 = vmatprep.mubr.msk.bf16.mxu0 %vm12110_vm4, %v16041_v37 }
 0x37e   :  { %10795 = vmatpush3.bf16.msra.mxu0 %v11748_v22  ;;  %v16056_v22 = vld [vmem:[#allocation15_spill] sm:$0xff] }
 0x37f   :  { %10655 = vmatpush3.bf16.msra.mxu1 %v11747_v40  ;;  %10796 = vmatprep.subr.bf16.mxu0 %v16041_v37  ;;  %v11760_v40 = vld [vmem:[%s15908_s5 + $0x6b8] sm:$0xff]  }
 0x380   :  { %10656 = vmatprep.subr.bf16.mxu1 %v16041_v37 }
 0x382   :  { %10797 = vmatpush3.bf16.msra.mxu0 %v11750_v46  ;;  %v16057_v46 = vld [vmem:[#allocation16_spill] sm:$0xff] }
 0x383   :  { %10657 = vmatpush3.bf16.msra.mxu1 %v11749_v39  ;;  %10798 = vmatprep.subr.bf16.mxu0 %v16041_v37  ;;  %v1185_v39 = vmax.f32 %v16056_v22, 0.0 }
 0x384   :  { %10658 = vmatprep.subr.bf16.mxu1 %v16041_v37 }
 0x386   :  { %10799 = vmatpush3.bf16.msra.mxu0 %v11752_v63  ;;  %v11762_v63 = vld [vmem:[%s15908_s5 + $0x700] sm:$0xff]  }
 0x387   :  { %10659 = vmatpush3.bf16.msra.mxu1 %v11751_v54  ;;  %10800 = vmatprep.subr.bf16.mxu0 %v16041_v37  ;;  %v1192_v54 = vmax.f32 %v16057_v46, 0.0 }
 0x388   :  { %10660 = vmatprep.subr.bf16.mxu1 %v16041_v37 }
 0x38a   :  { %10801 = vmatpush3.bf16.msra.mxu0 %v11754_v1  ;;  %v3033_v1 = vpack.c.bf16 %v1192_v54, %v1192_v54  ;;  %v11773_v54 = vld [vmem:[%s15908_s5 + $0x570] sm:$0xff]  }
 0x38b   :  { %10661 = vmatpush3.bf16.msra.mxu1 %v11753_v38  ;;  %10802 = vmatprep.subr.bf16.mxu0 %v16041_v37  ;;  %v3026_v38 = vpack.c.bf16 %v1185_v39, %v1185_v39 }
 0x38c   :  { %10662 = vmatprep.subr.bf16.mxu1 %v16041_v37  ;;  %v14392_v35 = vpop.f32.mrb[80].mxu0 }
 0x38d   :  { %v2104_v49 = vpop.f32.mrb[16].mxu1  ;;  %v10530_v48 = vpop.f32.mrb[81].mxu0 }
 0x38e   :  { %v2994_v50 = vadd.f32 %v2993_v52, %v2104_v49  ;;  %v10390_v31 = vpop.f32.mrb[17].mxu1  ;;  %v2723_v27 = vpop.f32.mrb[82].mxu0  ;;  %10803 = vmatpush3.bf16.msra.mxu0 %v11756_v56  ;;  %v11764_v56 = vld [vmem:[%s15908_s5 + $0x708] sm:$0xff]   ;;  %v11765_v49 = vld [vmem:[%s15908_s5 + $0x550] sm:$0xff]   ;;  %v11768_v48 = vld [vmem:[%s15908_s5 + $0x718] sm:$0xff]  }
 0x38f   :  { %v2107_v25 = vpop.f32.mrb[18].mxu1  ;;  %10663 = vmatpush3.bf16.msra.mxu1 %v11755_v11  ;;  %v10531_v32 = vpop.f32.mrb[83].mxu0  ;;  %10804 = vmatprep.subr.bf16.mxu0 %v16041_v37  ;;  %v11763_v11 = vld [vmem:[%s15908_s5 + $0x548] sm:$0xff]   ;;  %v11767_v31 = vld [vmem:[%s15908_s5 + $0x558] sm:$0xff]   ;;  %v11770_v27 = vld [vmem:[%s15908_s5 + $0x720] sm:$0xff]  }
 0x390   :  { %v10391_v9 = vpop.f32.mrb[19].mxu1  ;;  %10664 = vmatprep.subr.bf16.mxu1 %v16041_v37  ;;  %v2995_v52 = vadd.f32 %v2994_v50, %v14168_v26  ;;  %v11761_v26 = vld [vmem:[%s15908_s5 + $0x540] sm:$0xff]   ;;  %v11766_v50 = vld [vmem:[%s15908_s5 + $0x710] sm:$0xff]  }
 0x391   :  { %v11769_v25 = vld [vmem:[%s15908_s5 + $0x560] sm:$0xff]  }
 0x392   :  { %10805 = vmatpush3.bf16.msra.mxu0 %v11758_v36  ;;  %v11772_v36 = vld [vmem:[%s15908_s5 + $0x728] sm:$0xff]  }
 0x393   :  { %10665 = vmatpush3.bf16.msra.mxu1 %v11757_v44  ;;  %10806 = vmatprep.subr.bf16.mxu0 %v16041_v37  ;;  %v11771_v44 = vld [vmem:[%s15908_s5 + $0x568] sm:$0xff]  }
 0x394   :  { %10666 = vmatprep.subr.bf16.mxu1 %v16041_v37 }
 0x396   :  { %10807 = vmatpush3.bf16.msra.mxu0 %v11760_v40 }
 0x397   :  { %10667 = vmatpush3.bf16.msra.mxu1 %v11759_v30  ;;  %10832 = vmatprep.subr.bf16.mxu0 %v16041_v37 }
 0x398   :  { %10692 = vmatprep.subr.bf16.mxu1 %v16041_v37 }
 0x399   :  { %10809 = vmatmul.mubr.bf16.vlgmr.msra.gmra.mrb[108].mxu0 %v3033_v1  ;;  %v11775_v1 = vld [vmem:[%s15908_s5 + $0x578] sm:$0xff]  }
 0x39a   :  { %10669 = vmatmul.mubr.bf16.vlgmr.msra.gmra.mrb[44].mxu1 %v3026_v38  ;;  %10833 = vmatpush3.bf16.msra.mxu0 %v11762_v63 }
 0x39b   :  { %10693 = vmatpush3.bf16.msra.mxu1 %v11761_v26  ;;  %10834 = vmatprep.subr.bf16.mxu0 %v16041_v37  ;;  %v11774_v26 = vld [vmem:[%s15908_s5 + $0x730] sm:$0xff]  }
 0x39c   :  { %10694 = vmatprep.subr.bf16.mxu1 %v16041_v37  ;;  %10708 = vmatprep.mubr.msk.bf16.mxu1 %vm12110_vm4, %v16041_v37 }
 0x39d   :  { %10848 = vmatprep.mubr.msk.bf16.mxu0 %vm12110_vm4, %v16041_v37 }
 0x39e   :  { %10835 = vmatpush3.bf16.msra.mxu0 %v11764_v56  ;;  %v1187_v56 = vmax.f32 %v13494_v6, 0.0  ;;  %v11779_v6 = vld [vmem:[%s15908_s5 + $0x5c8] sm:$0xff]  }
 0x39f   :  { %10695 = vmatpush3.bf16.msra.mxu1 %v11763_v11  ;;  %10836 = vmatprep.subr.bf16.mxu0 %v16041_v37  ;;  %v11776_v11 = vld [vmem:[%s15908_s5 + $0x738] sm:$0xff]  }
 0x3a0   :  { %10696 = vmatprep.subr.bf16.mxu1 %v16041_v37 }
 0x3a2   :  { %10837 = vmatpush3.bf16.msra.mxu0 %v11766_v50 }
 0x3a3   :  { %10697 = vmatpush3.bf16.msra.mxu1 %v11765_v49  ;;  %10838 = vmatprep.subr.bf16.mxu0 %v16041_v37  ;;  %v16058_v49 = vld [vmem:[#allocation22_spill] sm:$0xff] }
 0x3a4   :  { %10698 = vmatprep.subr.bf16.mxu1 %v16041_v37  ;;  %v1194_v50 = vmax.f32 %v16058_v49, 0.0  ;;  %v11789_v49 = vld [vmem:[%s15908_s5 + $0x5f0] sm:$0xff]  }
 0x3a6   :  { %10839 = vmatpush3.bf16.msra.mxu0 %v11768_v48  ;;  %v3028_v48 = vpack.c.bf16 %v1187_v56, %v1187_v56 }
 0x3a7   :  { %10699 = vmatpush3.bf16.msra.mxu1 %v11767_v31  ;;  %10840 = vmatprep.subr.bf16.mxu0 %v16041_v37  ;;  %v11778_v31 = vld [vmem:[%s15908_s5 + $0x780] sm:$0xff]  }
 0x3a8   :  { %10700 = vmatprep.subr.bf16.mxu1 %v16041_v37 }
 0x3aa   :  { %10841 = vmatpush3.bf16.msra.mxu0 %v11770_v27  ;;  %v11780_v27 = vld [vmem:[%s15908_s5 + $0x788] sm:$0xff]  }
 0x3ab   :  { %10701 = vmatpush3.bf16.msra.mxu1 %v11769_v25  ;;  %10842 = vmatprep.subr.bf16.mxu0 %v16041_v37  ;;  %v3035_v25 = vpack.c.bf16 %v1194_v50, %v1194_v50  ;;  %v11790_v50 = vld [vmem:[%s15908_s5 + $0x7b0] sm:$0xff]  }
 0x3ac   :  { %10702 = vmatprep.subr.bf16.mxu1 %v16041_v37  ;;  %v14465_v32 = vpop.f32.mrb[84].mxu0 }
 0x3ad   :  { %v2280_v9 = vpop.f32.mrb[20].mxu1  ;;  %v10570_v22 = vpop.f32.mrb[85].mxu0 }
 0x3ae   :  { %v2996_v30 = vadd.f32 %v2995_v52, %v2280_v9  ;;  %v10430_v40 = vpop.f32.mrb[21].mxu1  ;;  %v2899_v46 = vpop.f32.mrb[86].mxu0  ;;  %10843 = vmatpush3.bf16.msra.mxu0 %v11772_v36  ;;  %v11782_v36 = vld [vmem:[%s15908_s5 + $0x790] sm:$0xff]   ;;  %v11783_v9 = vld [vmem:[%s15908_s5 + $0x5d8] sm:$0xff]   ;;  %v11786_v22 = vld [vmem:[%s15908_s5 + $0x7a0] sm:$0xff]  }
 0x3af   :  { %v2283_v39 = vpop.f32.mrb[22].mxu1  ;;  %10703 = vmatpush3.bf16.msra.mxu1 %v11771_v44  ;;  %v10571_v38 = vpop.f32.mrb[87].mxu0  ;;  %10844 = vmatprep.subr.bf16.mxu0 %v16041_v37  ;;  %v11781_v44 = vld [vmem:[%s15908_s5 + $0x5d0] sm:$0xff]   ;;  %v11785_v40 = vld [vmem:[%s15908_s5 + $0x5e0] sm:$0xff]   ;;  %v11788_v46 = vld [vmem:[%s15908_s5 + $0x7a8] sm:$0xff]  }
 0x3b0   :  { %v10431_v63 = vpop.f32.mrb[23].mxu1  ;;  %10704 = vmatprep.subr.bf16.mxu1 %v16041_v37  ;;  %v2997_v52 = vadd.f32 %v2996_v30, %v14243_v53  ;;  %v11777_v53 = vld [vmem:[%s15908_s5 + $0x5c0] sm:$0xff]   ;;  %v11784_v30 = vld [vmem:[%s15908_s5 + $0x798] sm:$0xff]   ;;  %v11787_v39 = vld [vmem:[%s15908_s5 + $0x5e8] sm:$0xff]  }
 0x3b2   :  { %10845 = vmatpush3.bf16.msra.mxu0 %v11774_v26 }
 0x3b3   :  { %10705 = vmatpush3.bf16.msra.mxu1 %v11773_v54  ;;  %10846 = vmatprep.subr.bf16.mxu0 %v16041_v37 }
 0x3b4   :  { %10706 = vmatprep.subr.bf16.mxu1 %v16041_v37 }
 0x3b6   :  { %10847 = vmatpush3.bf16.msra.mxu0 %v11776_v11 }
 0x3b7   :  { %10707 = vmatpush3.bf16.msra.mxu1 %v11775_v1  ;;  %10872 = vmatprep.subr.bf16.mxu0 %v16041_v37 }
 0x3b8   :  { %10732 = vmatprep.subr.bf16.mxu1 %v16041_v37 }
 0x3b9   :  { %10849 = vmatmul.mubr.bf16.vlgmr.msra.gmra.mrb[112].mxu0 %v3035_v25  ;;  %v11792_v25 = vld [vmem:[%s15908_s5 + $0x7b8] sm:$0xff]  }
 0x3ba   :  { %10709 = vmatmul.mubr.bf16.vlgmr.msra.gmra.mrb[48].mxu1 %v3028_v48  ;;  %10873 = vmatpush3.bf16.msra.mxu0 %v11778_v31  ;;  %v11791_v48 = vld [vmem:[%s15908_s5 + $0x5f8] sm:$0xff]  }
 0x3bb   :  { %10733 = vmatpush3.bf16.msra.mxu1 %v11777_v53  ;;  %10874 = vmatprep.subr.bf16.mxu0 %v16041_v37 }
 0x3bc   :  { %10734 = vmatprep.subr.bf16.mxu1 %v16041_v37  ;;  %10748 = vmatprep.mubr.msk.bf16.mxu1 %vm12110_vm4, %v16041_v37 }
 0x3bd   :  { %10888 = vmatprep.mubr.msk.bf16.mxu0 %vm12110_vm4, %v16041_v37 }
 0x3be   :  { %10875 = vmatpush3.bf16.msra.mxu0 %v11780_v27  ;;  %v1196_v27 = vmax.f32 %v13514_v4, 0.0  ;;  %v11796_v4 = vld [vmem:[%s15908_s5 + $0x808] sm:$0xff]  }
 0x3bf   :  { %10735 = vmatpush3.bf16.msra.mxu1 %v11779_v6  ;;  %10876 = vmatprep.subr.bf16.mxu0 %v16041_v37  ;;  %v1189_v6 = vmax.f32 %v13510_v58, 0.0  ;;  %v11795_v58 = vld [vmem:[%s15908_s5 + $0x648] sm:$0xff]  }
 0x3c0   :  { %10736 = vmatprep.subr.bf16.mxu1 %v16041_v37 }
 0x3c2   :  { %10877 = vmatpush3.bf16.msra.mxu0 %v11782_v36  ;;  %v3030_v36 = vpack.c.bf16 %v1189_v6, %v1189_v6 }
 0x3c3   :  { %10737 = vmatpush3.bf16.msra.mxu1 %v11781_v44  ;;  %10878 = vmatprep.subr.bf16.mxu0 %v16041_v37  ;;  %v11794_v44 = vld [vmem:[%s15908_s5 + $0x800] sm:$0xff]  }
 0x3c4   :  { %10738 = vmatprep.subr.bf16.mxu1 %v16041_v37 }
 0x3c6   :  { %10879 = vmatpush3.bf16.msra.mxu0 %v11784_v30  ;;  %v11797_v30 = vld [vmem:[%s15908_s5 + $0x650] sm:$0xff]  }
 0x3c7   :  { %10739 = vmatpush3.bf16.msra.mxu1 %v11783_v9  ;;  %10880 = vmatprep.subr.bf16.mxu0 %v16041_v37  ;;  %v3037_v9 = vpack.c.bf16 %v1196_v27, %v1196_v27 }
 0x3c8   :  { %10740 = vmatprep.subr.bf16.mxu1 %v16041_v37 }
 0x3ca   :  { %10881 = vmatpush3.bf16.msra.mxu0 %v11786_v22  ;;  %v11799_v22 = vld [vmem:[%s15908_s5 + $0x658] sm:$0xff]  }
 0x3cb   :  { %10741 = vmatpush3.bf16.msra.mxu1 %v11785_v40  ;;  %10882 = vmatprep.subr.bf16.mxu0 %v16041_v37  ;;  %v11798_v40 = vld [vmem:[%s15908_s5 + $0x810] sm:$0xff]  }
 0x3cc   :  { %10742 = vmatprep.subr.bf16.mxu1 %v16041_v37  ;;  %v14538_v26 = vpop.f32.mrb[88].mxu0 }
 0x3cd   :  { %v2456_v54 = vpop.f32.mrb[24].mxu1  ;;  %v10610_v1 = vpop.f32.mrb[89].mxu0 }
 0x3ce   :  { %v2998_v63 = vadd.f32 %v2997_v52, %v2456_v54  ;;  %v10470_v38 = vpop.f32.mrb[25].mxu1  ;;  %v3381_v56 = vpop.f32.mrb[90].mxu0  ;;  %10883 = vmatpush3.bf16.msra.mxu0 %v11788_v46  ;;  %v11801_v46 = vld [vmem:[%s15908_s5 + $0x660] sm:$0xff]  }
 0x3cf   :  { %v2459_v11 = vpop.f32.mrb[26].mxu1  ;;  %10743 = vmatpush3.bf16.msra.mxu1 %v11787_v39  ;;  %v10611_v31 = vpop.f32.mrb[91].mxu0  ;;  %10884 = vmatprep.subr.bf16.mxu0 %v16041_v37  ;;  %v11800_v39 = vld [vmem:[%s15908_s5 + $0x818] sm:$0xff]   ;;  %v11802_v54 = vld [vmem:[%s15908_s5 + $0x820] sm:$0xff]   ;;  %v11804_v38 = vld [vmem:[%s15908_s5 + $0x828] sm:$0xff]  }
 0x3d0   :  { %v10471_v53 = vpop.f32.mrb[27].mxu1  ;;  %10744 = vmatprep.subr.bf16.mxu1 %v16041_v37  ;;  %v2999_v52 = vadd.f32 %v2998_v63, %v14318_v18  ;;  %v11793_v18 = vld [vmem:[%s15908_s5 + $0x640] sm:$0xff]   ;;  %v11803_v63 = vld [vmem:[%s15908_s5 + $0x668] sm:$0xff]  }
 0x3d2   :  { %10885 = vmatpush3.bf16.msra.mxu0 %v11790_v50 }
 0x3d3   :  { %10745 = vmatpush3.bf16.msra.mxu1 %v11789_v49  ;;  %10886 = vmatprep.subr.bf16.mxu0 %v16041_v37 }
 0x3d4   :  { %10746 = vmatprep.subr.bf16.mxu1 %v16041_v37 }
 0x3d6   :  { %10887 = vmatpush3.bf16.msra.mxu0 %v11792_v25  ;;  %v11806_v25 = vld [vmem:[%s15908_s5 + $0x830] sm:$0xff]  }
 0x3d7   :  { %10747 = vmatpush3.bf16.msra.mxu1 %v11791_v48  ;;  %10912 = vmatprep.subr.bf16.mxu0 %v16041_v37  ;;  %v11805_v48 = vld [vmem:[%s15908_s5 + $0x670] sm:$0xff]  }
 0x3d8   :  { %10772 = vmatprep.subr.bf16.mxu1 %v16041_v37 }
 0x3d9   :  { %10889 = vmatmul.mubr.bf16.vlgmr.msra.gmra.mrb[116].mxu0 %v3037_v9  ;;  %v1198_v9 = vmax.f32 %v13526_v8, 0.0  ;;  %v11812_v8 = vld [vmem:[%s15908_s5 + $0x888] sm:$0xff]  }
 0x3da   :  { %10749 = vmatmul.mubr.bf16.vlgmr.msra.gmra.mrb[52].mxu1 %v3030_v36  ;;  %10913 = vmatpush3.bf16.msra.mxu0 %v11794_v44  ;;  %v11808_v44 = vld [vmem:[%s15908_s5 + $0x838] sm:$0xff]   ;;  %v1191_v36 = vmax.f32 %v13522_v28, 0.0  ;;  %v11811_v28 = vld [vmem:[%s15908_s5 + $0x6c8] sm:$0xff]  }
 0x3db   :  { %10773 = vmatpush3.bf16.msra.mxu1 %v11793_v18  ;;  %10914 = vmatprep.subr.bf16.mxu0 %v16041_v37  ;;  %v11807_v18 = vld [vmem:[%s15908_s5 + $0x678] sm:$0xff]  }
 0x3dc   :  { %10774 = vmatprep.subr.bf16.mxu1 %v16041_v37  ;;  %10788 = vmatprep.mubr.msk.bf16.mxu1 %vm12110_vm4, %v16041_v37 }
 0x3dd   :  { %10928 = vmatprep.mubr.msk.bf16.mxu0 %vm12110_vm4, %v16041_v37 }
 0x3de   :  { %10915 = vmatpush3.bf16.msra.mxu0 %v11796_v4  ;;  %v3032_v4 = vpack.c.bf16 %v1191_v36, %v1191_v36  ;;  %v11823_v36 = vld [vmem:[%s15908_s5 + $0x6f8] sm:$0xff]  }
 0x3df   :  { %10775 = vmatpush3.bf16.msra.mxu1 %v11795_v58  ;;  %10916 = vmatprep.subr.bf16.mxu0 %v16041_v37  ;;  %v11810_v58 = vld [vmem:[%s15908_s5 + $0x880] sm:$0xff]  }
 0x3e0   :  { %10776 = vmatprep.subr.bf16.mxu1 %v16041_v37 }
 0x3e2   :  { %10917 = vmatpush3.bf16.msra.mxu0 %v11798_v40  ;;  %v11813_v40 = vld [vmem:[%s15908_s5 + $0x6d0] sm:$0xff]  }
 0x3e3   :  { %10777 = vmatpush3.bf16.msra.mxu1 %v11797_v30  ;;  %10918 = vmatprep.subr.bf16.mxu0 %v16041_v37  ;;  %v4737_v30 = vpack.c.bf16 %v1198_v9, %v1198_v9  ;;  %v11824_v9 = vld [vmem:[%s15908_s5 + $0x8b8] sm:$0xff]  }
 0x3e4   :  { %10778 = vmatprep.subr.bf16.mxu1 %v16041_v37 }
 0x3e6   :  { %10919 = vmatpush3.bf16.msra.mxu0 %v11800_v39  ;;  %v11815_v39 = vld [vmem:[%s15908_s5 + $0x6d8] sm:$0xff]  }
 0x3e7   :  { %10779 = vmatpush3.bf16.msra.mxu1 %v11799_v22  ;;  %10920 = vmatprep.subr.bf16.mxu0 %v16041_v37  ;;  %v11814_v22 = vld [vmem:[%s15908_s5 + $0x890] sm:$0xff]  }
 0x3e8   :  { %10780 = vmatprep.subr.bf16.mxu1 %v16041_v37 }
 0x3ea   :  { %10921 = vmatpush3.bf16.msra.mxu0 %v11802_v54  ;;  %v11817_v54 = vld [vmem:[%s15908_s5 + $0x6e0] sm:$0xff]  }
 0x3eb   :  { %10781 = vmatpush3.bf16.msra.mxu1 %v11801_v46  ;;  %10922 = vmatprep.subr.bf16.mxu0 %v16041_v37  ;;  %v11816_v46 = vld [vmem:[%s15908_s5 + $0x898] sm:$0xff]  }
 0x3ec   :  { %10782 = vmatprep.subr.bf16.mxu1 %v16041_v37  ;;  %v14611_v11 = vpop.f32.mrb[92].mxu0 }
 0x3ed   :  { %v2632_v1 = vpop.f32.mrb[28].mxu1  ;;  %v10650_v50 = vpop.f32.mrb[93].mxu0 }
 0x3ee   :  { %v3000_v56 = vadd.f32 %v2999_v52, %v2632_v1  ;;  %v10510_v49 = vpop.f32.mrb[29].mxu1  ;;  %v3557_v31 = vpop.f32.mrb[94].mxu0  ;;  %10923 = vmatpush3.bf16.msra.mxu0 %v11804_v38  ;;  %v11819_v38 = vld [vmem:[%s15908_s5 + $0x6e8] sm:$0xff]  }
 0x3ef   :  { %v2635_v53 = vpop.f32.mrb[30].mxu1  ;;  %10783 = vmatpush3.bf16.msra.mxu1 %v11803_v63  ;;  %v10651_v27 = vpop.f32.mrb[95].mxu0  ;;  %10924 = vmatprep.subr.bf16.mxu0 %v16041_v37  ;;  %v11818_v63 = vld [vmem:[%s15908_s5 + $0x8a0] sm:$0xff]   ;;  %v11820_v1 = vld [vmem:[%s15908_s5 + $0x8a8] sm:$0xff]  }
 0x3f0   :  { %v10511_v6 = vpop.f32.mrb[31].mxu1  ;;  %10784 = vmatprep.subr.bf16.mxu1 %v16041_v37  ;;  %v3001_v52 = vadd.f32 %v3000_v56, %v14392_v35  ;;  %v11809_v35 = vld [vmem:[%s15908_s5 + $0x6c0] sm:$0xff]   ;;  %v11822_v27 = vld [vmem:[%s15908_s5 + $0x8b0] sm:$0xff]  }
 0x3f1   :  { %v11821_v6 = vld [vmem:[%s15908_s5 + $0x6f0] sm:$0xff]  }
 0x3f2   :  { %10925 = vmatpush3.bf16.msra.mxu0 %v11806_v25 }
 0x3f3   :  { %10785 = vmatpush3.bf16.msra.mxu1 %v11805_v48  ;;  %10926 = vmatprep.subr.bf16.mxu0 %v16041_v37 }
 0x3f4   :  { %10786 = vmatprep.subr.bf16.mxu1 %v16041_v37 }
 0x3f6   :  { %10927 = vmatpush3.bf16.msra.mxu0 %v11808_v44 }
 0x3f7   :  { %10787 = vmatpush3.bf16.msra.mxu1 %v11807_v18  ;;  %10952 = vmatprep.subr.bf16.mxu0 %v16041_v37 }
 0x3f8   :  { %10812 = vmatprep.subr.bf16.mxu1 %v16041_v37 }
 0x3f9   :  { %10929 = vmatmul.mubr.bf16.vlgmr.msra.gmra.mrb[120].mxu0 %v4737_v30 }
 0x3fa   :  { %10789 = vmatmul.mubr.bf16.vlgmr.msra.gmra.mrb[56].mxu1 %v3032_v4  ;;  %10953 = vmatpush3.bf16.msra.mxu0 %v11810_v58  ;;  %v1200_v58 = vmax.f32 %v13534_v62, 0.0  ;;  %v11826_v4 = vld [vmem:[%s15908_s5 + $0x900] sm:$0xff]   ;;  %v11828_v62 = vld [vmem:[%s15908_s5 + $0x908] sm:$0xff]  }
 0x3fb   :  { %10813 = vmatpush3.bf16.msra.mxu1 %v11809_v35  ;;  %10954 = vmatprep.subr.bf16.mxu0 %v16041_v37  ;;  %v1193_v35 = vmax.f32 %v13530_v43, 0.0  ;;  %v11827_v43 = vld [vmem:[%s15908_s5 + $0x748] sm:$0xff]  }
 0x3fc   :  { %10814 = vmatprep.subr.bf16.mxu1 %v16041_v37  ;;  %10828 = vmatprep.mubr.msk.bf16.mxu1 %vm12110_vm4, %v16041_v37 }
 0x3fd   :  { %10968 = vmatprep.mubr.msk.bf16.mxu0 %vm12110_vm4, %v16041_v37  ;;  %v3034_v30 = vpack.c.bf16 %v1193_v35, %v1193_v35  ;;  %v1202_v35 = vmax.f32 %v13552_v59, 0.0  ;;  %v11844_v59 = vld [vmem:[%s15908_s5 + $0x988] sm:$0xff]  }
 0x3fe   :  { %10955 = vmatpush3.bf16.msra.mxu0 %v11812_v8  ;;  %v11829_v8 = vld [vmem:[%s15908_s5 + $0x750] sm:$0xff]  }
 0x3ff   :  { %10815 = vmatpush3.bf16.msra.mxu1 %v11811_v28  ;;  %10956 = vmatprep.subr.bf16.mxu0 %v16041_v37  ;;  %v4739_v28 = vpack.c.bf16 %v1200_v58, %v1200_v58  ;;  %v11841_v58 = vld [vmem:[%s15908_s5 + $0x7c0] sm:$0xff]  }
 0x400   :  { %10816 = vmatprep.subr.bf16.mxu1 %v16041_v37 }
 0x402   :  { %10957 = vmatpush3.bf16.msra.mxu0 %v11814_v22  ;;  %v11831_v22 = vld [vmem:[%s15908_s5 + $0x758] sm:$0xff]  }
 0x403   :  { %10817 = vmatpush3.bf16.msra.mxu1 %v11813_v40  ;;  %10958 = vmatprep.subr.bf16.mxu0 %v16041_v37  ;;  %v11830_v40 = vld [vmem:[%s15908_s5 + $0x910] sm:$0xff]  }
 0x404   :  { %10818 = vmatprep.subr.bf16.mxu1 %v16041_v37 }
 0x406   :  { %10959 = vmatpush3.bf16.msra.mxu0 %v11816_v46  ;;  %v11833_v46 = vld [vmem:[%s15908_s5 + $0x760] sm:$0xff]  }
 0x407   :  { %10819 = vmatpush3.bf16.msra.mxu1 %v11815_v39  ;;  %10960 = vmatprep.subr.bf16.mxu0 %v16041_v37  ;;  %v11832_v39 = vld [vmem:[%s15908_s5 + $0x918] sm:$0xff]  }
 0x408   :  { %10820 = vmatprep.subr.bf16.mxu1 %v16041_v37 }
 0x40a   :  { %10961 = vmatpush3.bf16.msra.mxu0 %v11818_v63  ;;  %v11835_v63 = vld [vmem:[%s15908_s5 + $0x768] sm:$0xff]  }
 0x40b   :  { %10821 = vmatpush3.bf16.msra.mxu1 %v11817_v54  ;;  %10962 = vmatprep.subr.bf16.mxu0 %v16041_v37  ;;  %v11834_v54 = vld [vmem:[%s15908_s5 + $0x920] sm:$0xff]  }
 0x40c   :  { %10822 = vmatprep.subr.bf16.mxu1 %v16041_v37  ;;  %v14684_v49 = vpop.f32.mrb[96].mxu0 }
 0x40d   :  { %v2808_v56 = vpop.f32.mrb[32].mxu1  ;;  %v10690_v31 = vpop.f32.mrb[97].mxu0 }
 0x40e   :  { %v3002_v50 = vadd.f32 %v3001_v52, %v2808_v56  ;;  %v10550_v53 = vpop.f32.mrb[33].mxu1  ;;  %v3733_v25 = vpop.f32.mrb[98].mxu0  ;;  %10963 = vmatpush3.bf16.msra.mxu0 %v11820_v1 }
 0x40f   :  { %v2811_v48 = vpop.f32.mrb[34].mxu1  ;;  %10823 = vmatpush3.bf16.msra.mxu1 %v11819_v38  ;;  %v10691_v44 = vpop.f32.mrb[99].mxu0  ;;  %10964 = vmatprep.subr.bf16.mxu0 %v16041_v37  ;;  %v11836_v38 = vld [vmem:[%s15908_s5 + $0x928] sm:$0xff]  }
 0x410   :  { %v10551_v18 = vpop.f32.mrb[35].mxu1  ;;  %10824 = vmatprep.subr.bf16.mxu1 %v16041_v37  ;;  %v3003_v52 = vadd.f32 %v3002_v50, %v14465_v32  ;;  %v11825_v32 = vld [vmem:[%s15908_s5 + $0x740] sm:$0xff]  }
 0x412   :  { %10965 = vmatpush3.bf16.msra.mxu0 %v11822_v27  ;;  %v11838_v27 = vld [vmem:[%s15908_s5 + $0x930] sm:$0xff]  }
 0x413   :  { %10825 = vmatpush3.bf16.msra.mxu1 %v11821_v6  ;;  %10966 = vmatprep.subr.bf16.mxu0 %v16041_v37  ;;  %v11837_v6 = vld [vmem:[%s15908_s5 + $0x770] sm:$0xff]  }
 0x414   :  { %10826 = vmatprep.subr.bf16.mxu1 %v16041_v37 }
 0x416   :  { %10967 = vmatpush3.bf16.msra.mxu0 %v11824_v9  ;;  %v1195_v9 = vmax.f32 %v13548_v15, 0.0  ;;  %v11843_v15 = vld [vmem:[%s15908_s5 + $0x7c8] sm:$0xff]  }
 0x417   :  { %10827 = vmatpush3.bf16.msra.mxu1 %v11823_v36  ;;  %10992 = vmatprep.subr.bf16.mxu0 %v16041_v37  ;;  %v11840_v36 = vld [vmem:[%s15908_s5 + $0x938] sm:$0xff]  }
 0x418   :  { %10852 = vmatprep.subr.bf16.mxu1 %v16041_v37 }
 0x419   :  { %10969 = vmatmul.mubr.bf16.vlgmr.msra.gmra.mrb[124].mxu0 %v4739_v28  ;;  %v11845_v28 = vld [vmem:[%s15908_s5 + $0x7d0] sm:$0xff]  }
 0x41a   :  { %10829 = vmatmul.mubr.bf16.vlgmr.msra.gmra.mrb[60].mxu1 %v3034_v30  ;;  %10993 = vmatpush3.bf16.msra.mxu0 %v11826_v4  ;;  %v3036_v4 = vpack.c.bf16 %v1195_v9, %v1195_v9  ;;  %v4741_v30 = vpack.c.bf16 %v1202_v35, %v1202_v35  ;;  %v1204_v9 = vmax.f32 %v13560_v34, 0.0  ;;  %v11858_v35 = vld [vmem:[%s15908_s5 + $0xa00] sm:$0xff]   ;;  %v11860_v34 = vld [vmem:[%s15908_s5 + $0xa08] sm:$0xff]  }
 0x41b   :  { %10853 = vmatpush3.bf16.msra.mxu1 %v11825_v32  ;;  %10994 = vmatprep.subr.bf16.mxu0 %v16041_v37  ;;  %v11842_v32 = vld [vmem:[%s15908_s5 + $0x980] sm:$0xff]  }
 0x41c   :  { %10854 = vmatprep.subr.bf16.mxu1 %v16041_v37  ;;  %10868 = vmatprep.mubr.msk.bf16.mxu1 %vm12110_vm4, %v16041_v37 }
 0x41d   :  { %11008 = vmatprep.mubr.msk.bf16.mxu0 %vm12110_vm4, %v16041_v37 }
 0x41e   :  { %10995 = vmatpush3.bf16.msra.mxu0 %v11828_v62  ;;  %v11847_v62 = vld [vmem:[%s15908_s5 + $0x7d8] sm:$0xff]  }
 0x41f   :  { %10855 = vmatpush3.bf16.msra.mxu1 %v11827_v43  ;;  %10996 = vmatprep.subr.bf16.mxu0 %v16041_v37  ;;  %v11846_v43 = vld [vmem:[%s15908_s5 + $0x990] sm:$0xff]  }
 0x420   :  { %10856 = vmatprep.subr.bf16.mxu1 %v16041_v37 }
 0x422   :  { %10997 = vmatpush3.bf16.msra.mxu0 %v11830_v40  ;;  %v11849_v40 = vld [vmem:[%s15908_s5 + $0x7e0] sm:$0xff]  }
 0x423   :  { %10857 = vmatpush3.bf16.msra.mxu1 %v11829_v8  ;;  %10998 = vmatprep.subr.bf16.mxu0 %v16041_v37  ;;  %v11848_v8 = vld [vmem:[%s15908_s5 + $0x998] sm:$0xff]  }
 0x424   :  { %10858 = vmatprep.subr.bf16.mxu1 %v16041_v37 }
 0x426   :  { %10999 = vmatpush3.bf16.msra.mxu0 %v11832_v39  ;;  %v11851_v39 = vld [vmem:[%s15908_s5 + $0x7e8] sm:$0xff]  }
 0x427   :  { %10859 = vmatpush3.bf16.msra.mxu1 %v11831_v22  ;;  %11000 = vmatprep.subr.bf16.mxu0 %v16041_v37  ;;  %v11850_v22 = vld [vmem:[%s15908_s5 + $0x9a0] sm:$0xff]  }
 0x428   :  { %10860 = vmatprep.subr.bf16.mxu1 %v16041_v37 }
 0x42a   :  { %11001 = vmatpush3.bf16.msra.mxu0 %v11834_v54 }
 0x42b   :  { %10861 = vmatpush3.bf16.msra.mxu1 %v11833_v46  ;;  %11002 = vmatprep.subr.bf16.mxu0 %v16041_v37  ;;  %v11852_v46 = vld [vmem:[%s15908_s5 + $0x9a8] sm:$0xff]  }
 0x42c   :  { %10862 = vmatprep.subr.bf16.mxu1 %v16041_v37  ;;  %v14757_v56 = vpop.f32.mrb[100].mxu0 }
 0x42d   :  { %v2984_v1 = vpop.f32.mrb[36].mxu1  ;;  %v10730_v31 = vpop.f32.mrb[101].mxu0 }
 0x42e   :  { %v14759_v50 = vadd.f32 %v3003_v52, %v2984_v1  ;;  %v10590_v53 = vpop.f32.mrb[37].mxu1  ;;  %v3909_v25 = vpop.f32.mrb[102].mxu0  ;;  %11003 = vmatpush3.bf16.msra.mxu0 %v11836_v38  ;;  %v11839_v52 = vld [vmem:[%s15908_s5 + $0x778] sm:$0xff]  }
 0x42f   :  { %v2987_v48 = vpop.f32.mrb[38].mxu1  ;;  %10863 = vmatpush3.bf16.msra.mxu1 %v11835_v63  ;;  %v10731_v44 = vpop.f32.mrb[103].mxu0  ;;  %11004 = vmatprep.subr.bf16.mxu0 %v16041_v37  ;;  %v11853_v25 = vld [vmem:[%s15908_s5 + $0x7f0] sm:$0xff]  }
 0x430   :  { %v10591_v18 = vpop.f32.mrb[39].mxu1  ;;  %10864 = vmatprep.subr.bf16.mxu1 %v16041_v37  ;;  %v11855_v44 = vld [vmem:[%s15908_s5 + $0x7f8] sm:$0xff]  }
 0x432   :  { %11005 = vmatpush3.bf16.msra.mxu0 %v11838_v27 }
 0x433   :  { %10865 = vmatpush3.bf16.msra.mxu1 %v11837_v6  ;;  %11006 = vmatprep.subr.bf16.mxu0 %v16041_v37  ;;  %v11854_v6 = vld [vmem:[%s15908_s5 + $0x9b0] sm:$0xff]  }
 0x434   :  { %10866 = vmatprep.subr.bf16.mxu1 %v16041_v37 }
 0x436   :  { %11007 = vmatpush3.bf16.msra.mxu0 %v11840_v36  ;;  %v1197_v36 = vmax.f32 %v13556_v10, 0.0  ;;  %v11859_v10 = vld [vmem:[%s15908_s5 + $0x848] sm:$0xff]  }
 0x437   :  { %10867 = vmatpush3.bf16.msra.mxu1 %v11839_v52  ;;  %11032 = vmatprep.subr.bf16.mxu0 %v16041_v37  ;;  %v11856_v52 = vld [vmem:[%s15908_s5 + $0x9b8] sm:$0xff]  }
 0x438   :  { %10892 = vmatprep.subr.bf16.mxu1 %v16041_v37 }
 0x439   :  { %11009 = vmatmul.mubr.bf16.vlgmr.msra.gmra.mrb[128].mxu0 %v4741_v30  ;;  %v11862_v30 = vld [vmem:[%s15908_s5 + $0xa10] sm:$0xff]  }
 0x43a   :  { %10869 = vmatmul.mubr.bf16.vlgmr.msra.gmra.mrb[64].mxu1 %v3036_v4  ;;  %11033 = vmatpush3.bf16.msra.mxu0 %v11842_v32  ;;  %v4743_v32 = vpack.c.bf16 %v1204_v9, %v1204_v9  ;;  %v11861_v4 = vld [vmem:[%s15908_s5 + $0x850] sm:$0xff]  }
 0x43b   :  { %10893 = vmatpush3.bf16.msra.mxu1 %v11841_v58  ;;  %11034 = vmatprep.subr.bf16.mxu0 %v16041_v37  ;;  %v3038_v58 = vpack.c.bf16 %v1197_v36, %v1197_v36 }
 0x43c   :  { %10894 = vmatprep.subr.bf16.mxu1 %v16041_v37  ;;  %10908 = vmatprep.mubr.msk.bf16.mxu1 %vm12110_vm4, %v16041_v37 }
 0x43d   :  { %11048 = vmatprep.mubr.msk.bf16.mxu0 %vm12110_vm4, %v16041_v37 }
 0x43e   :  { %11035 = vmatpush3.bf16.msra.mxu0 %v11844_v59  ;;  %v11864_v59 = vld [vmem:[%s15908_s5 + $0xa18] sm:$0xff]  }
 0x43f   :  { %10895 = vmatpush3.bf16.msra.mxu1 %v11843_v15  ;;  %11036 = vmatprep.subr.bf16.mxu0 %v16041_v37  ;;  %v11863_v15 = vld [vmem:[%s15908_s5 + $0x858] sm:$0xff]  }
 0x440   :  { %10896 = vmatprep.subr.bf16.mxu1 %v16041_v37 }
 0x442   :  { %11037 = vmatpush3.bf16.msra.mxu0 %v11846_v43  ;;  %v11866_v43 = vld [vmem:[%s15908_s5 + $0xa20] sm:$0xff]  }
 0x443   :  { %10897 = vmatpush3.bf16.msra.mxu1 %v11845_v28  ;;  %11038 = vmatprep.subr.bf16.mxu0 %v16041_v37  ;;  %v11865_v28 = vld [vmem:[%s15908_s5 + $0x860] sm:$0xff]  }
 0x444   :  { %10898 = vmatprep.subr.bf16.mxu1 %v16041_v37 }
 0x446   :  { %11039 = vmatpush3.bf16.msra.mxu0 %v11848_v8  ;;  %v11868_v8 = vld [vmem:[%s15908_s5 + $0xa28] sm:$0xff]  }
 0x447   :  { %10899 = vmatpush3.bf16.msra.mxu1 %v11847_v62  ;;  %11040 = vmatprep.subr.bf16.mxu0 %v16041_v37  ;;  %v11867_v62 = vld [vmem:[%s15908_s5 + $0x868] sm:$0xff]  }
 0x448   :  { %10900 = vmatprep.subr.bf16.mxu1 %v16041_v37 }
 0x44a   :  { %11041 = vmatpush3.bf16.msra.mxu0 %v11850_v22 }
 0x44b   :  { %10901 = vmatpush3.bf16.msra.mxu1 %v11849_v40  ;;  %11042 = vmatprep.subr.bf16.mxu0 %v16041_v37 }
 0x44c   :  { %10902 = vmatprep.subr.bf16.mxu1 %v16041_v37  ;;  %v14831_v63 = vpop.f32.mrb[104].mxu0 }
 0x44d   :  { %v3466_v54 = vpop.f32.mrb[40].mxu1  ;;  %v10770_v53 = vpop.f32.mrb[105].mxu0 }
 0x44e   :  { %v4704_v38 = vadd.f32 %v3466_v54, %v14538_v26  ;;  %v10630_v1 = vpop.f32.mrb[41].mxu1  ;;  %v4085_v48 = vpop.f32.mrb[106].mxu0  ;;  %11043 = vmatpush3.bf16.msra.mxu0 %v11852_v46  ;;  %v11869_v53 = vld [vmem:[%s15908_s5 + $0x870] sm:$0xff]  }
 0x44f   :  { %v3469_v31 = vpop.f32.mrb[42].mxu1  ;;  %10903 = vmatpush3.bf16.msra.mxu1 %v11851_v39  ;;  %v10771_v18 = vpop.f32.mrb[107].mxu0  ;;  %11044 = vmatprep.subr.bf16.mxu0 %v16041_v37 }
 0x450   :  { %v10631_v27 = vpop.f32.mrb[43].mxu1  ;;  %10904 = vmatprep.subr.bf16.mxu1 %v16041_v37  ;;  %v4705_v26 = vadd.f32 %v4704_v38, %v14611_v11  ;;  %v11857_v11 = vld [vmem:[%s15908_s5 + $0x840] sm:$0xff]   ;;  %v11870_v31 = vld [vmem:[%s15908_s5 + $0xa30] sm:$0xff]   ;;  %v11872_v18 = vld [vmem:[%s15908_s5 + $0xa38] sm:$0xff]  }
 0x451   :  { %v11871_v27 = vld [vmem:[%s15908_s5 + $0x878] sm:$0xff]  }
 0x452   :  { %11045 = vmatpush3.bf16.msra.mxu0 %v11854_v6 }
 0x453   :  { %10905 = vmatpush3.bf16.msra.mxu1 %v11853_v25  ;;  %11046 = vmatprep.subr.bf16.mxu0 %v16041_v37 }
 0x454   :  { %10906 = vmatprep.subr.bf16.mxu1 %v16041_v37 }
 0x456   :  { %11047 = vmatpush3.bf16.msra.mxu0 %v11856_v52  ;;  %v11874_v52 = vld [vmem:[%s15908_s5 + $0xa80] sm:$0xff]  }
 0x457   :  { %10907 = vmatpush3.bf16.msra.mxu1 %v11855_v44  ;;  %11072 = vmatprep.subr.bf16.mxu0 %v16041_v37  ;;  %v1206_v44 = vmax.f32 %v13568_v3, 0.0  ;;  %v11876_v3 = vld [vmem:[%s15908_s5 + $0xa88] sm:$0xff]  }
 0x458   :  { %10932 = vmatprep.subr.bf16.mxu1 %v16041_v37 }
 0x459   :  { %11049 = vmatmul.mubr.bf16.vlgmr.msra.gmra.mrb[132].mxu0 %v4743_v32  ;;  %v4745_v9 = vpack.c.bf16 %v1206_v44, %v1206_v44  ;;  %v11880_v32 = vld [vmem:[%s15908_s5 + $0xa98] sm:$0xff]   ;;  %v11894_v44 = vld [vmem:[%s15908_s5 + $0xb10] sm:$0xff]  }
 0x45a   :  { %10909 = vmatmul.mubr.bf16.vlgmr.msra.gmra.mrb[68].mxu1 %v3038_v58  ;;  %11073 = vmatpush3.bf16.msra.mxu0 %v11858_v35  ;;  %v11878_v35 = vld [vmem:[%s15908_s5 + $0xa90] sm:$0xff]   ;;  %v11879_v58 = vld [vmem:[%s15908_s5 + $0x8d8] sm:$0xff]  }
 0x45b   :  { %10933 = vmatpush3.bf16.msra.mxu1 %v11857_v11  ;;  %11074 = vmatprep.subr.bf16.mxu0 %v16041_v37  ;;  %v11877_v11 = vld [vmem:[%s15908_s5 + $0x8d0] sm:$0xff]  }
 0x45c   :  { %10934 = vmatprep.subr.bf16.mxu1 %v16041_v37  ;;  %10948 = vmatprep.mubr.msk.bf16.mxu1 %vm12110_vm4, %v16041_v37 }
 0x45d   :  { %11088 = vmatprep.mubr.msk.bf16.mxu0 %vm12110_vm4, %v16041_v37 }
 0x45e   :  { %11075 = vmatpush3.bf16.msra.mxu0 %v11860_v34  ;;  %v11882_v34 = vld [vmem:[%s15908_s5 + $0xaa0] sm:$0xff]  }
 0x45f   :  { %10935 = vmatpush3.bf16.msra.mxu1 %v11859_v10  ;;  %11076 = vmatprep.subr.bf16.mxu0 %v16041_v37  ;;  %v11881_v10 = vld [vmem:[%s15908_s5 + $0x8e0] sm:$0xff]  }
 0x460   :  { %10936 = vmatprep.subr.bf16.mxu1 %v16041_v37 }
 0x462   :  { %11077 = vmatpush3.bf16.msra.mxu0 %v11862_v30  ;;  %v11884_v30 = vld [vmem:[%s15908_s5 + $0xaa8] sm:$0xff]  }
 0x463   :  { %10937 = vmatpush3.bf16.msra.mxu1 %v11861_v4  ;;  %11078 = vmatprep.subr.bf16.mxu0 %v16041_v37  ;;  %v11883_v4 = vld [vmem:[%s15908_s5 + $0x8e8] sm:$0xff]  }
 0x464   :  { %10938 = vmatprep.subr.bf16.mxu1 %v16041_v37 }
 0x466   :  { %11079 = vmatpush3.bf16.msra.mxu0 %v11864_v59 }
 0x467   :  { %10939 = vmatpush3.bf16.msra.mxu1 %v11863_v15  ;;  %11080 = vmatprep.subr.bf16.mxu0 %v16041_v37 }
 0x468   :  { %10940 = vmatprep.subr.bf16.mxu1 %v16041_v37 }
 0x46a   :  { %11081 = vmatpush3.bf16.msra.mxu0 %v11866_v43 }
 0x46b   :  { %10941 = vmatpush3.bf16.msra.mxu1 %v11865_v28  ;;  %11082 = vmatprep.subr.bf16.mxu0 %v16041_v37 }
 0x46c   :  { %10942 = vmatprep.subr.bf16.mxu1 %v16041_v37  ;;  %v14905_v22 = vpop.f32.mrb[108].mxu0 }
 0x46d   :  { %v3642_v40 = vpop.f32.mrb[44].mxu1  ;;  %v10810_v54 = vpop.f32.mrb[109].mxu0 }
 0x46e   :  { %v4706_v39 = vadd.f32 %v4705_v26, %v3642_v40  ;;  %v10670_v46 = vpop.f32.mrb[45].mxu1  ;;  %v4261_v1 = vpop.f32.mrb[110].mxu0  ;;  %11083 = vmatpush3.bf16.msra.mxu0 %v11868_v8  ;;  %v1199_v26 = vmax.f32 %v13564_v24, 0.0  ;;  %v11875_v24 = vld [vmem:[%s15908_s5 + $0x8c8] sm:$0xff]  }
 0x46f   :  { %v3645_v38 = vpop.f32.mrb[46].mxu1  ;;  %10943 = vmatpush3.bf16.msra.mxu1 %v11867_v62  ;;  %v10811_v25 = vpop.f32.mrb[111].mxu0  ;;  %11084 = vmatprep.subr.bf16.mxu0 %v16041_v37  ;;  %v11886_v46 = vld [vmem:[%s15908_s5 + $0xab0] sm:$0xff]  }
 0x470   :  { %v10671_v48 = vpop.f32.mrb[47].mxu1  ;;  %10944 = vmatprep.subr.bf16.mxu1 %v16041_v37  ;;  %v4707_v6 = vadd.f32 %v4706_v39, %v14684_v49  ;;  %v11873_v49 = vld [vmem:[%s15908_s5 + $0x8c0] sm:$0xff]   ;;  %v4738_v36 = vpack.c.bf16 %v1199_v26, %v1199_v26  ;;  %v11885_v39 = vld [vmem:[%s15908_s5 + $0x8f0] sm:$0xff]   ;;  %v1208_v25 = vmax.f32 %v13583_v47, 0.0  ;;  %v11892_v47 = vld [vmem:[%s15908_s5 + $0xb08] sm:$0xff]  }
 0x471   :  { %v1201_v48 = vmax.f32 %v13579_v16, 0.0  ;;  %v11891_v16 = vld [vmem:[%s15908_s5 + $0x948] sm:$0xff]   ;;  %v11893_v26 = vld [vmem:[%s15908_s5 + $0x950] sm:$0xff]  }
 0x472   :  { %11085 = vmatpush3.bf16.msra.mxu0 %v11870_v31  ;;  %v11888_v31 = vld [vmem:[%s15908_s5 + $0xab8] sm:$0xff]  }
 0x473   :  { %10945 = vmatpush3.bf16.msra.mxu1 %v11869_v53  ;;  %11086 = vmatprep.subr.bf16.mxu0 %v16041_v37  ;;  %v11887_v53 = vld [vmem:[%s15908_s5 + $0x8f8] sm:$0xff]  }
 0x474   :  { %10946 = vmatprep.subr.bf16.mxu1 %v16041_v37 }
 0x476   :  { %11087 = vmatpush3.bf16.msra.mxu0 %v11872_v18  ;;  %v4747_v18 = vpack.c.bf16 %v1208_v25, %v1208_v25  ;;  %v11912_v25 = vld [vmem:[%s15908_s5 + $0xb98] sm:$0xff]  }
 0x477   :  { %10947 = vmatpush3.bf16.msra.mxu1 %v11871_v27  ;;  %11112 = vmatprep.subr.bf16.mxu0 %v16041_v37  ;;  %v4740_v27 = vpack.c.bf16 %v1201_v48, %v1201_v48  ;;  %v11911_v48 = vld [vmem:[%s15908_s5 + $0x9d8] sm:$0xff]  }
 0x478   :  { %10972 = vmatprep.subr.bf16.mxu1 %v16041_v37 }
 0x479   :  { %11089 = vmatmul.mubr.bf16.vlgmr.msra.gmra.mrb[136].mxu0 %v4745_v9  ;;  %v11898_v9 = vld [vmem:[%s15908_s5 + $0xb20] sm:$0xff]  }
 0x47a   :  { %10949 = vmatmul.mubr.bf16.vlgmr.msra.gmra.mrb[72].mxu1 %v4738_v36  ;;  %11113 = vmatpush3.bf16.msra.mxu0 %v11874_v52  ;;  %v11896_v52 = vld [vmem:[%s15908_s5 + $0xb18] sm:$0xff]   ;;  %v11897_v36 = vld [vmem:[%s15908_s5 + $0x960] sm:$0xff]  }
 0x47b   :  { %10973 = vmatpush3.bf16.msra.mxu1 %v11873_v49  ;;  %11114 = vmatprep.subr.bf16.mxu0 %v16041_v37  ;;  %v11895_v49 = vld [vmem:[%s15908_s5 + $0x958] sm:$0xff]  }
 0x47c   :  { %10974 = vmatprep.subr.bf16.mxu1 %v16041_v37  ;;  %10988 = vmatprep.mubr.msk.bf16.mxu1 %vm12110_vm4, %v16041_v37 }
 0x47d   :  { %11128 = vmatprep.mubr.msk.bf16.mxu0 %vm12110_vm4, %v16041_v37 }
 0x47e   :  { %11115 = vmatpush3.bf16.msra.mxu0 %v11876_v3  ;;  %v11900_v3 = vld [vmem:[%s15908_s5 + $0xb28] sm:$0xff]  }
 0x47f   :  { %10975 = vmatpush3.bf16.msra.mxu1 %v11875_v24  ;;  %11116 = vmatprep.subr.bf16.mxu0 %v16041_v37  ;;  %v11899_v24 = vld [vmem:[%s15908_s5 + $0x968] sm:$0xff]  }
 0x480   :  { %10976 = vmatprep.subr.bf16.mxu1 %v16041_v37 }
 0x482   :  { %11117 = vmatpush3.bf16.msra.mxu0 %v11878_v35 }
 0x483   :  { %10977 = vmatpush3.bf16.msra.mxu1 %v11877_v11  ;;  %11118 = vmatprep.subr.bf16.mxu0 %v16041_v37 }
 0x484   :  { %10978 = vmatprep.subr.bf16.mxu1 %v16041_v37 }
 0x486   :  { %11119 = vmatpush3.bf16.msra.mxu0 %v11880_v32 }
 0x487   :  { %10979 = vmatpush3.bf16.msra.mxu1 %v11879_v58  ;;  %11120 = vmatprep.subr.bf16.mxu0 %v16041_v37 }
 0x488   :  { %10980 = vmatprep.subr.bf16.mxu1 %v16041_v37 }
 0x48a   :  { %11121 = vmatpush3.bf16.msra.mxu0 %v11882_v34 }
 0x48b   :  { %10981 = vmatpush3.bf16.msra.mxu1 %v11881_v10  ;;  %11122 = vmatprep.subr.bf16.mxu0 %v16041_v37 }
 0x48c   :  { %10982 = vmatprep.subr.bf16.mxu1 %v16041_v37  ;;  %v14978_v59 = vpop.f32.mrb[112].mxu0 }
 0x48d   :  { %v3818_v15 = vpop.f32.mrb[48].mxu1  ;;  %v10850_v62 = vpop.f32.mrb[113].mxu0 }
 0x48e   :  { %v4708_v28 = vadd.f32 %v4707_v6, %v3818_v15  ;;  %v10710_v43 = vpop.f32.mrb[49].mxu1  ;;  %v4437_v40 = vpop.f32.mrb[114].mxu0  ;;  %11123 = vmatpush3.bf16.msra.mxu0 %v11884_v30  ;;  %v11890_v6 = vld [vmem:[%s15908_s5 + $0xb00] sm:$0xff]   ;;  %v11901_v30 = vld [vmem:[%s15908_s5 + $0x970] sm:$0xff]  }
 0x48f   :  { %v3821_v8 = vpop.f32.mrb[50].mxu1  ;;  %10983 = vmatpush3.bf16.msra.mxu1 %v11883_v4  ;;  %v10851_v38 = vpop.f32.mrb[115].mxu0  ;;  %11124 = vmatprep.subr.bf16.mxu0 %v16041_v37  ;;  %v11902_v15 = vld [vmem:[%s15908_s5 + $0xb30] sm:$0xff]   ;;  %v11904_v40 = vld [vmem:[%s15908_s5 + $0xb38] sm:$0xff]  }
 0x490   :  { %v10711_v54 = vpop.f32.mrb[51].mxu1  ;;  %10984 = vmatprep.subr.bf16.mxu1 %v16041_v37  ;;  %v4709_v1 = vadd.f32 %v4708_v28, %v14757_v56  ;;  %v11889_v56 = vld [vmem:[%s15908_s5 + $0x940] sm:$0xff]   ;;  %v11903_v8 = vld [vmem:[%s15908_s5 + $0x978] sm:$0xff]  }
 0x491   :  { %v11906_v54 = vld [vmem:[%s15908_s5 + $0xb80] sm:$0xff]  }
 0x492   :  { %11125 = vmatpush3.bf16.msra.mxu0 %v11886_v46  ;;  %v1210_v46 = vmax.f32 %v13600_v61, 0.0  ;;  %v11908_v61 = vld [vmem:[%s15908_s5 + $0xb88] sm:$0xff]  }
 0x493   :  { %10985 = vmatpush3.bf16.msra.mxu1 %v11885_v39  ;;  %11126 = vmatprep.subr.bf16.mxu0 %v16041_v37  ;;  %v1203_v39 = vmax.f32 %v13590_v60, 0.0  ;;  %v11907_v60 = vld [vmem:[%s15908_s5 + $0x9c8] sm:$0xff]  }
 0x494   :  { %10986 = vmatprep.subr.bf16.mxu1 %v16041_v37 }
 0x495   :  { %v4742_v38 = vpack.c.bf16 %v1203_v39, %v1203_v39  ;;  %v11929_v39 = vld [vmem:[%s15908_s5 + $0xa60] sm:$0xff]  }
 0x496   :  { %11127 = vmatpush3.bf16.msra.mxu0 %v11888_v31  ;;  %v11910_v31 = vld [vmem:[%s15908_s5 + $0xb90] sm:$0xff]  }
 0x497   :  { %10987 = vmatpush3.bf16.msra.mxu1 %v11887_v53  ;;  %11152 = vmatprep.subr.bf16.mxu0 %v16041_v37  ;;  %v11909_v53 = vld [vmem:[%s15908_s5 + $0x9d0] sm:$0xff]  }
 0x498   :  { %11012 = vmatprep.subr.bf16.mxu1 %v16041_v37 }
 0x499   :  { %11129 = vmatmul.mubr.bf16.vlgmr.msra.gmra.mrb[140].mxu0 %v4747_v18  ;;  %v11916_v18 = vld [vmem:[%s15908_s5 + $0xba8] sm:$0xff]  }
 0x49a   :  { %10989 = vmatmul.mubr.bf16.vlgmr.msra.gmra.mrb[76].mxu1 %v4740_v27  ;;  %11153 = vmatpush3.bf16.msra.mxu0 %v11890_v6  ;;  %v11914_v6 = vld [vmem:[%s15908_s5 + $0xba0] sm:$0xff]   ;;  %v11915_v27 = vld [vmem:[%s15908_s5 + $0x9e8] sm:$0xff]  }
 0x49b   :  { %11013 = vmatpush3.bf16.msra.mxu1 %v11889_v56  ;;  %11154 = vmatprep.subr.bf16.mxu0 %v16041_v37  ;;  %v11913_v56 = vld [vmem:[%s15908_s5 + $0x9e0] sm:$0xff]  }
 0x49c   :  { %11014 = vmatprep.subr.bf16.mxu1 %v16041_v37  ;;  %11028 = vmatprep.mubr.msk.bf16.mxu1 %vm12110_vm4, %v16041_v37 }
 0x49d   :  { %11168 = vmatprep.mubr.msk.bf16.mxu0 %vm12110_vm4, %v16041_v37 }
 0x49e   :  { %11155 = vmatpush3.bf16.msra.mxu0 %v11892_v47 }
 0x49f   :  { %11015 = vmatpush3.bf16.msra.mxu1 %v11891_v16  ;;  %11156 = vmatprep.subr.bf16.mxu0 %v16041_v37 }
 0x4a0   :  { %11016 = vmatprep.subr.bf16.mxu1 %v16041_v37 }
 0x4a2   :  { %11157 = vmatpush3.bf16.msra.mxu0 %v11894_v44 }
 0x4a3   :  { %11017 = vmatpush3.bf16.msra.mxu1 %v11893_v26  ;;  %11158 = vmatprep.subr.bf16.mxu0 %v16041_v37 }
 0x4a4   :  { %11018 = vmatprep.subr.bf16.mxu1 %v16041_v37 }
 0x4a6   :  { %11159 = vmatpush3.bf16.msra.mxu0 %v11896_v52 }
 0x4a7   :  { %11019 = vmatpush3.bf16.msra.mxu1 %v11895_v49  ;;  %11160 = vmatprep.subr.bf16.mxu0 %v16041_v37 }
 0x4a8   :  { %11020 = vmatprep.subr.bf16.mxu1 %v16041_v37 }
 0x4aa   :  { %11161 = vmatpush3.bf16.msra.mxu0 %v11898_v9  ;;  %v11917_v9 = vld [vmem:[%s15908_s5 + $0x9f0] sm:$0xff]  }
 0x4ab   :  { %11021 = vmatpush3.bf16.msra.mxu1 %v11897_v36  ;;  %11162 = vmatprep.subr.bf16.mxu0 %v16041_v37 }
 0x4ac   :  { %11022 = vmatprep.subr.bf16.mxu1 %v16041_v37  ;;  %v15051_v35 = vpop.f32.mrb[116].mxu0 }
 0x4ad   :  { %v3994_v11 = vpop.f32.mrb[52].mxu1  ;;  %v10890_v10 = vpop.f32.mrb[117].mxu0 }
 0x4ae   :  { %v4710_v58 = vadd.f32 %v4709_v1, %v3994_v11  ;;  %v10750_v32 = vpop.f32.mrb[53].mxu1  ;;  %v4613_v4 = vpop.f32.mrb[118].mxu0  ;;  %11163 = vmatpush3.bf16.msra.mxu0 %v11900_v3  ;;  %v4749_v1 = vpack.c.bf16 %v1210_v46, %v1210_v46  ;;  %v11920_v10 = vld [vmem:[%s15908_s5 + $0xbb8] sm:$0xff]   ;;  %v11930_v46 = vld [vmem:[%s15908_s5 + $0xc20] sm:$0xff]  }
 0x4af   :  { %v3997_v34 = vpop.f32.mrb[54].mxu1  ;;  %11023 = vmatpush3.bf16.msra.mxu1 %v11899_v24  ;;  %v10891_v43 = vpop.f32.mrb[119].mxu0  ;;  %11164 = vmatprep.subr.bf16.mxu0 %v16041_v37  ;;  %v11918_v24 = vld [vmem:[%s15908_s5 + $0xbb0] sm:$0xff]   ;;  %v11919_v32 = vld [vmem:[%s15908_s5 + $0x9f8] sm:$0xff]   ;;  %v1212_v4 = vmax.f32 %v13610_v19, 0.0  ;;  %v11924_v19 = vld [vmem:[%s15908_s5 + $0xc08] sm:$0xff]  }
 0x4b0   :  { %v10751_v28 = vpop.f32.mrb[55].mxu1  ;;  %11024 = vmatprep.subr.bf16.mxu1 %v16041_v37  ;;  %v4711_v62 = vadd.f32 %v4710_v58, %v14831_v63  ;;  %v11905_v63 = vld [vmem:[%s15908_s5 + $0x9c0] sm:$0xff]   ;;  %v1205_v34 = vmax.f32 %v13606_v55, 0.0  ;;  %v11923_v55 = vld [vmem:[%s15908_s5 + $0xa48] sm:$0xff]   ;;  %v11925_v43 = vld [vmem:[%s15908_s5 + $0xa50] sm:$0xff]  }
 0x4b1   :  { %v4751_v28 = vpack.c.bf16 %v1212_v4, %v1212_v4  ;;  %v11948_v4 = vld [vmem:[%s15908_s5 + $0xca8] sm:$0xff]  }
 0x4b2   :  { %11165 = vmatpush3.bf16.msra.mxu0 %v11902_v15  ;;  %v4744_v15 = vpack.c.bf16 %v1205_v34, %v1205_v34  ;;  %v11947_v34 = vld [vmem:[%s15908_s5 + $0xae8] sm:$0xff]  }
 0x4b3   :  { %11025 = vmatpush3.bf16.msra.mxu1 %v11901_v30  ;;  %11166 = vmatprep.subr.bf16.mxu0 %v16041_v37  ;;  %v11922_v30 = vld [vmem:[%s15908_s5 + $0xc00] sm:$0xff]  }
 0x4b4   :  { %11026 = vmatprep.subr.bf16.mxu1 %v16041_v37 }
 0x4b6   :  { %11167 = vmatpush3.bf16.msra.mxu0 %v11904_v40  ;;  %v11928_v40 = vld [vmem:[%s15908_s5 + $0xc18] sm:$0xff]  }
 0x4b7   :  { %11027 = vmatpush3.bf16.msra.mxu1 %v11903_v8  ;;  %11192 = vmatprep.subr.bf16.mxu0 %v16041_v37  ;;  %v11927_v8 = vld [vmem:[%s15908_s5 + $0xa58] sm:$0xff]  }
 0x4b8   :  { %11052 = vmatprep.subr.bf16.mxu1 %v16041_v37 }
 0x4b9   :  { %11169 = vmatmul.mubr.bf16.vlgmr.msra.gmra.mrb[144].mxu0 %v4749_v1 }
 0x4ba   :  { %11029 = vmatmul.mubr.bf16.vlgmr.msra.gmra.mrb[80].mxu1 %v4742_v38  ;;  %11193 = vmatpush3.bf16.msra.mxu0 %v11906_v54  ;;  %v11932_v54 = vld [vmem:[%s15908_s5 + $0xc28] sm:$0xff]  }
 0x4bb   :  { %11053 = vmatpush3.bf16.msra.mxu1 %v11905_v63  ;;  %11194 = vmatprep.subr.bf16.mxu0 %v16041_v37  ;;  %v11931_v63 = vld [vmem:[%s15908_s5 + $0xa68] sm:$0xff]  }
 0x4bc   :  { %11054 = vmatprep.subr.bf16.mxu1 %v16041_v37  ;;  %11068 = vmatprep.mubr.msk.bf16.mxu1 %vm12110_vm4, %v16041_v37 }
 0x4bd   :  { %11208 = vmatprep.mubr.msk.bf16.mxu0 %vm12110_vm4, %v16041_v37 }
 0x4be   :  { %11195 = vmatpush3.bf16.msra.mxu0 %v11908_v61 }
 0x4bf   :  { %11055 = vmatpush3.bf16.msra.mxu1 %v11907_v60  ;;  %11196 = vmatprep.subr.bf16.mxu0 %v16041_v37 }
 0x4c0   :  { %11056 = vmatprep.subr.bf16.mxu1 %v16041_v37 }
 0x4c2   :  { %11197 = vmatpush3.bf16.msra.mxu0 %v11910_v31 }
 0x4c3   :  { %11057 = vmatpush3.bf16.msra.mxu1 %v11909_v53  ;;  %11198 = vmatprep.subr.bf16.mxu0 %v16041_v37 }
 0x4c4   :  { %11058 = vmatprep.subr.bf16.mxu1 %v16041_v37 }
 0x4c6   :  { %11199 = vmatpush3.bf16.msra.mxu0 %v11912_v25  ;;  %v11933_v25 = vld [vmem:[%s15908_s5 + $0xa70] sm:$0xff]  }
 0x4c7   :  { %11059 = vmatpush3.bf16.msra.mxu1 %v11911_v48  ;;  %11200 = vmatprep.subr.bf16.mxu0 %v16041_v37 }
 0x4c8   :  { %11060 = vmatprep.subr.bf16.mxu1 %v16041_v37 }
 0x4ca   :  { %11201 = vmatpush3.bf16.msra.mxu0 %v11914_v6 }
 0x4cb   :  { %11061 = vmatpush3.bf16.msra.mxu1 %v11913_v56  ;;  %11202 = vmatprep.subr.bf16.mxu0 %v16041_v37  ;;  %v11934_v56 = vld [vmem:[%s15908_s5 + $0xc30] sm:$0xff]  }
 0x4cc   :  { %11062 = vmatprep.subr.bf16.mxu1 %v16041_v37  ;;  %v15124_v47 = vpop.f32.mrb[120].mxu0 }
 0x4cd   :  { %v4170_v16 = vpop.f32.mrb[56].mxu1  ;;  %v10930_v49 = vpop.f32.mrb[121].mxu0 }
 0x4ce   :  { %v4712_v26 = vadd.f32 %v4711_v62, %v4170_v16  ;;  %v10790_v44 = vpop.f32.mrb[57].mxu1  ;;  %v5095_v36 = vpop.f32.mrb[122].mxu0  ;;  %11203 = vmatpush3.bf16.msra.mxu0 %v11916_v18  ;;  %v11926_v62 = vld [vmem:[%s15908_s5 + $0xc10] sm:$0xff]   ;;  %v11935_v16 = vld [vmem:[%s15908_s5 + $0xa78] sm:$0xff]   ;;  %v1214_v49 = vmax.f32 %v13618_v13, 0.0  ;;  %v11940_v13 = vld [vmem:[%s15908_s5 + $0xc88] sm:$0xff]  }
 0x4cf   :  { %v4173_v52 = vpop.f32.mrb[58].mxu1  ;;  %11063 = vmatpush3.bf16.msra.mxu1 %v11915_v27  ;;  %v10931_v11 = vpop.f32.mrb[123].mxu0  ;;  %11204 = vmatprep.subr.bf16.mxu0 %v16041_v37  ;;  %v1207_v44 = vmax.f32 %v13614_v29, 0.0  ;;  %v11939_v29 = vld [vmem:[%s15908_s5 + $0xac8] sm:$0xff]  }
 0x4d0   :  { %v10791_v3 = vpop.f32.mrb[59].mxu1  ;;  %11064 = vmatprep.subr.bf16.mxu1 %v16041_v37  ;;  %v4713_v58 = vadd.f32 %v4712_v26, %v14905_v22  ;;  %v11921_v22 = vld [vmem:[%s15908_s5 + $0xa40] sm:$0xff]   ;;  %v11936_v26 = vld [vmem:[%s15908_s5 + $0xc38] sm:$0xff]  }
 0x4d1   :  { %v11938_v52 = vld [vmem:[%s15908_s5 + $0xc80] sm:$0xff]   ;;  %v4746_v36 = vpack.c.bf16 %v1207_v44, %v1207_v44  ;;  %v11942_v3 = vld [vmem:[%s15908_s5 + $0xc90] sm:$0xff]   ;;  %v11943_v11 = vld [vmem:[%s15908_s5 + $0xad8] sm:$0xff]  }
 0x4d2   :  { %11205 = vmatpush3.bf16.msra.mxu0 %v11918_v24  ;;  %v11941_v24 = vld [vmem:[%s15908_s5 + $0xad0] sm:$0xff]  }
 0x4d3   :  { %11065 = vmatpush3.bf16.msra.mxu1 %v11917_v9  ;;  %11206 = vmatprep.subr.bf16.mxu0 %v16041_v37  ;;  %v6451_v9 = vpack.c.bf16 %v1214_v49, %v1214_v49 }
 0x4d4   :  { %11066 = vmatprep.subr.bf16.mxu1 %v16041_v37 }
 0x4d6   :  { %11207 = vmatpush3.bf16.msra.mxu0 %v11920_v10  ;;  %v11946_v10 = vld [vmem:[%s15908_s5 + $0xca0] sm:$0xff]  }
 0x4d7   :  { %11067 = vmatpush3.bf16.msra.mxu1 %v11919_v32  ;;  %11232 = vmatprep.subr.bf16.mxu0 %v16041_v37  ;;  %v11945_v32 = vld [vmem:[%s15908_s5 + $0xae0] sm:$0xff]  }
 0x4d8   :  { %11092 = vmatprep.subr.bf16.mxu1 %v16041_v37 }
 0x4d9   :  { %11209 = vmatmul.mubr.bf16.vlgmr.msra.gmra.mrb[148].mxu0 %v4751_v28 }
 0x4da   :  { %11069 = vmatmul.mubr.bf16.vlgmr.msra.gmra.mrb[84].mxu1 %v4744_v15  ;;  %11233 = vmatpush3.bf16.msra.mxu0 %v11922_v30 }
 0x4db   :  { %11093 = vmatpush3.bf16.msra.mxu1 %v11921_v22  ;;  %11234 = vmatprep.subr.bf16.mxu0 %v16041_v37 }
 0x4dc   :  { %11094 = vmatprep.subr.bf16.mxu1 %v16041_v37  ;;  %11108 = vmatprep.mubr.msk.bf16.mxu1 %vm12110_vm4, %v16041_v37 }
 0x4dd   :  { %11248 = vmatprep.mubr.msk.bf16.mxu0 %vm12110_vm4, %v16041_v37 }
 0x4de   :  { %11235 = vmatpush3.bf16.msra.mxu0 %v11924_v19 }
 0x4df   :  { %11095 = vmatpush3.bf16.msra.mxu1 %v11923_v55  ;;  %11236 = vmatprep.subr.bf16.mxu0 %v16041_v37 }
 0x4e0   :  { %11096 = vmatprep.subr.bf16.mxu1 %v16041_v37 }
 0x4e2   :  { %11237 = vmatpush3.bf16.msra.mxu0 %v11926_v62  ;;  %v11949_v62 = vld [vmem:[%s15908_s5 + $0xaf0] sm:$0xff]  }
 0x4e3   :  { %11097 = vmatpush3.bf16.msra.mxu1 %v11925_v43  ;;  %11238 = vmatprep.subr.bf16.mxu0 %v16041_v37 }
 0x4e4   :  { %11098 = vmatprep.subr.bf16.mxu1 %v16041_v37 }
 0x4e6   :  { %11239 = vmatpush3.bf16.msra.mxu0 %v11928_v40 }
 0x4e7   :  { %11099 = vmatpush3.bf16.msra.mxu1 %v11927_v8  ;;  %11240 = vmatprep.subr.bf16.mxu0 %v16041_v37  ;;  %v11950_v8 = vld [vmem:[%s15908_s5 + $0xcb0] sm:$0xff]  }
 0x4e8   :  { %11100 = vmatprep.subr.bf16.mxu1 %v16041_v37 }
 0x4ea   :  { %11241 = vmatpush3.bf16.msra.mxu0 %v11930_v46 }
 0x4eb   :  { %11101 = vmatpush3.bf16.msra.mxu1 %v11929_v39  ;;  %11242 = vmatprep.subr.bf16.mxu0 %v16041_v37 }
 0x4ec   :  { %11102 = vmatprep.subr.bf16.mxu1 %v16041_v37  ;;  %v15197_v1 = vpop.f32.mrb[124].mxu0 }
 0x4ed   :  { %v4346_v38 = vpop.f32.mrb[60].mxu1  ;;  %v10970_v53 = vpop.f32.mrb[125].mxu0 }
 0x4ee   :  { %v4714_v60 = vadd.f32 %v4713_v58, %v4346_v38  ;;  %v10830_v61 = vpop.f32.mrb[61].mxu1  ;;  %v5271_v48 = vpop.f32.mrb[126].mxu0  ;;  %11243 = vmatpush3.bf16.msra.mxu0 %v11932_v54  ;;  %v11944_v58 = vld [vmem:[%s15908_s5 + $0xc98] sm:$0xff]   ;;  %v1209_v38 = vmax.f32 %v13622_v5, 0.0  ;;  %v11955_v5 = vld [vmem:[%s15908_s5 + $0xb48] sm:$0xff]  }
 0x4ef   :  { %v4349_v31 = vpop.f32.mrb[62].mxu1  ;;  %11103 = vmatpush3.bf16.msra.mxu1 %v11931_v63  ;;  %v10971_v27 = vpop.f32.mrb[127].mxu0  ;;  %11244 = vmatprep.subr.bf16.mxu0 %v16041_v37  ;;  %v11951_v63 = vld [vmem:[%s15908_s5 + $0xaf8] sm:$0xff]   ;;  %v11954_v61 = vld [vmem:[%s15908_s5 + $0xd00] sm:$0xff]   ;;  %v11957_v48 = vld [vmem:[%s15908_s5 + $0xb50] sm:$0xff]  }
 0x4f0   :  { %v10831_v6 = vpop.f32.mrb[63].mxu1  ;;  %11104 = vmatprep.subr.bf16.mxu1 %v16041_v37  ;;  %v4715_v18 = vadd.f32 %v4714_v60, %v14978_v59  ;;  %v11937_v59 = vld [vmem:[%s15908_s5 + $0xac0] sm:$0xff]   ;;  %v11952_v54 = vld [vmem:[%s15908_s5 + $0xcb8] sm:$0xff]   ;;  %v1216_v60 = vmax.f32 %v13626_v41, 0.0  ;;  %v4748_v53 = vpack.c.bf16 %v1209_v38, %v1209_v38  ;;  %v11956_v41 = vld [vmem:[%s15908_s5 + $0xd08] sm:$0xff]  }
 0x4f1   :  { %v11960_v6 = vld [vmem:[%s15908_s5 + $0xd18] sm:$0xff]   ;;  %v11961_v27 = vld [vmem:[%s15908_s5 + $0xb60] sm:$0xff]  }
 0x4f2   :  { %11245 = vmatpush3.bf16.msra.mxu0 %v11934_v56  ;;  %v6453_v31 = vpack.c.bf16 %v1216_v60, %v1216_v60  ;;  %v11959_v56 = vld [vmem:[%s15908_s5 + $0xb58] sm:$0xff]  }
 0x4f3   :  { %11105 = vmatpush3.bf16.msra.mxu1 %v11933_v25  ;;  %11246 = vmatprep.subr.bf16.mxu0 %v16041_v37  ;;  %v11958_v25 = vld [vmem:[%s15908_s5 + $0xd10] sm:$0xff]  }
 0x4f4   :  { %11106 = vmatprep.subr.bf16.mxu1 %v16041_v37 }
 0x4f6   :  { %11247 = vmatpush3.bf16.msra.mxu0 %v11936_v26  ;;  %v11964_v26 = vld [vmem:[%s15908_s5 + $0xd28] sm:$0xff]  }
 0x4f7   :  { %11107 = vmatpush3.bf16.msra.mxu1 %v11935_v16  ;;  %11272 = vmatprep.subr.bf16.mxu0 %v16041_v37  ;;  %v11963_v16 = vld [vmem:[%s15908_s5 + $0xb68] sm:$0xff]  }
 0x4f8   :  { %11132 = vmatprep.subr.bf16.mxu1 %v16041_v37 }
 0x4f9   :  { %11249 = vmatmul.mubr.bf16.vlgmr.msra.gmra.mrb[152].mxu0 %v6451_v9 }
 0x4fa   :  { %11109 = vmatmul.mubr.bf16.vlgmr.msra.gmra.mrb[88].mxu1 %v4746_v36  ;;  %11273 = vmatpush3.bf16.msra.mxu0 %v11938_v52 }
 0x4fb   :  { %11133 = vmatpush3.bf16.msra.mxu1 %v11937_v59  ;;  %11274 = vmatprep.subr.bf16.mxu0 %v16041_v37 }
 0x4fc   :  { %11134 = vmatprep.subr.bf16.mxu1 %v16041_v37  ;;  %11148 = vmatprep.mubr.msk.bf16.mxu1 %vm12110_vm4, %v16041_v37 }
 0x4fd   :  { %11288 = vmatprep.mubr.msk.bf16.mxu0 %vm12110_vm4, %v16041_v37 }
 0x4fe   :  { %11275 = vmatpush3.bf16.msra.mxu0 %v11940_v13  ;;  %v11965_v13 = vld [vmem:[%s15908_s5 + $0xb70] sm:$0xff]  }
 0x4ff   :  { %11135 = vmatpush3.bf16.msra.mxu1 %v11939_v29  ;;  %11276 = vmatprep.subr.bf16.mxu0 %v16041_v37 }
 0x500   :  { %11136 = vmatprep.subr.bf16.mxu1 %v16041_v37 }
 0x502   :  { %11277 = vmatpush3.bf16.msra.mxu0 %v11942_v3 }
 0x503   :  { %11137 = vmatpush3.bf16.msra.mxu1 %v11941_v24  ;;  %11278 = vmatprep.subr.bf16.mxu0 %v16041_v37  ;;  %v11966_v24 = vld [vmem:[%s15908_s5 + $0xd30] sm:$0xff]  }
 0x504   :  { %11138 = vmatprep.subr.bf16.mxu1 %v16041_v37 }
 0x506   :  { %11279 = vmatpush3.bf16.msra.mxu0 %v11944_v58 }
 0x507   :  { %11139 = vmatpush3.bf16.msra.mxu1 %v11943_v11  ;;  %11280 = vmatprep.subr.bf16.mxu0 %v16041_v37 }
 0x508   :  { %11140 = vmatprep.subr.bf16.mxu1 %v16041_v37 }
 0x50a   :  { %11281 = vmatpush3.bf16.msra.mxu0 %v11946_v10  ;;  %v11968_v10 = vld [vmem:[%s15908_s5 + $0xd38] sm:$0xff]  }
 0x50b   :  { %11141 = vmatpush3.bf16.msra.mxu1 %v11945_v32  ;;  %11282 = vmatprep.subr.bf16.mxu0 %v16041_v37  ;;  %v11967_v32 = vld [vmem:[%s15908_s5 + $0xb78] sm:$0xff]  }
 0x50c   :  { %11142 = vmatprep.subr.bf16.mxu1 %v16041_v37  ;;  %v15270_v30 = vpop.f32.mrb[128].mxu0 }
 0x50d   :  { %v4522_v22 = vpop.f32.mrb[64].mxu1  ;;  %v11010_v55 = vpop.f32.mrb[129].mxu0 }
 0x50e   :  { %v4716_v15 = vadd.f32 %v4715_v18, %v4522_v22  ;;  %v10870_v28 = vpop.f32.mrb[65].mxu1  ;;  %v5447_v43 = vpop.f32.mrb[130].mxu0  ;;  %11283 = vmatpush3.bf16.msra.mxu0 %v11948_v4  ;;  %v11962_v18 = vld [vmem:[%s15908_s5 + $0xd20] sm:$0xff]   ;;  %v11973_v55 = vld [vmem:[%s15908_s5 + $0xbd0] sm:$0xff]  }
 0x50f   :  { %v4525_v19 = vpop.f32.mrb[66].mxu1  ;;  %11143 = vmatpush3.bf16.msra.mxu1 %v11947_v34  ;;  %v11011_v39 = vpop.f32.mrb[131].mxu0  ;;  %11284 = vmatprep.subr.bf16.mxu0 %v16041_v37  ;;  %v1218_v34 = vmax.f32 %v13642_v42, 0.0  ;;  %v11969_v4 = vld [vmem:[%s15908_s5 + $0xbc0] sm:$0xff]   ;;  %v11972_v42 = vld [vmem:[%s15908_s5 + $0xd88] sm:$0xff]   ;;  %v11975_v43 = vld [vmem:[%s15908_s5 + $0xbd8] sm:$0xff]  }
 0x510   :  { %v10871_v40 = vpop.f32.mrb[67].mxu1  ;;  %11144 = vmatprep.subr.bf16.mxu1 %v16041_v37  ;;  %v4717_v46 = vadd.f32 %v4716_v15, %v15051_v35  ;;  %v11953_v35 = vld [vmem:[%s15908_s5 + $0xb40] sm:$0xff]   ;;  %v11974_v19 = vld [vmem:[%s15908_s5 + $0xd90] sm:$0xff]   ;;  %v11979_v39 = vld [vmem:[%s15908_s5 + $0xbe8] sm:$0xff]  }
 0x511   :  { %v11970_v22 = vld [vmem:[%s15908_s5 + $0xd80] sm:$0xff]   ;;  %v6455_v28 = vpack.c.bf16 %v1218_v34, %v1218_v34 }
 0x512   :  { %11285 = vmatpush3.bf16.msra.mxu0 %v11950_v8  ;;  %v11977_v8 = vld [vmem:[%s15908_s5 + $0xbe0] sm:$0xff]  }
 0x513   :  { %11145 = vmatpush3.bf16.msra.mxu1 %v11949_v62  ;;  %11286 = vmatprep.subr.bf16.mxu0 %v16041_v37  ;;  %v11976_v62 = vld [vmem:[%s15908_s5 + $0xd98] sm:$0xff]   ;;  %v11978_v40 = vld [vmem:[%s15908_s5 + $0xda0] sm:$0xff]  }
 0x514   :  { %11146 = vmatprep.subr.bf16.mxu1 %v16041_v37 }
 0x516   :  { %11287 = vmatpush3.bf16.msra.mxu0 %v11952_v54 }
 0x517   :  { %11147 = vmatpush3.bf16.msra.mxu1 %v11951_v63  ;;  %11312 = vmatprep.subr.bf16.mxu0 %v16041_v37 }
 0x518   :  { %11172 = vmatprep.subr.bf16.mxu1 %v16041_v37 }
 0x519   :  { %11289 = vmatmul.mubr.bf16.vlgmr.msra.gmra.mrb[156].mxu0 %v6453_v31  ;;  %v11981_v31 = vld [vmem:[%s15908_s5 + $0xbf0] sm:$0xff]  }
 0x51a   :  { %11149 = vmatmul.mubr.bf16.vlgmr.msra.gmra.mrb[92].mxu1 %v4748_v53  ;;  %11313 = vmatpush3.bf16.msra.mxu0 %v11954_v61 }
 0x51b   :  { %11173 = vmatpush3.bf16.msra.mxu1 %v11953_v35  ;;  %11314 = vmatprep.subr.bf16.mxu0 %v16041_v37 }
 0x51c   :  { %11174 = vmatprep.subr.bf16.mxu1 %v16041_v37  ;;  %11188 = vmatprep.mubr.msk.bf16.mxu1 %vm12110_vm4, %v16041_v37 }
 0x51d   :  { %11328 = vmatprep.mubr.msk.bf16.mxu0 %vm12110_vm4, %v16041_v37 }
 0x51e   :  { %11315 = vmatpush3.bf16.msra.mxu0 %v11956_v41 }
 0x51f   :  { %11175 = vmatpush3.bf16.msra.mxu1 %v11955_v5  ;;  %11316 = vmatprep.subr.bf16.mxu0 %v16041_v37  ;;  %v11982_v5 = vld [vmem:[%s15908_s5 + $0xdb0] sm:$0xff]  }
 0x520   :  { %11176 = vmatprep.subr.bf16.mxu1 %v16041_v37 }
 0x522   :  { %11317 = vmatpush3.bf16.msra.mxu0 %v11958_v25  ;;  %v11983_v25 = vld [vmem:[%s15908_s5 + $0xbf8] sm:$0xff]  }
 0x523   :  { %11177 = vmatpush3.bf16.msra.mxu1 %v11957_v48  ;;  %11318 = vmatprep.subr.bf16.mxu0 %v16041_v37 }
 0x524   :  { %11178 = vmatprep.subr.bf16.mxu1 %v16041_v37 }
 0x526   :  { %11319 = vmatpush3.bf16.msra.mxu0 %v11960_v6  ;;  %v1213_v6 = vmax.f32 %v13646_v7, 0.0  ;;  %v11987_v7 = vld [vmem:[%s15908_s5 + $0xc48] sm:$0xff]  }
 0x527   :  { %11179 = vmatpush3.bf16.msra.mxu1 %v11959_v56  ;;  %11320 = vmatprep.subr.bf16.mxu0 %v16041_v37  ;;  %v11984_v56 = vld [vmem:[%s15908_s5 + $0xdb8] sm:$0xff]  }
 0x528   :  { %11180 = vmatprep.subr.bf16.mxu1 %v16041_v37 }
 0x52a   :  { %11321 = vmatpush3.bf16.msra.mxu0 %v11962_v18  ;;  %v11986_v18 = vld [vmem:[%s15908_s5 + $0xe00] sm:$0xff]  }
 0x52b   :  { %11181 = vmatpush3.bf16.msra.mxu1 %v11961_v27  ;;  %11322 = vmatprep.subr.bf16.mxu0 %v16041_v37  ;;  %v1220_v27 = vmax.f32 %v13650_v23, 0.0  ;;  %v11988_v23 = vld [vmem:[%s15908_s5 + $0xe08] sm:$0xff]  }
 0x52c   :  { %11182 = vmatprep.subr.bf16.mxu1 %v16041_v37  ;;  %v15343_v49 = vpop.f32.mrb[132].mxu0 }
 0x52d   :  { %v4698_v44 = vpop.f32.mrb[68].mxu1  ;;  %v11050_v36 = vpop.f32.mrb[133].mxu0 }
 0x52e   :  { %v4718_v59 = vadd.f32 %v4717_v46, %v4698_v44  ;;  %v10910_v52 = vpop.f32.mrb[69].mxu1  ;;  %v5623_v29 = vpop.f32.mrb[134].mxu0  ;;  %11323 = vmatpush3.bf16.msra.mxu0 %v11964_v26  ;;  %v11980_v46 = vld [vmem:[%s15908_s5 + $0xda8] sm:$0xff]   ;;  %v6457_v26 = vpack.c.bf16 %v1220_v27, %v1220_v27  ;;  %v11989_v44 = vld [vmem:[%s15908_s5 + $0xc50] sm:$0xff]   ;;  %v11992_v36 = vld [vmem:[%s15908_s5 + $0xe18] sm:$0xff]  }
 0x52f   :  { %v4701_v9 = vpop.f32.mrb[70].mxu1  ;;  %11183 = vmatpush3.bf16.msra.mxu1 %v11963_v16  ;;  %v11051_v58 = vpop.f32.mrb[135].mxu0  ;;  %11324 = vmatprep.subr.bf16.mxu0 %v16041_v37  ;;  %v4752_v16 = vpack.c.bf16 %v1213_v6, %v1213_v6  ;;  %v11991_v52 = vld [vmem:[%s15908_s5 + $0xc58] sm:$0xff]   ;;  %v11994_v29 = vld [vmem:[%s15908_s5 + $0xe20] sm:$0xff]   ;;  %v12013_v27 = vld [vmem:[%s15908_s5 + $0xcf0] sm:$0xff]  }
 0x530   :  { %v15352_v3 = vadd.f32 %v4718_v59, %v14759_v50  ;;  %v10911_v11 = vpop.f32.mrb[71].mxu1  ;;  %11184 = vmatprep.subr.bf16.mxu1 %v16041_v37  ;;  %v1211_v50 = vmax.f32 %v13638_v45, 0.0  ;;  %v11971_v45 = vld [vmem:[%s15908_s5 + $0xbc8] sm:$0xff]   ;;  %v11990_v59 = vld [vmem:[%s15908_s5 + $0xe10] sm:$0xff]   ;;  %v11993_v9 = vld [vmem:[%s15908_s5 + $0xc60] sm:$0xff]  }
 0x532   :  { %11325 = vmatpush3.bf16.msra.mxu0 %v11966_v24  ;;  %v4750_v15 = vpack.c.bf16 %v1211_v50, %v1211_v50  ;;  %v11996_v24 = vld [vmem:[%s15908_s5 + $0xe28] sm:$0xff]  }
 0x533   :  { %11185 = vmatpush3.bf16.msra.mxu1 %v11965_v13  ;;  %11326 = vmatprep.subr.bf16.mxu0 %v16041_v37  ;;  %v11995_v13 = vld [vmem:[%s15908_s5 + $0xc68] sm:$0xff]  }
 0x534   :  { %11186 = vmatprep.subr.bf16.mxu1 %v16041_v37 }
 0x536   :  { %11327 = vmatpush3.bf16.msra.mxu0 %v11968_v10 }
 0x537   :  { %11187 = vmatpush3.bf16.msra.mxu1 %v11967_v32  ;;  %11352 = vmatprep.subr.bf16.mxu0 %v16041_v37 }
 0x538   :  { %11212 = vmatprep.subr.bf16.mxu1 %v16041_v37 }
 0x539   :  { %11329 = vmatmul.mubr.bf16.vlgmr.msra.gmra.mrb[160].mxu0 %v6455_v28 }
 0x53a   :  { %11189 = vmatmul.mubr.bf16.vlgmr.msra.gmra.mrb[96].mxu1 %v4750_v15  ;;  %11353 = vmatpush3.bf16.msra.mxu0 %v11970_v22  ;;  %v11997_v22 = vld [vmem:[%s15908_s5 + $0xc70] sm:$0xff]  }
 0x53b   :  { %11213 = vmatpush3.bf16.msra.mxu1 %v11969_v4  ;;  %11354 = vmatprep.subr.bf16.mxu0 %v16041_v37  ;;  %v11998_v15 = vld [vmem:[%s15908_s5 + $0xe30] sm:$0xff]  }
 0x53c   :  { %11214 = vmatprep.subr.bf16.mxu1 %v16041_v37  ;;  %11228 = vmatprep.mubr.msk.bf16.mxu1 %vm12110_vm4, %v16041_v37 }
 0x53d   :  { %11368 = vmatprep.mubr.msk.bf16.mxu0 %vm12110_vm4, %v16041_v37 }
 0x53e   :  { %11355 = vmatpush3.bf16.msra.mxu0 %v11972_v42 }
 0x53f   :  { %11215 = vmatpush3.bf16.msra.mxu1 %v11971_v45  ;;  %11356 = vmatprep.subr.bf16.mxu0 %v16041_v37 }
 0x540   :  { %11216 = vmatprep.subr.bf16.mxu1 %v16041_v37 }
 0x542   :  { %11357 = vmatpush3.bf16.msra.mxu0 %v11974_v19  ;;  %v12000_v19 = vld [vmem:[%s15908_s5 + $0xe38] sm:$0xff]  }
 0x543   :  { %11217 = vmatpush3.bf16.msra.mxu1 %v11973_v55  ;;  %11358 = vmatprep.subr.bf16.mxu0 %v16041_v37  ;;  %v11999_v55 = vld [vmem:[%s15908_s5 + $0xc78] sm:$0xff]  }
 0x544   :  { %11218 = vmatprep.subr.bf16.mxu1 %v16041_v37 }
 0x546   :  { %11359 = vmatpush3.bf16.msra.mxu0 %v11976_v62  ;;  %v1222_v62 = vmax.f32 %v13664_v12, 0.0  ;;  %v12004_v12 = vld [vmem:[%s15908_s5 + $0xe88] sm:$0xff]  }
 0x547   :  { %11219 = vmatpush3.bf16.msra.mxu1 %v11975_v43  ;;  %11360 = vmatprep.subr.bf16.mxu0 %v16041_v37  ;;  %v1215_v43 = vmax.f32 %v13660_v14, 0.0  ;;  %v12003_v14 = vld [vmem:[%s15908_s5 + $0xcc8] sm:$0xff]  }
 0x548   :  { %11220 = vmatprep.subr.bf16.mxu1 %v16041_v37 }
 0x54a   :  { %11361 = vmatpush3.bf16.msra.mxu0 %v11978_v40  ;;  %v6452_v40 = vpack.c.bf16 %v1215_v43, %v1215_v43  ;;  %v12030_v43 = vld [vmem:[%s15908_s5 + $0xf30] sm:$0xff]  }
 0x54b   :  { %11221 = vmatpush3.bf16.msra.mxu1 %v11977_v8  ;;  %11362 = vmatprep.subr.bf16.mxu0 %v16041_v37  ;;  %v12002_v8 = vld [vmem:[%s15908_s5 + $0xe80] sm:$0xff]  }
 0x54c   :  { %11222 = vmatprep.subr.bf16.mxu1 %v16041_v37  ;;  %v15418_v54 = vpop.f32.mrb[136].mxu0 }
 0x54d   :  { %v5180_v63 = vpop.f32.mrb[72].mxu1  ;;  %v11090_v35 = vpop.f32.mrb[137].mxu0 }
 0x54e   :  { %v6418_v38 = vadd.f32 %v5180_v63, %v15124_v47  ;;  %v10950_v60 = vpop.f32.mrb[73].mxu1  ;;  %v5799_v53 = vpop.f32.mrb[138].mxu0  ;;  %11363 = vmatpush3.bf16.msra.mxu0 %v11980_v46  ;;  %v12005_v46 = vld [vmem:[%s15908_s5 + $0xcd0] sm:$0xff]   ;;  %v12009_v35 = vld [vmem:[%s15908_s5 + $0xce0] sm:$0xff]  }
 0x54f   :  { %v5183_v61 = vpop.f32.mrb[74].mxu1  ;;  %11223 = vmatpush3.bf16.msra.mxu1 %v11979_v39  ;;  %v11091_v48 = vpop.f32.mrb[139].mxu0  ;;  %11364 = vmatprep.subr.bf16.mxu0 %v16041_v37  ;;  %v6459_v39 = vpack.c.bf16 %v1222_v62, %v1222_v62  ;;  %v12006_v63 = vld [vmem:[%s15908_s5 + $0xe90] sm:$0xff]   ;;  %v12008_v60 = vld [vmem:[%s15908_s5 + $0xe98] sm:$0xff]   ;;  %v12011_v53 = vld [vmem:[%s15908_s5 + $0xce8] sm:$0xff]  }
 0x550   :  { %v10951_v41 = vpop.f32.mrb[75].mxu1  ;;  %11224 = vmatprep.subr.bf16.mxu1 %v16041_v37  ;;  %v6419_v47 = vadd.f32 %v6418_v38, %v15197_v1  ;;  %v11985_v1 = vld [vmem:[%s15908_s5 + $0xc40] sm:$0xff]   ;;  %v12007_v38 = vld [vmem:[%s15908_s5 + $0xcd8] sm:$0xff]  }
 0x551   :  { %v12010_v61 = vld [vmem:[%s15908_s5 + $0xea0] sm:$0xff]  }
 0x552   :  { %11365 = vmatpush3.bf16.msra.mxu0 %v11982_v5 }
 0x553   :  { %11225 = vmatpush3.bf16.msra.mxu1 %v11981_v31  ;;  %11366 = vmatprep.subr.bf16.mxu0 %v16041_v37  ;;  %v12012_v31 = vld [vmem:[%s15908_s5 + $0xea8] sm:$0xff]  }
 0x554   :  { %11226 = vmatprep.subr.bf16.mxu1 %v16041_v37 }
 0x556   :  { %11367 = vmatpush3.bf16.msra.mxu0 %v11984_v56 }
 0x557   :  { %11227 = vmatpush3.bf16.msra.mxu1 %v11983_v25  ;;  %11392 = vmatprep.subr.bf16.mxu0 %v16041_v37 }
 0x558   :  { %11252 = vmatprep.subr.bf16.mxu1 %v16041_v37 }
 0x559   :  { %11369 = vmatmul.mubr.bf16.vlgmr.msra.gmra.mrb[164].mxu0 %v6457_v26 }
 0x55a   :  { %11229 = vmatmul.mubr.bf16.vlgmr.msra.gmra.mrb[100].mxu1 %v4752_v16  ;;  %11393 = vmatpush3.bf16.msra.mxu0 %v11986_v18 }
 0x55b   :  { %11253 = vmatpush3.bf16.msra.mxu1 %v11985_v1  ;;  %11394 = vmatprep.subr.bf16.mxu0 %v16041_v37  ;;  %v12014_v1 = vld [vmem:[%s15908_s5 + $0xeb0] sm:$0xff]  }
 0x55c   :  { %11254 = vmatprep.subr.bf16.mxu1 %v16041_v37  ;;  %11268 = vmatprep.mubr.msk.bf16.mxu1 %vm12110_vm4, %v16041_v37 }
 0x55d   :  { %11408 = vmatprep.mubr.msk.bf16.mxu0 %vm12110_vm4, %v16041_v37 }
 0x55e   :  { %11395 = vmatpush3.bf16.msra.mxu0 %v11988_v23  ;;  %v12016_v23 = vld [vmem:[%s15908_s5 + $0xeb8] sm:$0xff]  }
 0x55f   :  { %11255 = vmatpush3.bf16.msra.mxu1 %v11987_v7  ;;  %11396 = vmatprep.subr.bf16.mxu0 %v16041_v37  ;;  %v12015_v7 = vld [vmem:[%s15908_s5 + $0xcf8] sm:$0xff]  }
 0x560   :  { %11256 = vmatprep.subr.bf16.mxu1 %v16041_v37 }
 0x562   :  { %11397 = vmatpush3.bf16.msra.mxu0 %v11990_v59  ;;  %v1224_v59 = vmax.f32 %v13674_v33, 0.0  ;;  %v12020_v33 = vld [vmem:[%s15908_s5 + $0xf08] sm:$0xff]  }
 0x563   :  { %11257 = vmatpush3.bf16.msra.mxu1 %v11989_v44  ;;  %11398 = vmatprep.subr.bf16.mxu0 %v16041_v37  ;;  %v1217_v44 = vmax.f32 %v13668_v0, 0.0  ;;  %v12019_v0 = vld [vmem:[%s15908_s5 + $0xd48] sm:$0xff]  }
 0x564   :  { %11258 = vmatprep.subr.bf16.mxu1 %v16041_v37 }
 0x566   :  { %11399 = vmatpush3.bf16.msra.mxu0 %v11992_v36  ;;  %v6454_v36 = vpack.c.bf16 %v1217_v44, %v1217_v44  ;;  %v12046_v44 = vld [vmem:[%s15908_s5 + $0xfb0] sm:$0xff]  }
 0x567   :  { %11259 = vmatpush3.bf16.msra.mxu1 %v11991_v52  ;;  %11400 = vmatprep.subr.bf16.mxu0 %v16041_v37  ;;  %v12018_v52 = vld [vmem:[%s15908_s5 + $0xf00] sm:$0xff]  }
 0x568   :  { %11260 = vmatprep.subr.bf16.mxu1 %v16041_v37 }
 0x56a   :  { %11401 = vmatpush3.bf16.msra.mxu0 %v11994_v29  ;;  %v12021_v29 = vld [vmem:[%s15908_s5 + $0xd50] sm:$0xff]  }
 0x56b   :  { %11261 = vmatpush3.bf16.msra.mxu1 %v11993_v9  ;;  %11402 = vmatprep.subr.bf16.mxu0 %v16041_v37  ;;  %v6461_v9 = vpack.c.bf16 %v1224_v59, %v1224_v59 }
 0x56c   :  { %11262 = vmatprep.subr.bf16.mxu1 %v16041_v37  ;;  %v15492_v58 = vpop.f32.mrb[140].mxu0 }
 0x56d   :  { %v5356_v11 = vpop.f32.mrb[76].mxu1  ;;  %v11130_v50 = vpop.f32.mrb[141].mxu0 }
 0x56e   :  { %v6420_v32 = vadd.f32 %v6419_v47, %v5356_v11  ;;  %v10990_v10 = vpop.f32.mrb[77].mxu1  ;;  %v5975_v4 = vpop.f32.mrb[142].mxu0  ;;  %11403 = vmatpush3.bf16.msra.mxu0 %v11996_v24  ;;  %v12023_v24 = vld [vmem:[%s15908_s5 + $0xd58] sm:$0xff]   ;;  %v12027_v50 = vld [vmem:[%s15908_s5 + $0xd68] sm:$0xff]  }
 0x56f   :  { %v5359_v34 = vpop.f32.mrb[78].mxu1  ;;  %11263 = vmatpush3.bf16.msra.mxu1 %v11995_v13  ;;  %v11131_v45 = vpop.f32.mrb[143].mxu0  ;;  %11404 = vmatprep.subr.bf16.mxu0 %v16041_v37  ;;  %v12022_v13 = vld [vmem:[%s15908_s5 + $0xf10] sm:$0xff]   ;;  %v12024_v11 = vld [vmem:[%s15908_s5 + $0xf18] sm:$0xff]   ;;  %v12026_v10 = vld [vmem:[%s15908_s5 + $0xf20] sm:$0xff]  }
 0x570   :  { %v10991_v28 = vpop.f32.mrb[79].mxu1  ;;  %11264 = vmatprep.subr.bf16.mxu1 %v16041_v37  ;;  %v6421_v42 = vadd.f32 %v6420_v32, %v15270_v30  ;;  %v12001_v30 = vld [vmem:[%s15908_s5 + $0xcc0] sm:$0xff]   ;;  %v12028_v34 = vld [vmem:[%s15908_s5 + $0xf28] sm:$0xff]  }
 0x571   :  { %v12025_v32 = vld [vmem:[%s15908_s5 + $0xd60] sm:$0xff]  }
 0x572   :  { %11405 = vmatpush3.bf16.msra.mxu0 %v11998_v15 }
 0x573   :  { %11265 = vmatpush3.bf16.msra.mxu1 %v11997_v22  ;;  %11406 = vmatprep.subr.bf16.mxu0 %v16041_v37 }
 0x574   :  { %11266 = vmatprep.subr.bf16.mxu1 %v16041_v37 }
 0x576   :  { %11407 = vmatpush3.bf16.msra.mxu0 %v12000_v19  ;;  %v12029_v19 = vld [vmem:[%s15908_s5 + $0xd70] sm:$0xff]  }
 0x577   :  { %11267 = vmatpush3.bf16.msra.mxu1 %v11999_v55  ;;  %11432 = vmatprep.subr.bf16.mxu0 %v16041_v37 }
 0x578   :  { %11292 = vmatprep.subr.bf16.mxu1 %v16041_v37 }
 0x579   :  { %11409 = vmatmul.mubr.bf16.vlgmr.msra.gmra.mrb[168].mxu0 %v6459_v39  ;;  %v12032_v39 = vld [vmem:[%s15908_s5 + $0xf38] sm:$0xff]  }
 0x57a   :  { %11269 = vmatmul.mubr.bf16.vlgmr.msra.gmra.mrb[104].mxu1 %v6452_v40  ;;  %11433 = vmatpush3.bf16.msra.mxu0 %v12002_v8  ;;  %v12031_v40 = vld [vmem:[%s15908_s5 + $0xd78] sm:$0xff]  }
 0x57b   :  { %11293 = vmatpush3.bf16.msra.mxu1 %v12001_v30  ;;  %11434 = vmatprep.subr.bf16.mxu0 %v16041_v37 }
 0x57c   :  { %11294 = vmatprep.subr.bf16.mxu1 %v16041_v37  ;;  %11308 = vmatprep.mubr.msk.bf16.mxu1 %vm12110_vm4, %v16041_v37 }
 0x57d   :  { %11448 = vmatprep.mubr.msk.bf16.mxu0 %vm12110_vm4, %v16041_v37 }
 0x57e   :  { %11435 = vmatpush3.bf16.msra.mxu0 %v12004_v12  ;;  %v16059_v12 = vld [vmem:[#allocation23_spill] sm:$0xff] }
 0x57f   :  { %11295 = vmatpush3.bf16.msra.mxu1 %v12003_v14  ;;  %11436 = vmatprep.subr.bf16.mxu0 %v16041_v37  ;;  %v1219_v14 = vmax.f32 %v13690_v21, 0.0  ;;  %v12035_v21 = vld [vmem:[%s15908_s5 + $0xdc8] sm:$0xff]  }
 0x580   :  { %11296 = vmatprep.subr.bf16.mxu1 %v16041_v37 }
 0x582   :  { %11437 = vmatpush3.bf16.msra.mxu0 %v12006_v63  ;;  %v12034_v63 = vld [vmem:[%s15908_s5 + $0xf80] sm:$0xff]  }
 0x583   :  { %11297 = vmatpush3.bf16.msra.mxu1 %v12005_v46  ;;  %11438 = vmatprep.subr.bf16.mxu0 %v16041_v37  ;;  %v1226_v46 = vmax.f32 %v16059_v12, 0.0  ;;  %v12062_v12 = vld [vmem:[%s15908_s5 + $0xee8] sm:$0xff]  }
 0x584   :  { %11298 = vmatprep.subr.bf16.mxu1 %v16041_v37 }
 0x586   :  { %11439 = vmatpush3.bf16.msra.mxu0 %v12008_v60  ;;  %v6463_v60 = vpack.c.bf16 %v1226_v46, %v1226_v46 }
 0x587   :  { %11299 = vmatpush3.bf16.msra.mxu1 %v12007_v38  ;;  %11440 = vmatprep.subr.bf16.mxu0 %v16041_v37  ;;  %v6456_v38 = vpack.c.bf16 %v1219_v14, %v1219_v14  ;;  %v12061_v14 = vld [vmem:[%s15908_s5 + $0xee0] sm:$0xff]  }
 0x588   :  { %11300 = vmatprep.subr.bf16.mxu1 %v16041_v37 }
 0x58a   :  { %11441 = vmatpush3.bf16.msra.mxu0 %v12010_v61  ;;  %v12037_v61 = vld [vmem:[%s15908_s5 + $0xdd0] sm:$0xff]  }
 0x58b   :  { %11301 = vmatpush3.bf16.msra.mxu1 %v12009_v35  ;;  %11442 = vmatprep.subr.bf16.mxu0 %v16041_v37  ;;  %v12036_v35 = vld [vmem:[%s15908_s5 + $0xf88] sm:$0xff]  }
 0x58c   :  { %11302 = vmatprep.subr.bf16.mxu1 %v16041_v37  ;;  %v15565_v41 = vpop.f32.mrb[144].mxu0 }
 0x58d   :  { %v5532_v5 = vpop.f32.mrb[80].mxu1  ;;  %v11170_v25 = vpop.f32.mrb[145].mxu0 }
 0x58e   :  { %v6422_v48 = vadd.f32 %v6421_v42, %v5532_v5  ;;  %v11030_v47 = vpop.f32.mrb[81].mxu1  ;;  %v6151_v6 = vpop.f32.mrb[146].mxu0  ;;  %11443 = vmatpush3.bf16.msra.mxu0 %v12012_v31  ;;  %v12039_v31 = vld [vmem:[%s15908_s5 + $0xdd8] sm:$0xff]   ;;  %v12043_v25 = vld [vmem:[%s15908_s5 + $0xde8] sm:$0xff]  }
 0x58f   :  { %v5535_v56 = vpop.f32.mrb[82].mxu1  ;;  %11303 = vmatpush3.bf16.msra.mxu1 %v12011_v53  ;;  %v11171_v16 = vpop.f32.mrb[147].mxu0  ;;  %11444 = vmatprep.subr.bf16.mxu0 %v16041_v37  ;;  %v12038_v53 = vld [vmem:[%s15908_s5 + $0xf90] sm:$0xff]   ;;  %v12040_v5 = vld [vmem:[%s15908_s5 + $0xf98] sm:$0xff]   ;;  %v12042_v47 = vld [vmem:[%s15908_s5 + $0xfa0] sm:$0xff]  }
 0x590   :  { %v11031_v18 = vpop.f32.mrb[83].mxu1  ;;  %11304 = vmatprep.subr.bf16.mxu1 %v16041_v37  ;;  %v6423_v26 = vadd.f32 %v6422_v48, %v15343_v49  ;;  %v12017_v49 = vld [vmem:[%s15908_s5 + $0xd40] sm:$0xff]   ;;  %v12044_v56 = vld [vmem:[%s15908_s5 + $0xfa8] sm:$0xff]  }
 0x591   :  { %v12041_v48 = vld [vmem:[%s15908_s5 + $0xde0] sm:$0xff]  }
 0x592   :  { %11445 = vmatpush3.bf16.msra.mxu0 %v12014_v1 }
 0x593   :  { %11305 = vmatpush3.bf16.msra.mxu1 %v12013_v27  ;;  %11446 = vmatprep.subr.bf16.mxu0 %v16041_v37 }
 0x594   :  { %11306 = vmatprep.subr.bf16.mxu1 %v16041_v37 }
 0x596   :  { %11447 = vmatpush3.bf16.msra.mxu0 %v12016_v23  ;;  %v12045_v23 = vld [vmem:[%s15908_s5 + $0xdf0] sm:$0xff]  }
 0x597   :  { %11307 = vmatpush3.bf16.msra.mxu1 %v12015_v7  ;;  %11472 = vmatprep.subr.bf16.mxu0 %v16041_v37 }
 0x598   :  { %11332 = vmatprep.subr.bf16.mxu1 %v16041_v37 }
 0x599   :  { %11449 = vmatmul.mubr.bf16.vlgmr.msra.gmra.mrb[172].mxu0 %v6461_v9  ;;  %v12048_v9 = vld [vmem:[%s15908_s5 + $0xfb8] sm:$0xff]  }
 0x59a   :  { %11309 = vmatmul.mubr.bf16.vlgmr.msra.gmra.mrb[108].mxu1 %v6454_v36  ;;  %11473 = vmatpush3.bf16.msra.mxu0 %v12018_v52  ;;  %v12047_v36 = vld [vmem:[%s15908_s5 + $0xdf8] sm:$0xff]  }
 0x59b   :  { %11333 = vmatpush3.bf16.msra.mxu1 %v12017_v49  ;;  %11474 = vmatprep.subr.bf16.mxu0 %v16041_v37 }
 0x59c   :  { %11334 = vmatprep.subr.bf16.mxu1 %v16041_v37  ;;  %11348 = vmatprep.mubr.msk.bf16.mxu1 %vm12110_vm4, %v16041_v37 }
 0x59d   :  { %11488 = vmatprep.mubr.msk.bf16.mxu0 %vm12110_vm4, %v16041_v37 }
 0x59e   :  { %11475 = vmatpush3.bf16.msra.mxu0 %v12020_v33  ;;  %v1228_v33 = vmax.f32 %v13702_v57, 0.0  ;;  %v12052_v57 = vld [vmem:[%s15908_s5 + $0xe58] sm:$0xff]  }
 0x59f   :  { %11335 = vmatpush3.bf16.msra.mxu1 %v12019_v0  ;;  %11476 = vmatprep.subr.bf16.mxu0 %v16041_v37  ;;  %v1221_v0 = vmax.f32 %v13698_v51, 0.0  ;;  %v12051_v51 = vld [vmem:[%s15908_s5 + $0xe50] sm:$0xff]  }
 0x5a0   :  { %11336 = vmatprep.subr.bf16.mxu1 %v16041_v37 }
 0x5a2   :  { %11477 = vmatpush3.bf16.msra.mxu0 %v12022_v13  ;;  %v6465_v13 = vpack.c.bf16 %v1228_v33, %v1228_v33  ;;  %v12072_v33 = vld [vmem:[%s15908_s5 + $0xf78] sm:$0xff]  }
 0x5a3   :  { %11337 = vmatpush3.bf16.msra.mxu1 %v12021_v29  ;;  %11478 = vmatprep.subr.bf16.mxu0 %v16041_v37  ;;  %v6458_v29 = vpack.c.bf16 %v1221_v0, %v1221_v0 }
 0x5a4   :  { %11338 = vmatprep.subr.bf16.mxu1 %v16041_v37 }
 0x5a6   :  { %11479 = vmatpush3.bf16.msra.mxu0 %v12024_v11  ;;  %v12053_v11 = vld [vmem:[%s15908_s5 + $0xe60] sm:$0xff]  }
 0x5a7   :  { %11339 = vmatpush3.bf16.msra.mxu1 %v12023_v24  ;;  %11480 = vmatprep.subr.bf16.mxu0 %v16041_v37  ;;  %v12050_v24 = vld [vmem:[%s15908_s5 + $0xe48] sm:$0xff]  }
 0x5a8   :  { %11340 = vmatprep.subr.bf16.mxu1 %v16041_v37 }
 0x5aa   :  { %11481 = vmatpush3.bf16.msra.mxu0 %v12026_v10 }
 0x5ab   :  { %11341 = vmatpush3.bf16.msra.mxu1 %v12025_v32  ;;  %11482 = vmatprep.subr.bf16.mxu0 %v16041_v37  ;;  %v12054_v32 = vld [vmem:[%s15908_s5 + $0xe68] sm:$0xff]  }
 0x5ac   :  { %11342 = vmatprep.subr.bf16.mxu1 %v16041_v37  ;;  %v15638_v22 = vpop.f32.mrb[148].mxu0 }
 0x5ad   :  { %v5708_v4 = vpop.f32.mrb[84].mxu1  ;;  %v11210_v45 = vpop.f32.mrb[149].mxu0 }
 0x5ae   :  { %v6424_v15 = vadd.f32 %v6423_v26, %v5708_v4  ;;  %v11070_v28 = vpop.f32.mrb[85].mxu1  ;;  %v6327_v55 = vpop.f32.mrb[150].mxu0  ;;  %11483 = vmatpush3.bf16.msra.mxu0 %v12028_v34 }
 0x5af   :  { %v5711_v42 = vpop.f32.mrb[86].mxu1  ;;  %11343 = vmatpush3.bf16.msra.mxu1 %v12027_v50  ;;  %v11211_v30 = vpop.f32.mrb[151].mxu0  ;;  %11484 = vmatprep.subr.bf16.mxu0 %v16041_v37 }
 0x5b0   :  { %v11071_v62 = vpop.f32.mrb[87].mxu1  ;;  %11344 = vmatprep.subr.bf16.mxu1 %v16041_v37  ;;  %v6425_v8 = vadd.f32 %v6424_v15, %v15418_v54  ;;  %v12033_v54 = vld [vmem:[%s15908_s5 + $0xdc0] sm:$0xff]   ;;  %v12055_v42 = vld [vmem:[%s15908_s5 + $0xe70] sm:$0xff]   ;;  %v1223_v30 = vmax.f32 %v13706_v17, 0.0 }
 0x5b1   :  { %v12056_v62 = vld [vmem:[%s15908_s5 + $0xe78] sm:$0xff]   ;;  %v12059_v17 = vld [vmem:[%s15908_s5 + $0xed0] sm:$0xff]  }
 0x5b2   :  { %11485 = vmatpush3.bf16.msra.mxu0 %v12030_v43 }
 0x5b3   :  { %11345 = vmatpush3.bf16.msra.mxu1 %v12029_v19  ;;  %11486 = vmatprep.subr.bf16.mxu0 %v16041_v37 }
 0x5b4   :  { %11346 = vmatprep.subr.bf16.mxu1 %v16041_v37 }
 0x5b6   :  { %11487 = vmatpush3.bf16.msra.mxu0 %v12032_v39  ;;  %v12060_v39 = vld [vmem:[%s15908_s5 + $0xed8] sm:$0xff]  }
 0x5b7   :  { %11347 = vmatpush3.bf16.msra.mxu1 %v12031_v40  ;;  %11512 = vmatprep.subr.bf16.mxu0 %v16041_v37  ;;  %v6460_v40 = vpack.c.bf16 %v1223_v30, %v1223_v30 }
 0x5b8   :  { %11372 = vmatprep.subr.bf16.mxu1 %v16041_v37 }
 0x5b9   :  { %11489 = vmatmul.mubr.bf16.vlgmr.msra.gmra.mrb[176].mxu0 %v6463_v60 }
 0x5ba   :  { %11349 = vmatmul.mubr.bf16.vlgmr.msra.gmra.mrb[112].mxu1 %v6456_v38  ;;  %11513 = vmatpush3.bf16.msra.mxu0 %v12034_v63 }
 0x5bb   :  { %11373 = vmatpush3.bf16.msra.mxu1 %v12033_v54  ;;  %11514 = vmatprep.subr.bf16.mxu0 %v16041_v37 }
 0x5bc   :  { %11374 = vmatprep.subr.bf16.mxu1 %v16041_v37  ;;  %11388 = vmatprep.mubr.msk.bf16.mxu1 %vm12110_vm4, %v16041_v37 }
 0x5bd   :  { %11528 = vmatprep.mubr.msk.bf16.mxu0 %vm12110_vm4, %v16041_v37 }
 0x5be   :  { %11515 = vmatpush3.bf16.msra.mxu0 %v12036_v35 }
 0x5bf   :  { %11375 = vmatpush3.bf16.msra.mxu1 %v12035_v21  ;;  %11516 = vmatprep.subr.bf16.mxu0 %v16041_v37 }
 0x5c0   :  { %11376 = vmatprep.subr.bf16.mxu1 %v16041_v37 }
 0x5c2   :  { %11517 = vmatpush3.bf16.msra.mxu0 %v12038_v53 }
 0x5c3   :  { %11377 = vmatpush3.bf16.msra.mxu1 %v12037_v61  ;;  %11518 = vmatprep.subr.bf16.mxu0 %v16041_v37  ;;  %v12063_v61 = vld [vmem:[%s15908_s5 + $0xef0] sm:$0xff]  }
 0x5c4   :  { %11378 = vmatprep.subr.bf16.mxu1 %v16041_v37 }
 0x5c6   :  { %11519 = vmatpush3.bf16.msra.mxu0 %v12040_v5 }
 0x5c7   :  { %11379 = vmatpush3.bf16.msra.mxu1 %v12039_v31  ;;  %11520 = vmatprep.subr.bf16.mxu0 %v16041_v37 }
 0x5c8   :  { %11380 = vmatprep.subr.bf16.mxu1 %v16041_v37 }
 0x5ca   :  { %11521 = vmatpush3.bf16.msra.mxu0 %v12042_v47  ;;  %v1225_v47 = vmax.f32 %v13710_v20, 0.0  ;;  %v12067_v20 = vld [vmem:[%s15908_s5 + $0xf50] sm:$0xff]  }
 0x5cb   :  { %11381 = vmatpush3.bf16.msra.mxu1 %v12041_v48  ;;  %11522 = vmatprep.subr.bf16.mxu0 %v16041_v37  ;;  %v12064_v48 = vld [vmem:[%s15908_s5 + $0xef8] sm:$0xff]  }
 0x5cc   :  { %11382 = vmatprep.subr.bf16.mxu1 %v16041_v37  ;;  %v15711_v27 = vpop.f32.mrb[152].mxu0 }
 0x5cd   :  { %v5884_v6 = vpop.f32.mrb[88].mxu1  ;;  %v11250_v16 = vpop.f32.mrb[153].mxu0 }
 0x5ce   :  { %v6426_v1 = vadd.f32 %v6425_v8, %v5884_v6  ;;  %v11110_v18 = vpop.f32.mrb[89].mxu1  ;;  %v6809_v7 = vpop.f32.mrb[154].mxu0  ;;  %11523 = vmatpush3.bf16.msra.mxu0 %v12044_v56  ;;  %v12057_v8 = vld [vmem:[%s15908_s5 + $0xec0] sm:$0xff]   ;;  %v6462_v56 = vpack.c.bf16 %v1225_v47, %v1225_v47  ;;  %v12068_v6 = vld [vmem:[%s15908_s5 + $0xf58] sm:$0xff]  }
 0x5cf   :  { %v5887_v26 = vpop.f32.mrb[90].mxu1  ;;  %11383 = vmatpush3.bf16.msra.mxu1 %v12043_v25  ;;  %v11251_v49 = vpop.f32.mrb[155].mxu0  ;;  %11524 = vmatprep.subr.bf16.mxu0 %v16041_v37  ;;  %v12065_v25 = vld [vmem:[%s15908_s5 + $0xf40] sm:$0xff]   ;;  %v12070_v18 = vld [vmem:[%s15908_s5 + $0xf68] sm:$0xff]  }
 0x5d0   :  { %v11111_v59 = vpop.f32.mrb[91].mxu1  ;;  %11384 = vmatprep.subr.bf16.mxu1 %v16041_v37  ;;  %v6427_v52 = vadd.f32 %v6426_v1, %v15492_v58  ;;  %v12049_v58 = vld [vmem:[%s15908_s5 + $0xe40] sm:$0xff]  }
 0x5d1   :  { %v12069_v1 = vld [vmem:[%s15908_s5 + $0xf60] sm:$0xff]  }
 0x5d2   :  { %11525 = vmatpush3.bf16.msra.mxu0 %v12046_v44 }
 0x5d3   :  { %11385 = vmatpush3.bf16.msra.mxu1 %v12045_v23  ;;  %11526 = vmatprep.subr.bf16.mxu0 %v16041_v37 }
 0x5d4   :  { %11386 = vmatprep.subr.bf16.mxu1 %v16041_v37 }
 0x5d6   :  { %11527 = vmatpush3.bf16.msra.mxu0 %v12048_v9 }
 0x5d7   :  { %11387 = vmatpush3.bf16.msra.mxu1 %v12047_v36 }
 0x5d8   :  { %11412 = vmatprep.subr.bf16.mxu1 %v16041_v37 }
 0x5d9   :  { %11529 = vmatmul.mubr.bf16.vlgmr.msra.gmra.mrb[180].mxu0 %v6465_v13  ;;  %v12074_v13 = vld [vmem:[%s15908_s5 + $0xfc8] sm:$0xff]  }
 0x5da   :  { %11389 = vmatmul.mubr.bf16.vlgmr.msra.gmra.mrb[116].mxu1 %v6458_v29  ;;  %v12073_v29 = vld [vmem:[%s15908_s5 + $0xfc0] sm:$0xff]  }
 0x5db   :  { %11413 = vmatpush3.bf16.msra.mxu1 %v12049_v58  ;;  %11428 = vmatprep.mubr.msk.bf16.mxu1 %vm12110_vm4, %v16041_v37  ;;  %v1227_v58 = vmax.f32 %v13714_v2, 0.0  ;;  %v12075_v2 = vld [vmem:[%s15908_s5 + $0xfd0] sm:$0xff]  }
 0x5dc   :  { %11414 = vmatprep.subr.bf16.mxu1 %v16041_v37 }
 0x5df   :  { %11415 = vmatpush3.bf16.msra.mxu1 %v12050_v24  ;;  %v12076_v24 = vld [vmem:[%s15908_s5 + $0xfd8] sm:$0xff]  }
 0x5e0   :  { %11416 = vmatprep.subr.bf16.mxu1 %v16041_v37 }
 0x5e3   :  { %11417 = vmatpush3.bf16.msra.mxu1 %v12051_v51  ;;  %v12077_v51 = vld [vmem:[%s15908_s5 + $0xfe0] sm:$0xff]  }
 0x5e4   :  { %11418 = vmatprep.subr.bf16.mxu1 %v16041_v37 }
 0x5e7   :  { %11419 = vmatpush3.bf16.msra.mxu1 %v12052_v57  ;;  %v12078_v57 = vld [vmem:[%s15908_s5 + $0xfe8] sm:$0xff]  }
 0x5e8   :  { %11420 = vmatprep.subr.bf16.mxu1 %v16041_v37 }
 0x5eb   :  { %11421 = vmatpush3.bf16.msra.mxu1 %v12053_v11 }
 0x5ec   :  { %11422 = vmatprep.subr.bf16.mxu1 %v16041_v37  ;;  %v15758_v50 = vpop.f32.mrb[156].mxu0 }
 0x5ed   :  { %v6060_v10 = vpop.f32.mrb[92].mxu1  ;;  %v11290_v15 = vpop.f32.mrb[157].mxu0 }
 0x5ee   :  { %v6428_v34 = vadd.f32 %v6427_v52, %v6060_v10  ;;  %v11150_v4 = vpop.f32.mrb[93].mxu1  ;;  %v6985_v45 = vpop.f32.mrb[158].mxu0  ;;  %v12071_v52 = vld [vmem:[%s15908_s5 + $0xf70] sm:$0xff]  }
 0x5ef   :  { %v6063_v28 = vpop.f32.mrb[94].mxu1  ;;  %11423 = vmatpush3.bf16.msra.mxu1 %v12054_v32  ;;  %v11291_v19 = vpop.f32.mrb[159].mxu0  ;;  %v12079_v45 = vld [vmem:[%s15908_s5 + $0xff0] sm:$0xff]  }
 0x5f0   :  { %v11151_v55 = vpop.f32.mrb[95].mxu1  ;;  %11424 = vmatprep.subr.bf16.mxu1 %v16041_v37  ;;  %v6429_v43 = vadd.f32 %v6428_v34, %v15565_v41  ;;  %v12058_v41 = vld [vmem:[%s15908_s5 + $0xec8] sm:$0xff]  }
 0x5f3   :  { %11425 = vmatpush3.bf16.msra.mxu1 %v12055_v42 }
 0x5f4   :  { %11426 = vmatprep.subr.bf16.mxu1 %v16041_v37 }
 0x5f7   :  { %11427 = vmatpush3.bf16.msra.mxu1 %v12056_v62 }
 0x5f8   :  { %11452 = vmatprep.subr.bf16.mxu1 %v16041_v37 }
 0x5fa   :  { %11429 = vmatmul.mubr.bf16.vlgmr.msra.gmra.mrb[120].mxu1 %v6460_v40 }
 0x5fb   :  { %11453 = vmatpush3.bf16.msra.mxu1 %v12057_v8  ;;  %11468 = vmatprep.mubr.msk.bf16.mxu1 %vm12110_vm4, %v16041_v37 }
 0x5fc   :  { %11454 = vmatprep.subr.bf16.mxu1 %v16041_v37 }
 0x5ff   :  { %11455 = vmatpush3.bf16.msra.mxu1 %v12058_v41 }
 0x600   :  { %11456 = vmatprep.subr.bf16.mxu1 %v16041_v37 }
 0x603   :  { %11457 = vmatpush3.bf16.msra.mxu1 %v12059_v17 }
 0x604   :  { %11458 = vmatprep.subr.bf16.mxu1 %v16041_v37 }
 0x607   :  { %11459 = vmatpush3.bf16.msra.mxu1 %v12060_v39 }
 0x608   :  { %11460 = vmatprep.subr.bf16.mxu1 %v16041_v37 }
 0x60b   :  { %11461 = vmatpush3.bf16.msra.mxu1 %v12061_v14 }
 0x60c   :  { %11462 = vmatprep.subr.bf16.mxu1 %v16041_v37  ;;  %v15796_v54 = vpop.f32.mrb[160].mxu0 }
 0x60d   :  { %v6236_v46 = vpop.f32.mrb[96].mxu1  ;;  %v11330_v60 = vpop.f32.mrb[161].mxu0 }
 0x60e   :  { %v6430_v63 = vadd.f32 %v6429_v43, %v6236_v46  ;;  %v11190_v38 = vpop.f32.mrb[97].mxu1  ;;  %v7161_v35 = vpop.f32.mrb[162].mxu0  ;;  %v16060_v43 = vld [vmem:[#allocation24_spill] sm:$0xff] }
 0x60f   :  { %v6239_v21 = vpop.f32.mrb[98].mxu1  ;;  %11463 = vmatpush3.bf16.msra.mxu1 %v12062_v12  ;;  %v11331_v31 = vpop.f32.mrb[163].mxu0  ;;  %v1229_v62 = vmax.f32 %v16060_v43, 0.0 }
 0x610   :  { %v11191_v53 = vpop.f32.mrb[99].mxu1  ;;  %11464 = vmatprep.subr.bf16.mxu1 %v16041_v37  ;;  %v6431_v5 = vadd.f32 %v6430_v63, %v15638_v22  ;;  %v12066_v22 = vld [vmem:[%s15908_s5 + $0xf48] sm:$0xff]  }
 0x611   :  { %v6466_v30 = vpack.c.bf16 %v1229_v62, %v1229_v62 }
 0x613   :  { %11465 = vmatpush3.bf16.msra.mxu1 %v12063_v61 }
 0x614   :  { %11466 = vmatprep.subr.bf16.mxu1 %v16041_v37 }
 0x617   :  { %11467 = vmatpush3.bf16.msra.mxu1 %v12064_v48 }
 0x618   :  { %11492 = vmatprep.subr.bf16.mxu1 %v16041_v37 }
 0x61a   :  { %11469 = vmatmul.mubr.bf16.vlgmr.msra.gmra.mrb[124].mxu1 %v6462_v56 }
 0x61b   :  { %11493 = vmatpush3.bf16.msra.mxu1 %v12065_v25  ;;  %11508 = vmatprep.mubr.msk.bf16.mxu1 %vm12110_vm4, %v16041_v37 }
 0x61c   :  { %11494 = vmatprep.subr.bf16.mxu1 %v16041_v37 }
 0x61f   :  { %11495 = vmatpush3.bf16.msra.mxu1 %v12066_v22 }
 0x620   :  { %11496 = vmatprep.subr.bf16.mxu1 %v16041_v37 }
 0x623   :  { %11497 = vmatpush3.bf16.msra.mxu1 %v12067_v20 }
 0x624   :  { %11498 = vmatprep.subr.bf16.mxu1 %v16041_v37 }
 0x627   :  { %11499 = vmatpush3.bf16.msra.mxu1 %v12068_v6 }
 0x628   :  { %11500 = vmatprep.subr.bf16.mxu1 %v16041_v37 }
 0x62b   :  { %11501 = vmatpush3.bf16.msra.mxu1 %v12069_v1 }
 0x62c   :  { %11502 = vmatprep.subr.bf16.mxu1 %v16041_v37  ;;  %v15834_v26 = vpop.f32.mrb[164].mxu0 }
 0x62d   :  { %v6412_v16 = vpop.f32.mrb[100].mxu1  ;;  %v11370_v44 = vpop.f32.mrb[165].mxu0 }
 0x62e   :  { %v6432_v7 = vadd.f32 %v6431_v5, %v6412_v16  ;;  %v11230_v23 = vpop.f32.mrb[101].mxu1  ;;  %v7337_v49 = vpop.f32.mrb[166].mxu0 }
 0x62f   :  { %v6415_v59 = vpop.f32.mrb[102].mxu1  ;;  %11503 = vmatpush3.bf16.msra.mxu1 %v12070_v18  ;;  %v11371_v0 = vpop.f32.mrb[167].mxu0 }
 0x630   :  { %v15840_v36 = vadd.f32 %v6432_v7, %v15352_v3  ;;  %v11231_v9 = vpop.f32.mrb[103].mxu1  ;;  %11504 = vmatprep.subr.bf16.mxu1 %v16041_v37  ;;  %v6464_v3 = vpack.c.bf16 %v1227_v58, %v1227_v58 }
 0x633   :  { %11505 = vmatpush3.bf16.msra.mxu1 %v12071_v52 }
 0x634   :  { %11506 = vmatprep.subr.bf16.mxu1 %v16041_v37 }
 0x637   :  { %11507 = vmatpush3.bf16.msra.mxu1 %v12072_v33 }
 0x638   :  { %11532 = vmatprep.subr.bf16.mxu1 %v16041_v37 }
 0x63a   :  { %11509 = vmatmul.mubr.bf16.vlgmr.msra.gmra.mrb[128].mxu1 %v6464_v3 }
 0x63b   :  { %11533 = vmatpush3.bf16.msra.mxu1 %v12073_v29  ;;  %11548 = vmatprep.mubr.msk.bf16.mxu1 %vm12110_vm4, %v16041_v37 }
 0x63c   :  { %11534 = vmatprep.subr.bf16.mxu1 %v16041_v37 }
 0x63f   :  { %11535 = vmatpush3.bf16.msra.mxu1 %v12074_v13 }
 0x640   :  { %11536 = vmatprep.subr.bf16.mxu1 %v16041_v37 }
 0x643   :  { %11537 = vmatpush3.bf16.msra.mxu1 %v12075_v2 }
 0x644   :  { %11538 = vmatprep.subr.bf16.mxu1 %v16041_v37 }
 0x647   :  { %11539 = vmatpush3.bf16.msra.mxu1 %v12076_v24 }
 0x648   :  { %11540 = vmatprep.subr.bf16.mxu1 %v16041_v37 }
 0x64b   :  { %11541 = vmatpush3.bf16.msra.mxu1 %v12077_v51 }
 0x64c   :  { %11542 = vmatprep.subr.bf16.mxu1 %v16041_v37  ;;  %v7510_v32 = vpop.f32.mrb[168].mxu0 }
 0x64d   :  { %v6894_v11 = vpop.f32.mrb[104].mxu1  ;;  %v11410_v4 = vpop.f32.mrb[169].mxu0 }
 0x64e   :  { %v8132_v10 = vadd.f32 %v6894_v11, %v15711_v27  ;;  %v11270_v34 = vpop.f32.mrb[105].mxu1  ;;  %v7513_v28 = vpop.f32.mrb[170].mxu0  ;;  %v12080_v27 = vld [vmem:[%s15908_s5 + $0xff8] sm:$0xff]   ;;  %v9519_v4 = vld [vmem:[%s15909_s6] ss:$0 sm:$0xff] }
 0x64f   :  { %v6897_v15 = vpop.f32.mrb[106].mxu1  ;;  %11543 = vmatpush3.bf16.msra.mxu1 %v12078_v57  ;;  %v11411_v55 = vpop.f32.mrb[171].mxu0 }
 0x650   :  { %v11271_v42 = vpop.f32.mrb[107].mxu1  ;;  %11544 = vmatprep.subr.bf16.mxu1 %v16041_v37  ;;  %v8133_v19 = vadd.f32 %v8132_v10, %v15758_v50 }
 0x653   :  { %11545 = vmatpush3.bf16.msra.mxu1 %v12079_v45 }
 0x654   :  { %11546 = vmatprep.subr.bf16.mxu1 %v16041_v37 }
 0x657   :  { %11547 = vmatpush3.bf16.msra.mxu1 %v12080_v27 }
 0x65a   :  { %11549 = vmatmul.mubr.bf16.vlgmr.msra.gmra.mrb[132].mxu1 %v6466_v30 }
 0x66c   :  { %v7686_v40 = vpop.f32.mrb[172].mxu0 }
 0x66d   :  { %v7070_v8 = vpop.f32.mrb[108].mxu1  ;;  %v11450_v39 = vpop.f32.mrb[173].mxu0 }
 0x66e   :  { %v8134_v41 = vadd.f32 %v8133_v19, %v7070_v8  ;;  %v11310_v17 = vpop.f32.mrb[109].mxu1  ;;  %v7689_v12 = vpop.f32.mrb[174].mxu0 }
 0x66f   :  { %v7073_v14 = vpop.f32.mrb[110].mxu1  ;;  %v11451_v46 = vpop.f32.mrb[175].mxu0 }
 0x670   :  { %v11311_v50 = vpop.f32.mrb[111].mxu1  ;;  %v8135_v63 = vadd.f32 %v8134_v41, %v15796_v54 }
 0x68c   :  { %v7862_v60 = vpop.f32.mrb[176].mxu0 }
 0x68d   :  { %v7246_v38 = vpop.f32.mrb[112].mxu1  ;;  %v11490_v35 = vpop.f32.mrb[177].mxu0 }
 0x68e   :  { %v8136_v21 = vadd.f32 %v8135_v63, %v7246_v38  ;;  %v11350_v37 = vpop.f32.mrb[113].mxu1  ;;  %v7865_v53 = vpop.f32.mrb[178].mxu0 }
 0x68f   :  { %v7249_v61 = vpop.f32.mrb[114].mxu1  ;;  %v11491_v5 = vpop.f32.mrb[179].mxu0 }
 0x690   :  { %v11351_v31 = vpop.f32.mrb[115].mxu1  ;;  %v8137_v48 = vadd.f32 %v8136_v21, %v15834_v26 }
 0x6ac   :  { %v8038_v25 = vpop.f32.mrb[180].mxu0 }
 0x6ad   :  { %v7422_v47 = vpop.f32.mrb[116].mxu1  ;;  %v11530_v20 = vpop.f32.mrb[181].mxu0 }
 0x6ae   :  { %v8138_v56 = vadd.f32 %v8137_v48, %v7422_v47  ;;  %v11390_v22 = vpop.f32.mrb[117].mxu1  ;;  %v8041_v1 = vpop.f32.mrb[182].mxu0 }
 0x6af   :  { %v7425_v6 = vpop.f32.mrb[118].mxu1  ;;  %v11531_v54 = vpop.f32.mrb[183].mxu0 }
 0x6b0   :  { %v11391_v18 = vpop.f32.mrb[119].mxu1  ;;  %v8139_v16 = vadd.f32 %v8138_v56, %v7510_v32 }
 0x6cd   :  { %v7598_v7 = vpop.f32.mrb[120].mxu1 }
 0x6ce   :  { %v8140_v23 = vadd.f32 %v8139_v16, %v7598_v7  ;;  %v11430_v44 = vpop.f32.mrb[121].mxu1 }
 0x6cf   :  { %v7601_v59 = vpop.f32.mrb[122].mxu1 }
 0x6d0   :  { %v11431_v49 = vpop.f32.mrb[123].mxu1  ;;  %v8141_v52 = vadd.f32 %v8140_v23, %v7686_v40 }
 0x6ed   :  { %v7774_v9 = vpop.f32.mrb[124].mxu1 }
 0x6ee   :  { %v8142_v0 = vadd.f32 %v8141_v52, %v7774_v9  ;;  %v11470_v33 = vpop.f32.mrb[125].mxu1 }
 0x6ef   :  { %v7777_v26 = vpop.f32.mrb[126].mxu1 }
 0x6f0   :  { %v11471_v58 = vpop.f32.mrb[127].mxu1  ;;  %v8143_v29 = vadd.f32 %v8142_v0, %v7862_v60 }
 0x70d   :  { %v7950_v3 = vpop.f32.mrb[128].mxu1 }
 0x70e   :  { %v8144_v13 = vadd.f32 %v8143_v29, %v7950_v3  ;;  %v11510_v2 = vpop.f32.mrb[129].mxu1 }
 0x70f   :  { %v7953_v24 = vpop.f32.mrb[130].mxu1 }
 0x710   :  { %v11511_v51 = vpop.f32.mrb[131].mxu1  ;;  %v8145_v57 = vadd.f32 %v8144_v13, %v8038_v25 }
 0x72d   :  { %v8126_v11 = vpop.f32.mrb[132].mxu1 }
 0x72e   :  { %v8146_v32 = vadd.f32 %v8145_v57, %v8126_v11  ;;  %v11550_v10 = vpop.f32.mrb[133].mxu1 }
 0x72f   :  { %v8129_v34 = vpop.f32.mrb[134].mxu1 }
 0x730   :  { %v8147_v15 = vadd.f32 %v8146_v32, %v15840_v36  ;;  %v11551_v28 = vpop.f32.mrb[135].mxu1 }
 0x732   :  { %v8155_v45 = vadd.f32 %v9519_v4, %v8147_v15 }
 0x734   :  { %8156 = vst [vmem:[#allocation3] sm:$0xff] %v8155_v45 }
 0x735   :  { %12095 = shalt.err (!%p12092_p4)
}
 0x736   :  { %s12096_s2 = scalar_lea.hbm %s15910_s7, 128 }
 0x737   :  { %p12097_p5 = scmp.ne.s32.totalorder %s15910_s7, %s12096_s2  ;;  %p12100_p6 = scmp.lt.u32.totalorder %s12096_s2, %s15910_s7 }
 0x739   :  { %p12102_p7 = pnand %p12100_p6, %p12097_p5 }
 0x73b   :  { %12105 = shalt.err (!%p12102_p7)
}
 0x73c   :  { %8166 = dma.vmem_to_hbm [thread:$0]  %s8164_s12, 128, %s15910_s7, [#allocation4]  }
 0x73d   :  { %12106 = dma.done.wait [#allocation4], 128  }
 0x73e   :  { %12107 = vsyncadd [#allocation4], 4294967168 }
 0x73f   :  { %8170 = vsyncpa [#allocation4], 1 }

</bundles_post_ra>
